<compile_context>
chip_gen: v6e
topology: v6e:2x2x1
jax: 0.10.0
libtpu: 0.0.40
codegen_flags: <defaults>
</compile_context>

<pallas_src>
import functools
import math

import jax
import jax.numpy as jnp
from jax.experimental import pallas as pl
from jax.experimental.pallas import tpu as pltpu


_LN_EPS = 1e-5


def _vmem_capacity_bytes():
    try:
        return int(pltpu.get_tpu_info().vmem_capacity_bytes)
    except Exception:
        return 64 * 1024 * 1024          # conservative (v7x-sized) fallback


_VMEM_CAP = _vmem_capacity_bytes()
_SMALL_VMEM = _VMEM_CAP <= 64 * 1024 * 1024
# Leave headroom for double-buffering + compiler scratch.
_VMEM_LIMIT_BYTES = min((_VMEM_CAP * 3) // 4, 100 * 1024 * 1024)
# Tokens resident per encoder-layer block / rows per input-projection block.
_TOKEN_CAP = 512 if _SMALL_VMEM else 1024
_ROW_TILE_CAP = 1024 if _SMALL_VMEM else 2048


# ----------------------------------------------------------------------------
# In-kernel helpers
# ----------------------------------------------------------------------------

def _layer_norm(x, w, b, eps=_LN_EPS):
    mu = jnp.mean(x, axis=-1, keepdims=True)
    xc = x - mu
    var = jnp.mean(xc * xc, axis=-1, keepdims=True)
    return xc * jax.lax.rsqrt(var + eps) * w + b


# ----------------------------------------------------------------------------
# Pallas kernels
# ----------------------------------------------------------------------------

def _linear_kernel(x_ref, w_ref, b_ref, o_ref):
    # y = x @ W + b ; W stored (in, out) in bf16, accumulate in f32.
    o_ref[...] = (
        jnp.dot(x_ref[...].astype(jnp.bfloat16), w_ref[...],
                preferred_element_type=jnp.float32)
        + b_ref[...]
    )


def _encoder_layer_kernel(num_heads, ffn_chunk,
                          x_ref, wqkv_ref, bqkv_ref, wo_ref, bo_ref,
                          ln1w_ref, ln1b_ref,
                          w1_ref, b1_ref, w2_ref, b2_ref,
                          ln2w_ref, ln2b_ref,
                          o_ref):
    x = x_ref[...]                      # (BT, S, E) f32 batch tile
    BT, S, E = x.shape
    H = num_heads
    Dh = E // H

    x2 = x.reshape(BT * S, E)

    # --- multi-head self-attention (MXU bf16, f32 accumulate) ---------------
    # 1/sqrt(Dh) is already folded into the Q columns of wqkv/bqkv.
    qkv = (jnp.dot(x2.astype(jnp.bfloat16), wqkv_ref[...],
                   preferred_element_type=jnp.float32)
           + bqkv_ref[...])             # (BT*S, 3E) f32
    q = qkv[:, 0 * E:1 * E].reshape(BT, S, E)
    k = qkv[:, 1 * E:2 * E].reshape(BT, S, E)
    v = qkv[:, 2 * E:3 * E].reshape(BT, S, E)

    wo = wo_ref[...]                    # (E, E) bf16, VMEM-resident
    attn = jnp.zeros((BT * S, E), jnp.float32)   # lane-dense f32 accumulator

    # TODO(synk): for S >~ 1024, block the KV axis (online softmax) so the
    # (BT, S, S) f32 score tile never fully materializes.
    for h in range(H):                  # static head loop
        qh = q[:, :, h * Dh:(h + 1) * Dh].astype(jnp.bfloat16)
        kh = k[:, :, h * Dh:(h + 1) * Dh].astype(jnp.bfloat16)
        vh = v[:, :, h * Dh:(h + 1) * Dh].astype(jnp.bfloat16)
        s = jnp.einsum('bqd,bkd->bqk', qh, kh,
                       preferred_element_type=jnp.float32)       # (BT,S,S) f32
        s = s - jnp.max(s, axis=-1, keepdims=True)
        p = jnp.exp(s)
        p = p * pl.reciprocal(jnp.sum(p, axis=-1, keepdims=True), approx=True)
        oh = jnp.einsum('bqk,bkd->bqd', p.astype(jnp.bfloat16), vh,
                        preferred_element_type=jnp.float32)      # (BT,S,Dh)
        # Fold the output projection per head: accumulate into a full-E-wide
        # f32 buffer, so no Dh-wide (partial-lane) store is ever issued.
        attn = attn + jnp.dot(oh.reshape(BT * S, Dh).astype(jnp.bfloat16),
                              wo[h * Dh:(h + 1) * Dh, :],
                              preferred_element_type=jnp.float32)
    attn = attn + bo_ref[...]

    # residual + LayerNorm1 (dropout1 = identity in eval mode)
    y = _layer_norm(x2 + attn, ln1w_ref[...], ln1b_ref[...])

    # --- feed-forward, chunked along F ---------------------------------------
    # relu is elementwise, so chunking linear1's output columns and summing the
    # per-chunk linear2 contributions is exact; the (tokens, F) f32
    # intermediate never fully materializes.
    yb = y.astype(jnp.bfloat16)
    F = w1_ref.shape[1]
    h2 = jnp.zeros((BT * S, E), jnp.float32)
    for c in range(F // ffn_chunk):
        lo = c * ffn_chunk
        h1c = jnp.maximum(
            jnp.dot(yb, w1_ref[:, lo:lo + ffn_chunk],
                    preferred_element_type=jnp.float32)
            + b1_ref[:, lo:lo + ffn_chunk],
            0.0)
        h2 = h2 + jnp.dot(h1c.astype(jnp.bfloat16),
                          w2_ref[lo:lo + ffn_chunk, :],
                          preferred_element_type=jnp.float32)
    h2 = h2 + b2_ref[...]

    # residual + LayerNorm2 (dropout2 = identity in eval mode)
    z = _layer_norm(y + h2, ln2w_ref[...], ln2b_ref[...])
    o_ref[...] = z.reshape(BT, S, E)


# ----------------------------------------------------------------------------
# Tiling helpers
# ----------------------------------------------------------------------------

def _largest_divisor_leq(n, cap):
    cap = max(1, min(n, cap))
    for d in range(cap, 0, -1):
        if n % d == 0:
            return d
    return 1


def _pick_row_tile(m, cap):
    """Row tile for 2-D (rows, feature) operands: divides m, multiple of 8
    (sublane) unless it equals the full extent. Prefers >= 2 grid steps."""
    if m >= 16:
        cap = min(cap, max(8, m // 2))     # >= 2 steps: megacore + pipelining
    if m <= cap:
        return m
    for t in range(min(cap, m - 1), 7, -1):
        if m % t == 0 and t % 8 == 0:
            return t
    return m


def _pick_ffn_chunk(f, cap=1024):
    if f <= cap:
        return f
    for t in range(cap, 127, -1):
        if f % t == 0 and t % 128 == 0:
            return t
    return _largest_divisor_leq(f, cap)


# ----------------------------------------------------------------------------
# pallas_call wrappers
# ----------------------------------------------------------------------------

def pallas_linear(x2d, w, b):
    M, Din = x2d.shape
    N = w.shape[1]
    TM = _pick_row_tile(M, _ROW_TILE_CAP)
    grid = (M // TM,) if M % TM == 0 else (1,)
    if M % TM != 0:
        TM = M
    cost = pl.CostEstimate(
        flops=2 * M * Din * N,
        transcendentals=0,
        bytes_accessed=M * Din * 4 + Din * N * 2 + N * 4 + M * N * 4)
    return pl.pallas_call(
        _linear_kernel,
        out_shape=jax.ShapeDtypeStruct((M, N), jnp.float32),
        grid_spec=pltpu.PrefetchScalarGridSpec(
            num_scalar_prefetch=0,
            grid=grid,
            in_specs=[pl.BlockSpec((TM, Din), lambda i: (i, 0)),
                      pl.BlockSpec((Din, N), lambda i: (0, 0)),   # weight resident
                      pl.BlockSpec((1, N), lambda i: (0, 0))],
            out_specs=pl.BlockSpec((TM, N), lambda i: (i, 0))),
        compiler_params=pltpu.CompilerParams(
            dimension_semantics=("parallel",),
            vmem_limit_bytes=_VMEM_LIMIT_BYTES),
        cost_estimate=cost,
    )(x2d, w, b)


def pallas_encoder_layer(x, p, num_heads):
    B, S, E = x.shape
    F = p['w1'].shape[1]
    H = num_heads

    # Batch tile: self-attention needs the full sequence, so tile whole batch
    # rows. Keep <= _TOKEN_CAP tokens resident per block, and force >= 2 grid
    # steps when B allows it (megacore sharding + DMA/compute overlap).
    bt_cap = max(1, _TOKEN_CAP // max(S, 1))
    if B >= 2:
        bt_cap = min(bt_cap, max(1, B // 2))
    BT = _largest_divisor_leq(B, bt_cap)
    grid = (B // BT,)
    ffn_chunk = _pick_ffn_chunk(F)

    flops = 2 * B * S * E * (4 * E + 2 * F + 2 * S)
    transcendentals = B * H * S * S + 2 * B * S
    bytes_accessed = ((4 * E * E + 2 * E * F) * 2          # bf16 weights
                      + (9 * E + F) * 4                    # f32 biases + LN
                      + 2 * B * S * E * 4)                 # activations in+out
    cost = pl.CostEstimate(flops=flops, transcendentals=transcendentals,
                           bytes_accessed=bytes_accessed)

    kernel = functools.partial(_encoder_layer_kernel, num_heads, ffn_chunk)
    return pl.pallas_call(
        kernel,
        out_shape=jax.ShapeDtypeStruct((B, S, E), jnp.float32),
        grid_spec=pltpu.PrefetchScalarGridSpec(
            num_scalar_prefetch=0,
            grid=grid,
            in_specs=[
                pl.BlockSpec((BT, S, E), lambda b: (b, 0, 0)),   # x tile
                pl.BlockSpec((E, 3 * E), lambda b: (0, 0)),      # wqkv (bf16)
                pl.BlockSpec((1, 3 * E), lambda b: (0, 0)),      # bqkv
                pl.BlockSpec((E, E), lambda b: (0, 0)),          # wo (bf16)
                pl.BlockSpec((1, E), lambda b: (0, 0)),          # bo
                pl.BlockSpec((1, E), lambda b: (0, 0)),          # ln1w
                pl.BlockSpec((1, E), lambda b: (0, 0)),          # ln1b
                pl.BlockSpec((E, F), lambda b: (0, 0)),          # w1 (bf16)
                pl.BlockSpec((1, F), lambda b: (0, 0)),          # b1
                pl.BlockSpec((F, E), lambda b: (0, 0)),          # w2 (bf16)
                pl.BlockSpec((1, E), lambda b: (0, 0)),          # b2
                pl.BlockSpec((1, E), lambda b: (0, 0)),          # ln2w
                pl.BlockSpec((1, E), lambda b: (0, 0)),          # ln2b
            ],
            out_specs=pl.BlockSpec((BT, S, E), lambda b: (b, 0, 0))),
        compiler_params=pltpu.CompilerParams(
            dimension_semantics=("parallel",),
            vmem_limit_bytes=_VMEM_LIMIT_BYTES),
        cost_estimate=cost,
        # Safe: in/out index maps are identical and blocks are disjoint.
        input_output_aliases={0: 0},
    )(x, p['wqkv'], p['bqkv'], p['wo'], p['bo'],
      p['ln1w'], p['ln1b'],
      p['w1'], p['b1'], p['w2'], p['b2'],
      p['ln2w'], p['ln2b'])


def transformer_encoder_forward(x, params, num_heads):
    """x: (batch, seq, input_dim) f32  ->  (batch, seq, embed_dim) f32."""
    B, S, Din = x.shape
    E = params['wp'].shape[1]
    h = pallas_linear(x.reshape(B * S, Din), params['wp'], params['bp'])
    h = h.reshape(B, S, E)
    # (permute to seq-first and back is a semantic no-op in this layout)
    for layer_p in params['layers']:
        h = pallas_encoder_layer(h, layer_p, num_heads)
    # self.dropout: identity in eval mode.
    # TODO(synk): training-mode (stochastic) dropout not implemented.
    return h


# ----------------------------------------------------------------------------
# Deterministic parameter construction (synthetic init, no checkpoint)
# ----------------------------------------------------------------------------

def init_params(key, input_dim, embed_dim, num_heads, num_layers, ffn_dim=2048):
    def u(key, shape, bound):
        return jax.random.uniform(key, shape, jnp.float32, -bound, bound)

    E, F = embed_dim, ffn_dim
    assert E % num_heads == 0
    dh = E // num_heads
    # Fold 1/sqrt(Dh) into the Q columns of the in-projection.
    col_scale = jnp.concatenate(
        [jnp.full((E,), 1.0 / math.sqrt(dh), jnp.float32),
         jnp.ones((2 * E,), jnp.float32)])

    keys = jax.random.split(key, 2 + num_layers)
    params = {
        # input_proj: torch Linear(input_dim, embed_dim); stored (in, out)
        'wp': u(keys[0], (input_dim, E), 1.0 / input_dim ** 0.5).astype(jnp.bfloat16),
        'bp': u(keys[1], (1, E), 1.0 / input_dim ** 0.5),
        'layers': [],
    }
    for li in range(num_layers):
        lk = jax.random.split(keys[2 + li], 8)
        layer = {
            # MHA in_proj (E,3E) and out_proj (E,E), stored (in, out), bf16
            'wqkv': (u(lk[0], (E, 3 * E), 1.0 / E ** 0.5) * col_scale
                     ).astype(jnp.bfloat16),
            'bqkv': u(lk[1], (1, 3 * E), 1.0 / E ** 0.5) * col_scale,
            'wo':   u(lk[2], (E, E), 1.0 / E ** 0.5).astype(jnp.bfloat16),
            'bo':   u(lk[3], (1, E), 1.0 / E ** 0.5),
            'ln1w': jnp.ones((1, E), jnp.float32),
            'ln1b': jnp.zeros((1, E), jnp.float32),
            # feed-forward: linear1 (E->F), linear2 (F->E), stored (in, out), bf16
            'w1':   u(lk[4], (E, F), 1.0 / E ** 0.5).astype(jnp.bfloat16),
            'b1':   u(lk[5], (1, F), 1.0 / E ** 0.5),
            'w2':   u(lk[6], (F, E), 1.0 / F ** 0.5).astype(jnp.bfloat16),
            'b2':   u(lk[7], (1, E), 1.0 / F ** 0.5),
            'ln2w': jnp.ones((1, E), jnp.float32),
            'ln2b': jnp.zeros((1, E), jnp.float32),
        }
        params['layers'].append(layer)
    return params


# ----------------------------------------------------------------------------

if __name__ == "__main__":
    batch, seq = 2, 8
    input_dim, embed_dim, num_heads, num_layers = 16, 32, 4, 2

    key = jax.random.PRNGKey(0)
    k_x, k_p = jax.random.split(key)
    x = jax.random.normal(k_x, (batch, seq, input_dim), jnp.float32)
    params = init_params(k_p, input_dim, embed_dim, num_heads, num_layers)

    fwd = jax.jit(functools.partial(transformer_encoder_forward,
                                    num_heads=num_heads))
    out = jax.block_until_ready(fwd(x, params))
    assert out.shape == (batch, seq, embed_dim), out.shape
    assert bool(jnp.all(jnp.isfinite(out)))
    print("KERNEL_OK")
</pallas_src>

<mosaic_0001>
module attributes {stable_mosaic.version = 11 : i64} {
  func.func @_linear_kernel(%arg0: i32, %arg1: memref<8x16xf32, #tpu.memory_space<vmem>>, %arg2: memref<16x32xbf16, #tpu.memory_space<vmem>>, %arg3: memref<1x32xf32, #tpu.memory_space<vmem>>, %arg4: memref<8x32xf32, #tpu.memory_space<vmem>>) attributes {dimension_semantics = [#tpu.dimension_semantics<parallel>], iteration_bounds = array<i64: 2>, scalar_prefetch = 0 : i64, scratch_operands = 0 : i64, tpu.core_type = #tpu.core_type<tc>, window_params = [{transform_indices = @transform_0, window_bounds = array<i64: 8, 16>}, {pipeline_mode = #tpu.pipeline_mode<synchronous>, transform_indices = @transform_1, window_bounds = array<i64: 16, 32>}, {pipeline_mode = #tpu.pipeline_mode<synchronous>, transform_indices = @transform_2, window_bounds = array<i64: 1, 32>}, {transform_indices = @transform_3, window_bounds = array<i64: 8, 32>}]} {
    %c0 = arith.constant 0 : index
    %c0_0 = arith.constant 0 : index
    %0 = vector.load %arg1[%c0, %c0_0] : memref<8x16xf32, #tpu.memory_space<vmem>>, vector<8x16xf32>
    %1 = arith.truncf %0 : vector<8x16xf32> to vector<8x16xbf16>
    %c0_1 = arith.constant 0 : index
    %c0_2 = arith.constant 0 : index
    %2 = vector.load %arg2[%c0_1, %c0_2] : memref<16x32xbf16, #tpu.memory_space<vmem>>, vector<16x32xbf16>
    %cst = arith.constant dense<0.000000e+00> : vector<8x32xf32>
    %3 = tpu.matmul %1, %2, %cst {dimension_numbers = #tpu.dot_dimension_numbers<[1], [0], [0], [1], [0, 0, 1, 1], [], []>} : vector<8x16xbf16>, vector<16x32xbf16>, vector<8x32xf32> -> vector<8x32xf32>
    %c0_3 = arith.constant 0 : index
    %c0_4 = arith.constant 0 : index
    %4 = vector.load %arg3[%c0_3, %c0_4] : memref<1x32xf32, #tpu.memory_space<vmem>>, vector<1x32xf32>
    %5 = vector.broadcast %4 : vector<1x32xf32> to vector<8x32xf32>
    %6 = arith.addf %3, %5 : vector<8x32xf32>
    %c0_5 = arith.constant 0 : index
    %c0_6 = arith.constant 0 : index
    %7 = vector.load %arg4[%c0_5, %c0_6] : memref<8x32xf32, #tpu.memory_space<vmem>>, vector<8x32xf32>
    tpu.vector_store %arg4[%c0_5, %c0_6], %6 {strides = array<i32>} : memref<8x32xf32, #tpu.memory_space<vmem>>, vector<8x32xf32>,
    return
  }
  func.func @transform_0(%arg0: i32) -> (i32, i32) {
    %c0_i32 = arith.constant 0 : i32
    %c0_i32_0 = arith.constant 0 : i32
    return %arg0, %c0_i32 : i32, i32
  }
  func.func @transform_1(%arg0: i32) -> (i32, i32) {
    %c0_i32 = arith.constant 0 : i32
    %c0_i32_0 = arith.constant 0 : i32
    %c0_i32_1 = arith.constant 0 : i32
    return %c0_i32, %c0_i32_0 : i32, i32
  }
  func.func @transform_2(%arg0: i32) -> (i32, i32) {
    %c0_i32 = arith.constant 0 : i32
    %c0_i32_0 = arith.constant 0 : i32
    %c0_i32_1 = arith.constant 0 : i32
    return %c0_i32, %c0_i32_0 : i32, i32
  }
  func.func @transform_3(%arg0: i32) -> (i32, i32) {
    %c0_i32 = arith.constant 0 : i32
    %c0_i32_0 = arith.constant 0 : i32
    return %arg0, %c0_i32 : i32, i32
  }
}

module attributes {stable_mosaic.version = 11 : i64} {
  func.func @_encoder_layer_kernel(%arg0: i32, %arg1: memref<1x8x32xf32, #tpu.memory_space<vmem>>, %arg2: memref<32x96xbf16, #tpu.memory_space<vmem>>, %arg3: memref<1x96xf32, #tpu.memory_space<vmem>>, %arg4: memref<32x32xbf16, #tpu.memory_space<vmem>>, %arg5: memref<1x32xf32, #tpu.memory_space<vmem>>, %arg6: memref<1x32xf32, #tpu.memory_space<vmem>>, %arg7: memref<1x32xf32, #tpu.memory_space<vmem>>, %arg8: memref<32x2048xbf16, #tpu.memory_space<vmem>>, %arg9: memref<1x2048xf32, #tpu.memory_space<vmem>>, %arg10: memref<2048x32xbf16, #tpu.memory_space<vmem>>, %arg11: memref<1x32xf32, #tpu.memory_space<vmem>>, %arg12: memref<1x32xf32, #tpu.memory_space<vmem>>, %arg13: memref<1x32xf32, #tpu.memory_space<vmem>>, %arg14: memref<1x8x32xf32, #tpu.memory_space<vmem>>) attributes {dimension_semantics = [#tpu.dimension_semantics<parallel>], iteration_bounds = array<i64: 2>, scalar_prefetch = 0 : i64, scratch_operands = 0 : i64, tpu.core_type = #tpu.core_type<tc>, window_params = [{transform_indices = @transform_0, window_bounds = array<i64: 1, 8, 32>}, {pipeline_mode = #tpu.pipeline_mode<synchronous>, transform_indices = @transform_1, window_bounds = array<i64: 32, 96>}, {pipeline_mode = #tpu.pipeline_mode<synchronous>, transform_indices = @transform_2, window_bounds = array<i64: 1, 96>}, {pipeline_mode = #tpu.pipeline_mode<synchronous>, transform_indices = @transform_3, window_bounds = array<i64: 32, 32>}, {pipeline_mode = #tpu.pipeline_mode<synchronous>, transform_indices = @transform_4, window_bounds = array<i64: 1, 32>}, {pipeline_mode = #tpu.pipeline_mode<synchronous>, transform_indices = @transform_5, window_bounds = array<i64: 1, 32>}, {pipeline_mode = #tpu.pipeline_mode<synchronous>, transform_indices = @transform_6, window_bounds = array<i64: 1, 32>}, {pipeline_mode = #tpu.pipeline_mode<synchronous>, transform_indices = @transform_7, window_bounds = array<i64: 32, 2048>}, {pipeline_mode = #tpu.pipeline_mode<synchronous>, transform_indices = @transform_8, window_bounds = array<i64: 1, 2048>}, {pipeline_mode = #tpu.pipeline_mode<synchronous>, transform_indices = @transform_9, window_bounds = array<i64: 2048, 32>}, {pipeline_mode = #tpu.pipeline_mode<synchronous>, transform_indices = @transform_10, window_bounds = array<i64: 1, 32>}, {pipeline_mode = #tpu.pipeline_mode<synchronous>, transform_indices = @transform_11, window_bounds = array<i64: 1, 32>}, {pipeline_mode = #tpu.pipeline_mode<synchronous>, transform_indices = @transform_12, window_bounds = array<i64: 1, 32>}, {transform_indices = @transform_13, window_bounds = array<i64: 1, 8, 32>}]} {
    %c0 = arith.constant 0 : index
    %c0_0 = arith.constant 0 : index
    %c0_1 = arith.constant 0 : index
    %0 = vector.load %arg1[%c0, %c0_0, %c0_1] : memref<1x8x32xf32, #tpu.memory_space<vmem>>, vector<1x8x32xf32>
    %1 = vector.shape_cast %0 : vector<1x8x32xf32> to vector<8x32xf32>
    %2 = arith.truncf %1 : vector<8x32xf32> to vector<8x32xbf16>
    %c0_2 = arith.constant 0 : index
    %c0_3 = arith.constant 0 : index
    %3 = vector.load %arg2[%c0_2, %c0_3] : memref<32x96xbf16, #tpu.memory_space<vmem>>, vector<32x96xbf16>
    %cst = arith.constant dense<0.000000e+00> : vector<8x96xf32>
    %4 = tpu.matmul %2, %3, %cst {dimension_numbers = #tpu.dot_dimension_numbers<[1], [0], [0], [1], [0, 0, 1, 1], [], []>} : vector<8x32xbf16>, vector<32x96xbf16>, vector<8x96xf32> -> vector<8x96xf32>
    %c0_4 = arith.constant 0 : index
    %c0_5 = arith.constant 0 : index
    %5 = vector.load %arg3[%c0_4, %c0_5] : memref<1x96xf32, #tpu.memory_space<vmem>>, vector<1x96xf32>
    %6 = vector.broadcast %5 : vector<1x96xf32> to vector<8x96xf32>
    %7 = arith.addf %4, %6 : vector<8x96xf32>
    %8 = vector.extract_strided_slice %7 {offsets = [0, 0], sizes = [8, 32], strides = [1, 1]} : vector<8x96xf32> to vector<8x32xf32>
    %9 = vector.shape_cast %8 : vector<8x32xf32> to vector<1x8x32xf32>
    %10 = vector.extract_strided_slice %7 {offsets = [0, 32], sizes = [8, 32], strides = [1, 1]} : vector<8x96xf32> to vector<8x32xf32>
    %11 = vector.shape_cast %10 : vector<8x32xf32> to vector<1x8x32xf32>
    %12 = vector.extract_strided_slice %7 {offsets = [0, 64], sizes = [8, 32], strides = [1, 1]} : vector<8x96xf32> to vector<8x32xf32>
    %13 = vector.shape_cast %12 : vector<8x32xf32> to vector<1x8x32xf32>
    %c0_6 = arith.constant 0 : index
    %c0_7 = arith.constant 0 : index
    %14 = vector.load %arg4[%c0_6, %c0_7] : memref<32x32xbf16, #tpu.memory_space<vmem>>, vector<32x32xbf16>
    %cst_8 = arith.constant 0.000000e+00 : f32
    %15 = vector.broadcast %cst_8 : f32 to vector<8x32xf32>
    %16 = vector.extract_strided_slice %9 {offsets = [0, 0, 0], sizes = [1, 8, 8], strides = [1, 1, 1]} : vector<1x8x32xf32> to vector<1x8x8xf32>
    %17 = arith.truncf %16 : vector<1x8x8xf32> to vector<1x8x8xbf16>
    %18 = vector.extract_strided_slice %11 {offsets = [0, 0, 0], sizes = [1, 8, 8], strides = [1, 1, 1]} : vector<1x8x32xf32> to vector<1x8x8xf32>
    %19 = arith.truncf %18 : vector<1x8x8xf32> to vector<1x8x8xbf16>
    %20 = vector.extract_strided_slice %13 {offsets = [0, 0, 0], sizes = [1, 8, 8], strides = [1, 1, 1]} : vector<1x8x32xf32> to vector<1x8x8xf32>
    %21 = arith.truncf %20 : vector<1x8x8xf32> to vector<1x8x8xbf16>
    "tpu.trace_start"() <{level = 10 : i32, message = "bqd,bkd->bqk"}> : () -> ()
    %cst_9 = arith.constant dense<0.000000e+00> : vector<1x8x8xf32>
    %22 = tpu.matmul %17, %19, %cst_9 {dimension_numbers = #tpu.dot_dimension_numbers<[2], [2], [1], [1], [0, 0, 0, 1, 1, 1], [0], [0]>} : vector<1x8x8xbf16>, vector<1x8x8xbf16>, vector<1x8x8xf32> -> vector<1x8x8xf32>
    "tpu.trace_stop"() : () -> ()
    %cst_10 = arith.constant dense<0xFF800000> : vector<1x8xf32>
    %23 = vector.multi_reduction <maximumf>, %22, %cst_10 [2] : vector<1x8x8xf32> to vector<1x8xf32>
    %24 = vector.shape_cast %23 : vector<1x8xf32> to vector<1x8x1xf32>
    %25 = vector.broadcast %24 : vector<1x8x1xf32> to vector<1x8x8xf32>
    %26 = arith.subf %22, %25 : vector<1x8x8xf32>
    %27 = math.exp %26 : vector<1x8x8xf32>
    %cst_11 = arith.constant dense<0.000000e+00> : vector<1x8xf32>
    %28 = vector.multi_reduction <add>, %27, %cst_11 [2] : vector<1x8x8xf32> to vector<1x8xf32>
    %29 = vector.shape_cast %28 : vector<1x8xf32> to vector<1x8x1xf32>
    %30 = tpu.reciprocal %29 {approx = true} : vector<1x8x1xf32> -> vector<1x8x1xf32>
    %31 = vector.broadcast %30 : vector<1x8x1xf32> to vector<1x8x8xf32>
    %32 = arith.mulf %27, %31 : vector<1x8x8xf32>
    %33 = arith.truncf %32 : vector<1x8x8xf32> to vector<1x8x8xbf16>
    "tpu.trace_start"() <{level = 10 : i32, message = "bqk,bkd->bqd"}> : () -> ()
    %cst_12 = arith.constant dense<0.000000e+00> : vector<1x8x8xf32>
    %34 = tpu.matmul %33, %21, %cst_12 {dimension_numbers = #tpu.dot_dimension_numbers<[2], [1], [1], [2], [0, 0, 0, 1, 1, 2], [0], [0]>} : vector<1x8x8xbf16>, vector<1x8x8xbf16>, vector<1x8x8xf32> -> vector<1x8x8xf32>
    "tpu.trace_stop"() : () -> ()
    %35 = vector.shape_cast %34 : vector<1x8x8xf32> to vector<8x8xf32>
    %36 = arith.truncf %35 : vector<8x8xf32> to vector<8x8xbf16>
    %37 = vector.extract_strided_slice %14 {offsets = [0, 0], sizes = [8, 32], strides = [1, 1]} : vector<32x32xbf16> to vector<8x32xbf16>
    %cst_13 = arith.constant dense<0.000000e+00> : vector<8x32xf32>
    %38 = tpu.matmul %36, %37, %cst_13 {dimension_numbers = #tpu.dot_dimension_numbers<[1], [0], [0], [1], [0, 0, 1, 1], [], []>} : vector<8x8xbf16>, vector<8x32xbf16>, vector<8x32xf32> -> vector<8x32xf32>
    %39 = arith.addf %15, %38 : vector<8x32xf32>
    %40 = vector.extract_strided_slice %9 {offsets = [0, 0, 8], sizes = [1, 8, 8], strides = [1, 1, 1]} : vector<1x8x32xf32> to vector<1x8x8xf32>
    %41 = arith.truncf %40 : vector<1x8x8xf32> to vector<1x8x8xbf16>
    %42 = vector.extract_strided_slice %11 {offsets = [0, 0, 8], sizes = [1, 8, 8], strides = [1, 1, 1]} : vector<1x8x32xf32> to vector<1x8x8xf32>
    %43 = arith.truncf %42 : vector<1x8x8xf32> to vector<1x8x8xbf16>
    %44 = vector.extract_strided_slice %13 {offsets = [0, 0, 8], sizes = [1, 8, 8], strides = [1, 1, 1]} : vector<1x8x32xf32> to vector<1x8x8xf32>
    %45 = arith.truncf %44 : vector<1x8x8xf32> to vector<1x8x8xbf16>
    "tpu.trace_start"() <{level = 10 : i32, message = "bqd,bkd->bqk"}> : () -> ()
    %cst_14 = arith.constant dense<0.000000e+00> : vector<1x8x8xf32>
    %46 = tpu.matmul %41, %43, %cst_14 {dimension_numbers = #tpu.dot_dimension_numbers<[2], [2], [1], [1], [0, 0, 0, 1, 1, 1], [0], [0]>} : vector<1x8x8xbf16>, vector<1x8x8xbf16>, vector<1x8x8xf32> -> vector<1x8x8xf32>
    "tpu.trace_stop"() : () -> ()
    %cst_15 = arith.constant dense<0xFF800000> : vector<1x8xf32>
    %47 = vector.multi_reduction <maximumf>, %46, %cst_15 [2] : vector<1x8x8xf32> to vector<1x8xf32>
    %48 = vector.shape_cast %47 : vector<1x8xf32> to vector<1x8x1xf32>
    %49 = vector.broadcast %48 : vector<1x8x1xf32> to vector<1x8x8xf32>
    %50 = arith.subf %46, %49 : vector<1x8x8xf32>
    %51 = math.exp %50 : vector<1x8x8xf32>
    %cst_16 = arith.constant dense<0.000000e+00> : vector<1x8xf32>
    %52 = vector.multi_reduction <add>, %51, %cst_16 [2] : vector<1x8x8xf32> to vector<1x8xf32>
    %53 = vector.shape_cast %52 : vector<1x8xf32> to vector<1x8x1xf32>
    %54 = tpu.reciprocal %53 {approx = true} : vector<1x8x1xf32> -> vector<1x8x1xf32>
    %55 = vector.broadcast %54 : vector<1x8x1xf32> to vector<1x8x8xf32>
    %56 = arith.mulf %51, %55 : vector<1x8x8xf32>
    %57 = arith.truncf %56 : vector<1x8x8xf32> to vector<1x8x8xbf16>
    "tpu.trace_start"() <{level = 10 : i32, message = "bqk,bkd->bqd"}> : () -> ()
    %cst_17 = arith.constant dense<0.000000e+00> : vector<1x8x8xf32>
    %58 = tpu.matmul %57, %45, %cst_17 {dimension_numbers = #tpu.dot_dimension_numbers<[2], [1], [1], [2], [0, 0, 0, 1, 1, 2], [0], [0]>} : vector<1x8x8xbf16>, vector<1x8x8xbf16>, vector<1x8x8xf32> -> vector<1x8x8xf32>
    "tpu.trace_stop"() : () -> ()
    %59 = vector.shape_cast %58 : vector<1x8x8xf32> to vector<8x8xf32>
    %60 = arith.truncf %59 : vector<8x8xf32> to vector<8x8xbf16>
    %61 = vector.extract_strided_slice %14 {offsets = [8, 0], sizes = [8, 32], strides = [1, 1]} : vector<32x32xbf16> to vector<8x32xbf16>
    %cst_18 = arith.constant dense<0.000000e+00> : vector<8x32xf32>
    %62 = tpu.matmul %60, %61, %cst_18 {dimension_numbers = #tpu.dot_dimension_numbers<[1], [0], [0], [1], [0, 0, 1, 1], [], []>} : vector<8x8xbf16>, vector<8x32xbf16>, vector<8x32xf32> -> vector<8x32xf32>
    %63 = arith.addf %39, %62 : vector<8x32xf32>
    %64 = vector.extract_strided_slice %9 {offsets = [0, 0, 16], sizes = [1, 8, 8], strides = [1, 1, 1]} : vector<1x8x32xf32> to vector<1x8x8xf32>
    %65 = arith.truncf %64 : vector<1x8x8xf32> to vector<1x8x8xbf16>
    %66 = vector.extract_strided_slice %11 {offsets = [0, 0, 16], sizes = [1, 8, 8], strides = [1, 1, 1]} : vector<1x8x32xf32> to vector<1x8x8xf32>
    %67 = arith.truncf %66 : vector<1x8x8xf32> to vector<1x8x8xbf16>
    %68 = vector.extract_strided_slice %13 {offsets = [0, 0, 16], sizes = [1, 8, 8], strides = [1, 1, 1]} : vector<1x8x32xf32> to vector<1x8x8xf32>
    %69 = arith.truncf %68 : vector<1x8x8xf32> to vector<1x8x8xbf16>
    "tpu.trace_start"() <{level = 10 : i32, message = "bqd,bkd->bqk"}> : () -> ()
    %cst_19 = arith.constant dense<0.000000e+00> : vector<1x8x8xf32>
    %70 = tpu.matmul %65, %67, %cst_19 {dimension_numbers = #tpu.dot_dimension_numbers<[2], [2], [1], [1], [0, 0, 0, 1, 1, 1], [0], [0]>} : vector<1x8x8xbf16>, vector<1x8x8xbf16>, vector<1x8x8xf32> -> vector<1x8x8xf32>
    "tpu.trace_stop"() : () -> ()
    %cst_20 = arith.constant dense<0xFF800000> : vector<1x8xf32>
    %71 = vector.multi_reduction <maximumf>, %70, %cst_20 [2] : vector<1x8x8xf32> to vector<1x8xf32>
    %72 = vector.shape_cast %71 : vector<1x8xf32> to vector<1x8x1xf32>
    %73 = vector.broadcast %72 : vector<1x8x1xf32> to vector<1x8x8xf32>
    %74 = arith.subf %70, %73 : vector<1x8x8xf32>
    %75 = math.exp %74 : vector<1x8x8xf32>
    %cst_21 = arith.constant dense<0.000000e+00> : vector<1x8xf32>
    %76 = vector.multi_reduction <add>, %75, %cst_21 [2] : vector<1x8x8xf32> to vector<1x8xf32>
    %77 = vector.shape_cast %76 : vector<1x8xf32> to vector<1x8x1xf32>
    %78 = tpu.reciprocal %77 {approx = true} : vector<1x8x1xf32> -> vector<1x8x1xf32>
    %79 = vector.broadcast %78 : vector<1x8x1xf32> to vector<1x8x8xf32>
    %80 = arith.mulf %75, %79 : vector<1x8x8xf32>
    %81 = arith.truncf %80 : vector<1x8x8xf32> to vector<1x8x8xbf16>
    "tpu.trace_start"() <{level = 10 : i32, message = "bqk,bkd->bqd"}> : () -> ()
    %cst_22 = arith.constant dense<0.000000e+00> : vector<1x8x8xf32>
    %82 = tpu.matmul %81, %69, %cst_22 {dimension_numbers = #tpu.dot_dimension_numbers<[2], [1], [1], [2], [0, 0, 0, 1, 1, 2], [0], [0]>} : vector<1x8x8xbf16>, vector<1x8x8xbf16>, vector<1x8x8xf32> -> vector<1x8x8xf32>
    "tpu.trace_stop"() : () -> ()
    %83 = vector.shape_cast %82 : vector<1x8x8xf32> to vector<8x8xf32>
    %84 = arith.truncf %83 : vector<8x8xf32> to vector<8x8xbf16>
    %85 = vector.extract_strided_slice %14 {offsets = [16, 0], sizes = [8, 32], strides = [1, 1]} : vector<32x32xbf16> to vector<8x32xbf16>
    %cst_23 = arith.constant dense<0.000000e+00> : vector<8x32xf32>
    %86 = tpu.matmul %84, %85, %cst_23 {dimension_numbers = #tpu.dot_dimension_numbers<[1], [0], [0], [1], [0, 0, 1, 1], [], []>} : vector<8x8xbf16>, vector<8x32xbf16>, vector<8x32xf32> -> vector<8x32xf32>
    %87 = arith.addf %63, %86 : vector<8x32xf32>
    %88 = vector.extract_strided_slice %9 {offsets = [0, 0, 24], sizes = [1, 8, 8], strides = [1, 1, 1]} : vector<1x8x32xf32> to vector<1x8x8xf32>
    %89 = arith.truncf %88 : vector<1x8x8xf32> to vector<1x8x8xbf16>
    %90 = vector.extract_strided_slice %11 {offsets = [0, 0, 24], sizes = [1, 8, 8], strides = [1, 1, 1]} : vector<1x8x32xf32> to vector<1x8x8xf32>
    %91 = arith.truncf %90 : vector<1x8x8xf32> to vector<1x8x8xbf16>
    %92 = vector.extract_strided_slice %13 {offsets = [0, 0, 24], sizes = [1, 8, 8], strides = [1, 1, 1]} : vector<1x8x32xf32> to vector<1x8x8xf32>
    %93 = arith.truncf %92 : vector<1x8x8xf32> to vector<1x8x8xbf16>
    "tpu.trace_start"() <{level = 10 : i32, message = "bqd,bkd->bqk"}> : () -> ()
    %cst_24 = arith.constant dense<0.000000e+00> : vector<1x8x8xf32>
    %94 = tpu.matmul %89, %91, %cst_24 {dimension_numbers = #tpu.dot_dimension_numbers<[2], [2], [1], [1], [0, 0, 0, 1, 1, 1], [0], [0]>} : vector<1x8x8xbf16>, vector<1x8x8xbf16>, vector<1x8x8xf32> -> vector<1x8x8xf32>
    "tpu.trace_stop"() : () -> ()
    %cst_25 = arith.constant dense<0xFF800000> : vector<1x8xf32>
    %95 = vector.multi_reduction <maximumf>, %94, %cst_25 [2] : vector<1x8x8xf32> to vector<1x8xf32>
    %96 = vector.shape_cast %95 : vector<1x8xf32> to vector<1x8x1xf32>
    %97 = vector.broadcast %96 : vector<1x8x1xf32> to vector<1x8x8xf32>
    %98 = arith.subf %94, %97 : vector<1x8x8xf32>
    %99 = math.exp %98 : vector<1x8x8xf32>
    %cst_26 = arith.constant dense<0.000000e+00> : vector<1x8xf32>
    %100 = vector.multi_reduction <add>, %99, %cst_26 [2] : vector<1x8x8xf32> to vector<1x8xf32>
    %101 = vector.shape_cast %100 : vector<1x8xf32> to vector<1x8x1xf32>
    %102 = tpu.reciprocal %101 {approx = true} : vector<1x8x1xf32> -> vector<1x8x1xf32>
    %103 = vector.broadcast %102 : vector<1x8x1xf32> to vector<1x8x8xf32>
    %104 = arith.mulf %99, %103 : vector<1x8x8xf32>
    %105 = arith.truncf %104 : vector<1x8x8xf32> to vector<1x8x8xbf16>
    "tpu.trace_start"() <{level = 10 : i32, message = "bqk,bkd->bqd"}> : () -> ()
    %cst_27 = arith.constant dense<0.000000e+00> : vector<1x8x8xf32>
    %106 = tpu.matmul %105, %93, %cst_27 {dimension_numbers = #tpu.dot_dimension_numbers<[2], [1], [1], [2], [0, 0, 0, 1, 1, 2], [0], [0]>} : vector<1x8x8xbf16>, vector<1x8x8xbf16>, vector<1x8x8xf32> -> vector<1x8x8xf32>
    "tpu.trace_stop"() : () -> ()
    %107 = vector.shape_cast %106 : vector<1x8x8xf32> to vector<8x8xf32>
    %108 = arith.truncf %107 : vector<8x8xf32> to vector<8x8xbf16>
    %109 = vector.extract_strided_slice %14 {offsets = [24, 0], sizes = [8, 32], strides = [1, 1]} : vector<32x32xbf16> to vector<8x32xbf16>
    %cst_28 = arith.constant dense<0.000000e+00> : vector<8x32xf32>
    %110 = tpu.matmul %108, %109, %cst_28 {dimension_numbers = #tpu.dot_dimension_numbers<[1], [0], [0], [1], [0, 0, 1, 1], [], []>} : vector<8x8xbf16>, vector<8x32xbf16>, vector<8x32xf32> -> vector<8x32xf32>
    %111 = arith.addf %87, %110 : vector<8x32xf32>
    %c0_29 = arith.constant 0 : index
    %c0_30 = arith.constant 0 : index
    %112 = vector.load %arg5[%c0_29, %c0_30] : memref<1x32xf32, #tpu.memory_space<vmem>>, vector<1x32xf32>
    %113 = vector.broadcast %112 : vector<1x32xf32> to vector<8x32xf32>
    %114 = arith.addf %111, %113 : vector<8x32xf32>
    %115 = arith.addf %1, %114 : vector<8x32xf32>
    %c0_31 = arith.constant 0 : index
    %c0_32 = arith.constant 0 : index
    %116 = vector.load %arg6[%c0_31, %c0_32] : memref<1x32xf32, #tpu.memory_space<vmem>>, vector<1x32xf32>
    %c0_33 = arith.constant 0 : index
    %c0_34 = arith.constant 0 : index
    %117 = vector.load %arg7[%c0_33, %c0_34] : memref<1x32xf32, #tpu.memory_space<vmem>>, vector<1x32xf32>
    %cst_35 = arith.constant dense<0.000000e+00> : vector<8xf32>
    %118 = vector.multi_reduction <add>, %115, %cst_35 [1] : vector<8x32xf32> to vector<8xf32>
    %119 = vector.shape_cast %118 : vector<8xf32> to vector<8x1xf32>
    %cst_36 = arith.constant 3.200000e+01 : f32
    %120 = vector.broadcast %cst_36 : f32 to vector<8x1xf32>
    %121 = arith.divf %119, %120 : vector<8x1xf32>
    %122 = vector.broadcast %121 : vector<8x1xf32> to vector<8x32xf32>
    %123 = arith.subf %115, %122 : vector<8x32xf32>
    %124 = arith.mulf %123, %123 : vector<8x32xf32>
    %cst_37 = arith.constant dense<0.000000e+00> : vector<8xf32>
    %125 = vector.multi_reduction <add>, %124, %cst_37 [1] : vector<8x32xf32> to vector<8xf32>
    %126 = vector.shape_cast %125 : vector<8xf32> to vector<8x1xf32>
    %cst_38 = arith.constant 3.200000e+01 : f32
    %127 = vector.broadcast %cst_38 : f32 to vector<8x1xf32>
    %128 = arith.divf %126, %127 : vector<8x1xf32>
    %cst_39 = arith.constant 9.99999974E-6 : f32
    %129 = vector.broadcast %cst_39 : f32 to vector<8x1xf32>
    %130 = arith.addf %128, %129 : vector<8x1xf32>
    %131 = math.rsqrt %130 : vector<8x1xf32>
    %132 = vector.broadcast %131 : vector<8x1xf32> to vector<8x32xf32>
    %133 = arith.mulf %123, %132 : vector<8x32xf32>
    %134 = vector.broadcast %116 : vector<1x32xf32> to vector<8x32xf32>
    %135 = arith.mulf %133, %134 : vector<8x32xf32>
    %136 = vector.broadcast %117 : vector<1x32xf32> to vector<8x32xf32>
    %137 = arith.addf %135, %136 : vector<8x32xf32>
    %138 = arith.truncf %137 : vector<8x32xf32> to vector<8x32xbf16>
    %cst_40 = arith.constant 0.000000e+00 : f32
    %139 = vector.broadcast %cst_40 : f32 to vector<8x32xf32>
    %c0_41 = arith.constant 0 : index
    %c0_42 = arith.constant 0 : index
    %140 = vector.load %arg8[%c0_41, %c0_42] : memref<32x2048xbf16, #tpu.memory_space<vmem>>, vector<32x1024xbf16>
    %cst_43 = arith.constant dense<0.000000e+00> : vector<8x1024xf32>
    %141 = tpu.matmul %138, %140, %cst_43 {dimension_numbers = #tpu.dot_dimension_numbers<[1], [0], [0], [1], [0, 0, 1, 1], [], []>} : vector<8x32xbf16>, vector<32x1024xbf16>, vector<8x1024xf32> -> vector<8x1024xf32>
    %c0_44 = arith.constant 0 : index
    %c0_45 = arith.constant 0 : index
    %142 = vector.load %arg9[%c0_44, %c0_45] : memref<1x2048xf32, #tpu.memory_space<vmem>>, vector<1x1024xf32>
    %143 = vector.broadcast %142 : vector<1x1024xf32> to vector<8x1024xf32>
    %144 = arith.addf %141, %143 : vector<8x1024xf32>
    %cst_46 = arith.constant 0.000000e+00 : f32
    %145 = vector.broadcast %cst_46 : f32 to vector<8x1024xf32>
    %146 = arith.maximumf %144, %145 : vector<8x1024xf32>
    %147 = arith.truncf %146 : vector<8x1024xf32> to vector<8x1024xbf16>
    %c0_47 = arith.constant 0 : index
    %c0_48 = arith.constant 0 : index
    %148 = vector.load %arg10[%c0_47, %c0_48] : memref<2048x32xbf16, #tpu.memory_space<vmem>>, vector<1024x32xbf16>
    %cst_49 = arith.constant dense<0.000000e+00> : vector<8x32xf32>
    %149 = tpu.matmul %147, %148, %cst_49 {dimension_numbers = #tpu.dot_dimension_numbers<[1], [0], [0], [1], [0, 0, 1, 1], [], []>} : vector<8x1024xbf16>, vector<1024x32xbf16>, vector<8x32xf32> -> vector<8x32xf32>
    %150 = arith.addf %139, %149 : vector<8x32xf32>
    %c0_50 = arith.constant 0 : index
    %c1024 = arith.constant 1024 : index
    %151 = vector.load %arg8[%c0_50, %c1024] : memref<32x2048xbf16, #tpu.memory_space<vmem>>, vector<32x1024xbf16>
    %cst_51 = arith.constant dense<0.000000e+00> : vector<8x1024xf32>
    %152 = tpu.matmul %138, %151, %cst_51 {dimension_numbers = #tpu.dot_dimension_numbers<[1], [0], [0], [1], [0, 0, 1, 1], [], []>} : vector<8x32xbf16>, vector<32x1024xbf16>, vector<8x1024xf32> -> vector<8x1024xf32>
    %c0_52 = arith.constant 0 : index
    %c1024_53 = arith.constant 1024 : index
    %153 = vector.load %arg9[%c0_52, %c1024_53] : memref<1x2048xf32, #tpu.memory_space<vmem>>, vector<1x1024xf32>
    %154 = vector.broadcast %153 : vector<1x1024xf32> to vector<8x1024xf32>
    %155 = arith.addf %152, %154 : vector<8x1024xf32>
    %cst_54 = arith.constant 0.000000e+00 : f32
    %156 = vector.broadcast %cst_54 : f32 to vector<8x1024xf32>
    %157 = arith.maximumf %155, %156 : vector<8x1024xf32>
    %158 = arith.truncf %157 : vector<8x1024xf32> to vector<8x1024xbf16>
    %c1024_55 = arith.constant 1024 : index
    %c0_56 = arith.constant 0 : index
    %159 = vector.load %arg10[%c1024_55, %c0_56] : memref<2048x32xbf16, #tpu.memory_space<vmem>>, vector<1024x32xbf16>
    %cst_57 = arith.constant dense<0.000000e+00> : vector<8x32xf32>
    %160 = tpu.matmul %158, %159, %cst_57 {dimension_numbers = #tpu.dot_dimension_numbers<[1], [0], [0], [1], [0, 0, 1, 1], [], []>} : vector<8x1024xbf16>, vector<1024x32xbf16>, vector<8x32xf32> -> vector<8x32xf32>
    %161 = arith.addf %150, %160 : vector<8x32xf32>
    %c0_58 = arith.constant 0 : index
    %c0_59 = arith.constant 0 : index
    %162 = vector.load %arg11[%c0_58, %c0_59] : memref<1x32xf32, #tpu.memory_space<vmem>>, vector<1x32xf32>
    %163 = vector.broadcast %162 : vector<1x32xf32> to vector<8x32xf32>
    %164 = arith.addf %161, %163 : vector<8x32xf32>
    %165 = arith.addf %137, %164 : vector<8x32xf32>
    %c0_60 = arith.constant 0 : index
    %c0_61 = arith.constant 0 : index
    %166 = vector.load %arg12[%c0_60, %c0_61] : memref<1x32xf32, #tpu.memory_space<vmem>>, vector<1x32xf32>
    %c0_62 = arith.constant 0 : index
    %c0_63 = arith.constant 0 : index
    %167 = vector.load %arg13[%c0_62, %c0_63] : memref<1x32xf32, #tpu.memory_space<vmem>>, vector<1x32xf32>
    %cst_64 = arith.constant dense<0.000000e+00> : vector<8xf32>
    %168 = vector.multi_reduction <add>, %165, %cst_64 [1] : vector<8x32xf32> to vector<8xf32>
    %169 = vector.shape_cast %168 : vector<8xf32> to vector<8x1xf32>
    %cst_65 = arith.constant 3.200000e+01 : f32
    %170 = vector.broadcast %cst_65 : f32 to vector<8x1xf32>
    %171 = arith.divf %169, %170 : vector<8x1xf32>
    %172 = vector.broadcast %171 : vector<8x1xf32> to vector<8x32xf32>
    %173 = arith.subf %165, %172 : vector<8x32xf32>
    %174 = arith.mulf %173, %173 : vector<8x32xf32>
    %cst_66 = arith.constant dense<0.000000e+00> : vector<8xf32>
    %175 = vector.multi_reduction <add>, %174, %cst_66 [1] : vector<8x32xf32> to vector<8xf32>
    %176 = vector.shape_cast %175 : vector<8xf32> to vector<8x1xf32>
    %cst_67 = arith.constant 3.200000e+01 : f32
    %177 = vector.broadcast %cst_67 : f32 to vector<8x1xf32>
    %178 = arith.divf %176, %177 : vector<8x1xf32>
    %cst_68 = arith.constant 9.99999974E-6 : f32
    %179 = vector.broadcast %cst_68 : f32 to vector<8x1xf32>
    %180 = arith.addf %178, %179 : vector<8x1xf32>
    %181 = math.rsqrt %180 : vector<8x1xf32>
    %182 = vector.broadcast %181 : vector<8x1xf32> to vector<8x32xf32>
    %183 = arith.mulf %173, %182 : vector<8x32xf32>
    %184 = vector.broadcast %166 : vector<1x32xf32> to vector<8x32xf32>
    %185 = arith.mulf %183, %184 : vector<8x32xf32>
    %186 = vector.broadcast %167 : vector<1x32xf32> to vector<8x32xf32>
    %187 = arith.addf %185, %186 : vector<8x32xf32>
    %188 = vector.shape_cast %187 : vector<8x32xf32> to vector<1x8x32xf32>
    %c0_69 = arith.constant 0 : index
    %c0_70 = arith.constant 0 : index
    %c0_71 = arith.constant 0 : index
    %189 = vector.load %arg14[%c0_69, %c0_70, %c0_71] : memref<1x8x32xf32, #tpu.memory_space<vmem>>, vector<1x8x32xf32>
    tpu.vector_store %arg14[%c0_69, %c0_70, %c0_71], %188 {strides = array<i32>} : memref<1x8x32xf32, #tpu.memory_space<vmem>>, vector<1x8x32xf32>,
    return
  }
  func.func @transform_0(%arg0: i32) -> (i32, i32, i32) {
    %c0_i32 = arith.constant 0 : i32
    %c0_i32_0 = arith.constant 0 : i32
    %c0_i32_1 = arith.constant 0 : i32
    return %arg0, %c0_i32, %c0_i32_0 : i32, i32, i32
  }
  func.func @transform_1(%arg0: i32) -> (i32, i32) {
    %c0_i32 = arith.constant 0 : i32
    %c0_i32_0 = arith.constant 0 : i32
    %c0_i32_1 = arith.constant 0 : i32
    return %c0_i32, %c0_i32_0 : i32, i32
  }
  func.func @transform_2(%arg0: i32) -> (i32, i32) {
    %c0_i32 = arith.constant 0 : i32
    %c0_i32_0 = arith.constant 0 : i32
    %c0_i32_1 = arith.constant 0 : i32
    return %c0_i32, %c0_i32_0 : i32, i32
  }
  func.func @transform_3(%arg0: i32) -> (i32, i32) {
    %c0_i32 = arith.constant 0 : i32
    %c0_i32_0 = arith.constant 0 : i32
    %c0_i32_1 = arith.constant 0 : i32
    return %c0_i32, %c0_i32_0 : i32, i32
  }
  func.func @transform_4(%arg0: i32) -> (i32, i32) {
    %c0_i32 = arith.constant 0 : i32
    %c0_i32_0 = arith.constant 0 : i32
    %c0_i32_1 = arith.constant 0 : i32
    return %c0_i32, %c0_i32_0 : i32, i32
  }
  func.func @transform_5(%arg0: i32) -> (i32, i32) {
    %c0_i32 = arith.constant 0 : i32
    %c0_i32_0 = arith.constant 0 : i32
    %c0_i32_1 = arith.constant 0 : i32
    return %c0_i32, %c0_i32_0 : i32, i32
  }
  func.func @transform_6(%arg0: i32) -> (i32, i32) {
    %c0_i32 = arith.constant 0 : i32
    %c0_i32_0 = arith.constant 0 : i32
    %c0_i32_1 = arith.constant 0 : i32
    return %c0_i32, %c0_i32_0 : i32, i32
  }
  func.func @transform_7(%arg0: i32) -> (i32, i32) {
    %c0_i32 = arith.constant 0 : i32
    %c0_i32_0 = arith.constant 0 : i32
    %c0_i32_1 = arith.constant 0 : i32
    return %c0_i32, %c0_i32_0 : i32, i32
  }
  func.func @transform_8(%arg0: i32) -> (i32, i32) {
    %c0_i32 = arith.constant 0 : i32
    %c0_i32_0 = arith.constant 0 : i32
    %c0_i32_1 = arith.constant 0 : i32
    return %c0_i32, %c0_i32_0 : i32, i32
  }
  func.func @transform_9(%arg0: i32) -> (i32, i32) {
    %c0_i32 = arith.constant 0 : i32
    %c0_i32_0 = arith.constant 0 : i32
    %c0_i32_1 = arith.constant 0 : i32
    return %c0_i32, %c0_i32_0 : i32, i32
  }
  func.func @transform_10(%arg0: i32) -> (i32, i32) {
    %c0_i32 = arith.constant 0 : i32
    %c0_i32_0 = arith.constant 0 : i32
    %c0_i32_1 = arith.constant 0 : i32
    return %c0_i32, %c0_i32_0 : i32, i32
  }
  func.func @transform_11(%arg0: i32) -> (i32, i32) {
    %c0_i32 = arith.constant 0 : i32
    %c0_i32_0 = arith.constant 0 : i32
    %c0_i32_1 = arith.constant 0 : i32
    return %c0_i32, %c0_i32_0 : i32, i32
  }
  func.func @transform_12(%arg0: i32) -> (i32, i32) {
    %c0_i32 = arith.constant 0 : i32
    %c0_i32_0 = arith.constant 0 : i32
    %c0_i32_1 = arith.constant 0 : i32
    return %c0_i32, %c0_i32_0 : i32, i32
  }
  func.func @transform_13(%arg0: i32) -> (i32, i32, i32) {
    %c0_i32 = arith.constant 0 : i32
    %c0_i32_0 = arith.constant 0 : i32
    %c0_i32_1 = arith.constant 0 : i32
    return %arg0, %c0_i32, %c0_i32_0 : i32, i32, i32
  }
}

module attributes {stable_mosaic.version = 11 : i64} {
  func.func @_encoder_layer_kernel(%arg0: i32, %arg1: memref<1x8x32xf32, #tpu.memory_space<vmem>>, %arg2: memref<32x96xbf16, #tpu.memory_space<vmem>>, %arg3: memref<1x96xf32, #tpu.memory_space<vmem>>, %arg4: memref<32x32xbf16, #tpu.memory_space<vmem>>, %arg5: memref<1x32xf32, #tpu.memory_space<vmem>>, %arg6: memref<1x32xf32, #tpu.memory_space<vmem>>, %arg7: memref<1x32xf32, #tpu.memory_space<vmem>>, %arg8: memref<32x2048xbf16, #tpu.memory_space<vmem>>, %arg9: memref<1x2048xf32, #tpu.memory_space<vmem>>, %arg10: memref<2048x32xbf16, #tpu.memory_space<vmem>>, %arg11: memref<1x32xf32, #tpu.memory_space<vmem>>, %arg12: memref<1x32xf32, #tpu.memory_space<vmem>>, %arg13: memref<1x32xf32, #tpu.memory_space<vmem>>, %arg14: memref<1x8x32xf32, #tpu.memory_space<vmem>>) attributes {dimension_semantics = [#tpu.dimension_semantics<parallel>], iteration_bounds = array<i64: 2>, scalar_prefetch = 0 : i64, scratch_operands = 0 : i64, tpu.core_type = #tpu.core_type<tc>, window_params = [{transform_indices = @transform_0, window_bounds = array<i64: 1, 8, 32>}, {pipeline_mode = #tpu.pipeline_mode<synchronous>, transform_indices = @transform_1, window_bounds = array<i64: 32, 96>}, {pipeline_mode = #tpu.pipeline_mode<synchronous>, transform_indices = @transform_2, window_bounds = array<i64: 1, 96>}, {pipeline_mode = #tpu.pipeline_mode<synchronous>, transform_indices = @transform_3, window_bounds = array<i64: 32, 32>}, {pipeline_mode = #tpu.pipeline_mode<synchronous>, transform_indices = @transform_4, window_bounds = array<i64: 1, 32>}, {pipeline_mode = #tpu.pipeline_mode<synchronous>, transform_indices = @transform_5, window_bounds = array<i64: 1, 32>}, {pipeline_mode = #tpu.pipeline_mode<synchronous>, transform_indices = @transform_6, window_bounds = array<i64: 1, 32>}, {pipeline_mode = #tpu.pipeline_mode<synchronous>, transform_indices = @transform_7, window_bounds = array<i64: 32, 2048>}, {pipeline_mode = #tpu.pipeline_mode<synchronous>, transform_indices = @transform_8, window_bounds = array<i64: 1, 2048>}, {pipeline_mode = #tpu.pipeline_mode<synchronous>, transform_indices = @transform_9, window_bounds = array<i64: 2048, 32>}, {pipeline_mode = #tpu.pipeline_mode<synchronous>, transform_indices = @transform_10, window_bounds = array<i64: 1, 32>}, {pipeline_mode = #tpu.pipeline_mode<synchronous>, transform_indices = @transform_11, window_bounds = array<i64: 1, 32>}, {pipeline_mode = #tpu.pipeline_mode<synchronous>, transform_indices = @transform_12, window_bounds = array<i64: 1, 32>}, {transform_indices = @transform_13, window_bounds = array<i64: 1, 8, 32>}]} {
    %c0 = arith.constant 0 : index
    %c0_0 = arith.constant 0 : index
    %c0_1 = arith.constant 0 : index
    %0 = vector.load %arg1[%c0, %c0_0, %c0_1] : memref<1x8x32xf32, #tpu.memory_space<vmem>>, vector<1x8x32xf32>
    %1 = vector.shape_cast %0 : vector<1x8x32xf32> to vector<8x32xf32>
    %2 = arith.truncf %1 : vector<8x32xf32> to vector<8x32xbf16>
    %c0_2 = arith.constant 0 : index
    %c0_3 = arith.constant 0 : index
    %3 = vector.load %arg2[%c0_2, %c0_3] : memref<32x96xbf16, #tpu.memory_space<vmem>>, vector<32x96xbf16>
    %cst = arith.constant dense<0.000000e+00> : vector<8x96xf32>
    %4 = tpu.matmul %2, %3, %cst {dimension_numbers = #tpu.dot_dimension_numbers<[1], [0], [0], [1], [0, 0, 1, 1], [], []>} : vector<8x32xbf16>, vector<32x96xbf16>, vector<8x96xf32> -> vector<8x96xf32>
    %c0_4 = arith.constant 0 : index
    %c0_5 = arith.constant 0 : index
    %5 = vector.load %arg3[%c0_4, %c0_5] : memref<1x96xf32, #tpu.memory_space<vmem>>, vector<1x96xf32>
    %6 = vector.broadcast %5 : vector<1x96xf32> to vector<8x96xf32>
    %7 = arith.addf %4, %6 : vector<8x96xf32>
    %8 = vector.extract_strided_slice %7 {offsets = [0, 0], sizes = [8, 32], strides = [1, 1]} : vector<8x96xf32> to vector<8x32xf32>
    %9 = vector.shape_cast %8 : vector<8x32xf32> to vector<1x8x32xf32>
    %10 = vector.extract_strided_slice %7 {offsets = [0, 32], sizes = [8, 32], strides = [1, 1]} : vector<8x96xf32> to vector<8x32xf32>
    %11 = vector.shape_cast %10 : vector<8x32xf32> to vector<1x8x32xf32>
    %12 = vector.extract_strided_slice %7 {offsets = [0, 64], sizes = [8, 32], strides = [1, 1]} : vector<8x96xf32> to vector<8x32xf32>
    %13 = vector.shape_cast %12 : vector<8x32xf32> to vector<1x8x32xf32>
    %c0_6 = arith.constant 0 : index
    %c0_7 = arith.constant 0 : index
    %14 = vector.load %arg4[%c0_6, %c0_7] : memref<32x32xbf16, #tpu.memory_space<vmem>>, vector<32x32xbf16>
    %cst_8 = arith.constant 0.000000e+00 : f32
    %15 = vector.broadcast %cst_8 : f32 to vector<8x32xf32>
    %16 = vector.extract_strided_slice %9 {offsets = [0, 0, 0], sizes = [1, 8, 8], strides = [1, 1, 1]} : vector<1x8x32xf32> to vector<1x8x8xf32>
    %17 = arith.truncf %16 : vector<1x8x8xf32> to vector<1x8x8xbf16>
    %18 = vector.extract_strided_slice %11 {offsets = [0, 0, 0], sizes = [1, 8, 8], strides = [1, 1, 1]} : vector<1x8x32xf32> to vector<1x8x8xf32>
    %19 = arith.truncf %18 : vector<1x8x8xf32> to vector<1x8x8xbf16>
    %20 = vector.extract_strided_slice %13 {offsets = [0, 0, 0], sizes = [1, 8, 8], strides = [1, 1, 1]} : vector<1x8x32xf32> to vector<1x8x8xf32>
    %21 = arith.truncf %20 : vector<1x8x8xf32> to vector<1x8x8xbf16>
    "tpu.trace_start"() <{level = 10 : i32, message = "bqd,bkd->bqk"}> : () -> ()
    %cst_9 = arith.constant dense<0.000000e+00> : vector<1x8x8xf32>
    %22 = tpu.matmul %17, %19, %cst_9 {dimension_numbers = #tpu.dot_dimension_numbers<[2], [2], [1], [1], [0, 0, 0, 1, 1, 1], [0], [0]>} : vector<1x8x8xbf16>, vector<1x8x8xbf16>, vector<1x8x8xf32> -> vector<1x8x8xf32>
    "tpu.trace_stop"() : () -> ()
    %cst_10 = arith.constant dense<0xFF800000> : vector<1x8xf32>
    %23 = vector.multi_reduction <maximumf>, %22, %cst_10 [2] : vector<1x8x8xf32> to vector<1x8xf32>
    %24 = vector.shape_cast %23 : vector<1x8xf32> to vector<1x8x1xf32>
    %25 = vector.broadcast %24 : vector<1x8x1xf32> to vector<1x8x8xf32>
    %26 = arith.subf %22, %25 : vector<1x8x8xf32>
    %27 = math.exp %26 : vector<1x8x8xf32>
    %cst_11 = arith.constant dense<0.000000e+00> : vector<1x8xf32>
    %28 = vector.multi_reduction <add>, %27, %cst_11 [2] : vector<1x8x8xf32> to vector<1x8xf32>
    %29 = vector.shape_cast %28 : vector<1x8xf32> to vector<1x8x1xf32>
    %30 = tpu.reciprocal %29 {approx = true} : vector<1x8x1xf32> -> vector<1x8x1xf32>
    %31 = vector.broadcast %30 : vector<1x8x1xf32> to vector<1x8x8xf32>
    %32 = arith.mulf %27, %31 : vector<1x8x8xf32>
    %33 = arith.truncf %32 : vector<1x8x8xf32> to vector<1x8x8xbf16>
    "tpu.trace_start"() <{level = 10 : i32, message = "bqk,bkd->bqd"}> : () -> ()
    %cst_12 = arith.constant dense<0.000000e+00> : vector<1x8x8xf32>
    %34 = tpu.matmul %33, %21, %cst_12 {dimension_numbers = #tpu.dot_dimension_numbers<[2], [1], [1], [2], [0, 0, 0, 1, 1, 2], [0], [0]>} : vector<1x8x8xbf16>, vector<1x8x8xbf16>, vector<1x8x8xf32> -> vector<1x8x8xf32>
    "tpu.trace_stop"() : () -> ()
    %35 = vector.shape_cast %34 : vector<1x8x8xf32> to vector<8x8xf32>
    %36 = arith.truncf %35 : vector<8x8xf32> to vector<8x8xbf16>
    %37 = vector.extract_strided_slice %14 {offsets = [0, 0], sizes = [8, 32], strides = [1, 1]} : vector<32x32xbf16> to vector<8x32xbf16>
    %cst_13 = arith.constant dense<0.000000e+00> : vector<8x32xf32>
    %38 = tpu.matmul %36, %37, %cst_13 {dimension_numbers = #tpu.dot_dimension_numbers<[1], [0], [0], [1], [0, 0, 1, 1], [], []>} : vector<8x8xbf16>, vector<8x32xbf16>, vector<8x32xf32> -> vector<8x32xf32>
    %39 = arith.addf %15, %38 : vector<8x32xf32>
    %40 = vector.extract_strided_slice %9 {offsets = [0, 0, 8], sizes = [1, 8, 8], strides = [1, 1, 1]} : vector<1x8x32xf32> to vector<1x8x8xf32>
    %41 = arith.truncf %40 : vector<1x8x8xf32> to vector<1x8x8xbf16>
    %42 = vector.extract_strided_slice %11 {offsets = [0, 0, 8], sizes = [1, 8, 8], strides = [1, 1, 1]} : vector<1x8x32xf32> to vector<1x8x8xf32>
    %43 = arith.truncf %42 : vector<1x8x8xf32> to vector<1x8x8xbf16>
    %44 = vector.extract_strided_slice %13 {offsets = [0, 0, 8], sizes = [1, 8, 8], strides = [1, 1, 1]} : vector<1x8x32xf32> to vector<1x8x8xf32>
    %45 = arith.truncf %44 : vector<1x8x8xf32> to vector<1x8x8xbf16>
    "tpu.trace_start"() <{level = 10 : i32, message = "bqd,bkd->bqk"}> : () -> ()
    %cst_14 = arith.constant dense<0.000000e+00> : vector<1x8x8xf32>
    %46 = tpu.matmul %41, %43, %cst_14 {dimension_numbers = #tpu.dot_dimension_numbers<[2], [2], [1], [1], [0, 0, 0, 1, 1, 1], [0], [0]>} : vector<1x8x8xbf16>, vector<1x8x8xbf16>, vector<1x8x8xf32> -> vector<1x8x8xf32>
    "tpu.trace_stop"() : () -> ()
    %cst_15 = arith.constant dense<0xFF800000> : vector<1x8xf32>
    %47 = vector.multi_reduction <maximumf>, %46, %cst_15 [2] : vector<1x8x8xf32> to vector<1x8xf32>
    %48 = vector.shape_cast %47 : vector<1x8xf32> to vector<1x8x1xf32>
    %49 = vector.broadcast %48 : vector<1x8x1xf32> to vector<1x8x8xf32>
    %50 = arith.subf %46, %49 : vector<1x8x8xf32>
    %51 = math.exp %50 : vector<1x8x8xf32>
    %cst_16 = arith.constant dense<0.000000e+00> : vector<1x8xf32>
    %52 = vector.multi_reduction <add>, %51, %cst_16 [2] : vector<1x8x8xf32> to vector<1x8xf32>
    %53 = vector.shape_cast %52 : vector<1x8xf32> to vector<1x8x1xf32>
    %54 = tpu.reciprocal %53 {approx = true} : vector<1x8x1xf32> -> vector<1x8x1xf32>
    %55 = vector.broadcast %54 : vector<1x8x1xf32> to vector<1x8x8xf32>
    %56 = arith.mulf %51, %55 : vector<1x8x8xf32>
    %57 = arith.truncf %56 : vector<1x8x8xf32> to vector<1x8x8xbf16>
    "tpu.trace_start"() <{level = 10 : i32, message = "bqk,bkd->bqd"}> : () -> ()
    %cst_17 = arith.constant dense<0.000000e+00> : vector<1x8x8xf32>
    %58 = tpu.matmul %57, %45, %cst_17 {dimension_numbers = #tpu.dot_dimension_numbers<[2], [1], [1], [2], [0, 0, 0, 1, 1, 2], [0], [0]>} : vector<1x8x8xbf16>, vector<1x8x8xbf16>, vector<1x8x8xf32> -> vector<1x8x8xf32>
    "tpu.trace_stop"() : () -> ()
    %59 = vector.shape_cast %58 : vector<1x8x8xf32> to vector<8x8xf32>
    %60 = arith.truncf %59 : vector<8x8xf32> to vector<8x8xbf16>
    %61 = vector.extract_strided_slice %14 {offsets = [8, 0], sizes = [8, 32], strides = [1, 1]} : vector<32x32xbf16> to vector<8x32xbf16>
    %cst_18 = arith.constant dense<0.000000e+00> : vector<8x32xf32>
    %62 = tpu.matmul %60, %61, %cst_18 {dimension_numbers = #tpu.dot_dimension_numbers<[1], [0], [0], [1], [0, 0, 1, 1], [], []>} : vector<8x8xbf16>, vector<8x32xbf16>, vector<8x32xf32> -> vector<8x32xf32>
    %63 = arith.addf %39, %62 : vector<8x32xf32>
    %64 = vector.extract_strided_slice %9 {offsets = [0, 0, 16], sizes = [1, 8, 8], strides = [1, 1, 1]} : vector<1x8x32xf32> to vector<1x8x8xf32>
    %65 = arith.truncf %64 : vector<1x8x8xf32> to vector<1x8x8xbf16>
    %66 = vector.extract_strided_slice %11 {offsets = [0, 0, 16], sizes = [1, 8, 8], strides = [1, 1, 1]} : vector<1x8x32xf32> to vector<1x8x8xf32>
    %67 = arith.truncf %66 : vector<1x8x8xf32> to vector<1x8x8xbf16>
    %68 = vector.extract_strided_slice %13 {offsets = [0, 0, 16], sizes = [1, 8, 8], strides = [1, 1, 1]} : vector<1x8x32xf32> to vector<1x8x8xf32>
    %69 = arith.truncf %68 : vector<1x8x8xf32> to vector<1x8x8xbf16>
    "tpu.trace_start"() <{level = 10 : i32, message = "bqd,bkd->bqk"}> : () -> ()
    %cst_19 = arith.constant dense<0.000000e+00> : vector<1x8x8xf32>
    %70 = tpu.matmul %65, %67, %cst_19 {dimension_numbers = #tpu.dot_dimension_numbers<[2], [2], [1], [1], [0, 0, 0, 1, 1, 1], [0], [0]>} : vector<1x8x8xbf16>, vector<1x8x8xbf16>, vector<1x8x8xf32> -> vector<1x8x8xf32>
    "tpu.trace_stop"() : () -> ()
    %cst_20 = arith.constant dense<0xFF800000> : vector<1x8xf32>
    %71 = vector.multi_reduction <maximumf>, %70, %cst_20 [2] : vector<1x8x8xf32> to vector<1x8xf32>
    %72 = vector.shape_cast %71 : vector<1x8xf32> to vector<1x8x1xf32>
    %73 = vector.broadcast %72 : vector<1x8x1xf32> to vector<1x8x8xf32>
    %74 = arith.subf %70, %73 : vector<1x8x8xf32>
    %75 = math.exp %74 : vector<1x8x8xf32>
    %cst_21 = arith.constant dense<0.000000e+00> : vector<1x8xf32>
    %76 = vector.multi_reduction <add>, %75, %cst_21 [2] : vector<1x8x8xf32> to vector<1x8xf32>
    %77 = vector.shape_cast %76 : vector<1x8xf32> to vector<1x8x1xf32>
    %78 = tpu.reciprocal %77 {approx = true} : vector<1x8x1xf32> -> vector<1x8x1xf32>
    %79 = vector.broadcast %78 : vector<1x8x1xf32> to vector<1x8x8xf32>
    %80 = arith.mulf %75, %79 : vector<1x8x8xf32>
    %81 = arith.truncf %80 : vector<1x8x8xf32> to vector<1x8x8xbf16>
    "tpu.trace_start"() <{level = 10 : i32, message = "bqk,bkd->bqd"}> : () -> ()
    %cst_22 = arith.constant dense<0.000000e+00> : vector<1x8x8xf32>
    %82 = tpu.matmul %81, %69, %cst_22 {dimension_numbers = #tpu.dot_dimension_numbers<[2], [1], [1], [2], [0, 0, 0, 1, 1, 2], [0], [0]>} : vector<1x8x8xbf16>, vector<1x8x8xbf16>, vector<1x8x8xf32> -> vector<1x8x8xf32>
    "tpu.trace_stop"() : () -> ()
    %83 = vector.shape_cast %82 : vector<1x8x8xf32> to vector<8x8xf32>
    %84 = arith.truncf %83 : vector<8x8xf32> to vector<8x8xbf16>
    %85 = vector.extract_strided_slice %14 {offsets = [16, 0], sizes = [8, 32], strides = [1, 1]} : vector<32x32xbf16> to vector<8x32xbf16>
    %cst_23 = arith.constant dense<0.000000e+00> : vector<8x32xf32>
    %86 = tpu.matmul %84, %85, %cst_23 {dimension_numbers = #tpu.dot_dimension_numbers<[1], [0], [0], [1], [0, 0, 1, 1], [], []>} : vector<8x8xbf16>, vector<8x32xbf16>, vector<8x32xf32> -> vector<8x32xf32>
    %87 = arith.addf %63, %86 : vector<8x32xf32>
    %88 = vector.extract_strided_slice %9 {offsets = [0, 0, 24], sizes = [1, 8, 8], strides = [1, 1, 1]} : vector<1x8x32xf32> to vector<1x8x8xf32>
    %89 = arith.truncf %88 : vector<1x8x8xf32> to vector<1x8x8xbf16>
    %90 = vector.extract_strided_slice %11 {offsets = [0, 0, 24], sizes = [1, 8, 8], strides = [1, 1, 1]} : vector<1x8x32xf32> to vector<1x8x8xf32>
    %91 = arith.truncf %90 : vector<1x8x8xf32> to vector<1x8x8xbf16>
    %92 = vector.extract_strided_slice %13 {offsets = [0, 0, 24], sizes = [1, 8, 8], strides = [1, 1, 1]} : vector<1x8x32xf32> to vector<1x8x8xf32>
    %93 = arith.truncf %92 : vector<1x8x8xf32> to vector<1x8x8xbf16>
    "tpu.trace_start"() <{level = 10 : i32, message = "bqd,bkd->bqk"}> : () -> ()
    %cst_24 = arith.constant dense<0.000000e+00> : vector<1x8x8xf32>
    %94 = tpu.matmul %89, %91, %cst_24 {dimension_numbers = #tpu.dot_dimension_numbers<[2], [2], [1], [1], [0, 0, 0, 1, 1, 1], [0], [0]>} : vector<1x8x8xbf16>, vector<1x8x8xbf16>, vector<1x8x8xf32> -> vector<1x8x8xf32>
    "tpu.trace_stop"() : () -> ()
    %cst_25 = arith.constant dense<0xFF800000> : vector<1x8xf32>
    %95 = vector.multi_reduction <maximumf>, %94, %cst_25 [2] : vector<1x8x8xf32> to vector<1x8xf32>
    %96 = vector.shape_cast %95 : vector<1x8xf32> to vector<1x8x1xf32>
    %97 = vector.broadcast %96 : vector<1x8x1xf32> to vector<1x8x8xf32>
    %98 = arith.subf %94, %97 : vector<1x8x8xf32>
    %99 = math.exp %98 : vector<1x8x8xf32>
    %cst_26 = arith.constant dense<0.000000e+00> : vector<1x8xf32>
    %100 = vector.multi_reduction <add>, %99, %cst_26 [2] : vector<1x8x8xf32> to vector<1x8xf32>
    %101 = vector.shape_cast %100 : vector<1x8xf32> to vector<1x8x1xf32>
    %102 = tpu.reciprocal %101 {approx = true} : vector<1x8x1xf32> -> vector<1x8x1xf32>
    %103 = vector.broadcast %102 : vector<1x8x1xf32> to vector<1x8x8xf32>
    %104 = arith.mulf %99, %103 : vector<1x8x8xf32>
    %105 = arith.truncf %104 : vector<1x8x8xf32> to vector<1x8x8xbf16>
    "tpu.trace_start"() <{level = 10 : i32, message = "bqk,bkd->bqd"}> : () -> ()
    %cst_27 = arith.constant dense<0.000000e+00> : vector<1x8x8xf32>
    %106 = tpu.matmul %105, %93, %cst_27 {dimension_numbers = #tpu.dot_dimension_numbers<[2], [1], [1], [2], [0, 0, 0, 1, 1, 2], [0], [0]>} : vector<1x8x8xbf16>, vector<1x8x8xbf16>, vector<1x8x8xf32> -> vector<1x8x8xf32>
    "tpu.trace_stop"() : () -> ()
    %107 = vector.shape_cast %106 : vector<1x8x8xf32> to vector<8x8xf32>
    %108 = arith.truncf %107 : vector<8x8xf32> to vector<8x8xbf16>
    %109 = vector.extract_strided_slice %14 {offsets = [24, 0], sizes = [8, 32], strides = [1, 1]} : vector<32x32xbf16> to vector<8x32xbf16>
    %cst_28 = arith.constant dense<0.000000e+00> : vector<8x32xf32>
    %110 = tpu.matmul %108, %109, %cst_28 {dimension_numbers = #tpu.dot_dimension_numbers<[1], [0], [0], [1], [0, 0, 1, 1], [], []>} : vector<8x8xbf16>, vector<8x32xbf16>, vector<8x32xf32> -> vector<8x32xf32>
    %111 = arith.addf %87, %110 : vector<8x32xf32>
    %c0_29 = arith.constant 0 : index
    %c0_30 = arith.constant 0 : index
    %112 = vector.load %arg5[%c0_29, %c0_30] : memref<1x32xf32, #tpu.memory_space<vmem>>, vector<1x32xf32>
    %113 = vector.broadcast %112 : vector<1x32xf32> to vector<8x32xf32>
    %114 = arith.addf %111, %113 : vector<8x32xf32>
    %115 = arith.addf %1, %114 : vector<8x32xf32>
    %c0_31 = arith.constant 0 : index
    %c0_32 = arith.constant 0 : index
    %116 = vector.load %arg6[%c0_31, %c0_32] : memref<1x32xf32, #tpu.memory_space<vmem>>, vector<1x32xf32>
    %c0_33 = arith.constant 0 : index
    %c0_34 = arith.constant 0 : index
    %117 = vector.load %arg7[%c0_33, %c0_34] : memref<1x32xf32, #tpu.memory_space<vmem>>, vector<1x32xf32>
    %cst_35 = arith.constant dense<0.000000e+00> : vector<8xf32>
    %118 = vector.multi_reduction <add>, %115, %cst_35 [1] : vector<8x32xf32> to vector<8xf32>
    %119 = vector.shape_cast %118 : vector<8xf32> to vector<8x1xf32>
    %cst_36 = arith.constant 3.200000e+01 : f32
    %120 = vector.broadcast %cst_36 : f32 to vector<8x1xf32>
    %121 = arith.divf %119, %120 : vector<8x1xf32>
    %122 = vector.broadcast %121 : vector<8x1xf32> to vector<8x32xf32>
    %123 = arith.subf %115, %122 : vector<8x32xf32>
    %124 = arith.mulf %123, %123 : vector<8x32xf32>
    %cst_37 = arith.constant dense<0.000000e+00> : vector<8xf32>
    %125 = vector.multi_reduction <add>, %124, %cst_37 [1] : vector<8x32xf32> to vector<8xf32>
    %126 = vector.shape_cast %125 : vector<8xf32> to vector<8x1xf32>
    %cst_38 = arith.constant 3.200000e+01 : f32
    %127 = vector.broadcast %cst_38 : f32 to vector<8x1xf32>
    %128 = arith.divf %126, %127 : vector<8x1xf32>
    %cst_39 = arith.constant 9.99999974E-6 : f32
    %129 = vector.broadcast %cst_39 : f32 to vector<8x1xf32>
    %130 = arith.addf %128, %129 : vector<8x1xf32>
    %131 = math.rsqrt %130 : vector<8x1xf32>
    %132 = vector.broadcast %131 : vector<8x1xf32> to vector<8x32xf32>
    %133 = arith.mulf %123, %132 : vector<8x32xf32>
    %134 = vector.broadcast %116 : vector<1x32xf32> to vector<8x32xf32>
    %135 = arith.mulf %133, %134 : vector<8x32xf32>
    %136 = vector.broadcast %117 : vector<1x32xf32> to vector<8x32xf32>
    %137 = arith.addf %135, %136 : vector<8x32xf32>
    %138 = arith.truncf %137 : vector<8x32xf32> to vector<8x32xbf16>
    %cst_40 = arith.constant 0.000000e+00 : f32
    %139 = vector.broadcast %cst_40 : f32 to vector<8x32xf32>
    %c0_41 = arith.constant 0 : index
    %c0_42 = arith.constant 0 : index
    %140 = vector.load %arg8[%c0_41, %c0_42] : memref<32x2048xbf16, #tpu.memory_space<vmem>>, vector<32x1024xbf16>
    %cst_43 = arith.constant dense<0.000000e+00> : vector<8x1024xf32>
    %141 = tpu.matmul %138, %140, %cst_43 {dimension_numbers = #tpu.dot_dimension_numbers<[1], [0], [0], [1], [0, 0, 1, 1], [], []>} : vector<8x32xbf16>, vector<32x1024xbf16>, vector<8x1024xf32> -> vector<8x1024xf32>
    %c0_44 = arith.constant 0 : index
    %c0_45 = arith.constant 0 : index
    %142 = vector.load %arg9[%c0_44, %c0_45] : memref<1x2048xf32, #tpu.memory_space<vmem>>, vector<1x1024xf32>
    %143 = vector.broadcast %142 : vector<1x1024xf32> to vector<8x1024xf32>
    %144 = arith.addf %141, %143 : vector<8x1024xf32>
    %cst_46 = arith.constant 0.000000e+00 : f32
    %145 = vector.broadcast %cst_46 : f32 to vector<8x1024xf32>
    %146 = arith.maximumf %144, %145 : vector<8x1024xf32>
    %147 = arith.truncf %146 : vector<8x1024xf32> to vector<8x1024xbf16>
    %c0_47 = arith.constant 0 : index
    %c0_48 = arith.constant 0 : index
    %148 = vector.load %arg10[%c0_47, %c0_48] : memref<2048x32xbf16, #tpu.memory_space<vmem>>, vector<1024x32xbf16>
    %cst_49 = arith.constant dense<0.000000e+00> : vector<8x32xf32>
    %149 = tpu.matmul %147, %148, %cst_49 {dimension_numbers = #tpu.dot_dimension_numbers<[1], [0], [0], [1], [0, 0, 1, 1], [], []>} : vector<8x1024xbf16>, vector<1024x32xbf16>, vector<8x32xf32> -> vector<8x32xf32>
    %150 = arith.addf %139, %149 : vector<8x32xf32>
    %c0_50 = arith.constant 0 : index
    %c1024 = arith.constant 1024 : index
    %151 = vector.load %arg8[%c0_50, %c1024] : memref<32x2048xbf16, #tpu.memory_space<vmem>>, vector<32x1024xbf16>
    %cst_51 = arith.constant dense<0.000000e+00> : vector<8x1024xf32>
    %152 = tpu.matmul %138, %151, %cst_51 {dimension_numbers = #tpu.dot_dimension_numbers<[1], [0], [0], [1], [0, 0, 1, 1], [], []>} : vector<8x32xbf16>, vector<32x1024xbf16>, vector<8x1024xf32> -> vector<8x1024xf32>
    %c0_52 = arith.constant 0 : index
    %c1024_53 = arith.constant 1024 : index
    %153 = vector.load %arg9[%c0_52, %c1024_53] : memref<1x2048xf32, #tpu.memory_space<vmem>>, vector<1x1024xf32>
    %154 = vector.broadcast %153 : vector<1x1024xf32> to vector<8x1024xf32>
    %155 = arith.addf %152, %154 : vector<8x1024xf32>
    %cst_54 = arith.constant 0.000000e+00 : f32
    %156 = vector.broadcast %cst_54 : f32 to vector<8x1024xf32>
    %157 = arith.maximumf %155, %156 : vector<8x1024xf32>
    %158 = arith.truncf %157 : vector<8x1024xf32> to vector<8x1024xbf16>
    %c1024_55 = arith.constant 1024 : index
    %c0_56 = arith.constant 0 : index
    %159 = vector.load %arg10[%c1024_55, %c0_56] : memref<2048x32xbf16, #tpu.memory_space<vmem>>, vector<1024x32xbf16>
    %cst_57 = arith.constant dense<0.000000e+00> : vector<8x32xf32>
    %160 = tpu.matmul %158, %159, %cst_57 {dimension_numbers = #tpu.dot_dimension_numbers<[1], [0], [0], [1], [0, 0, 1, 1], [], []>} : vector<8x1024xbf16>, vector<1024x32xbf16>, vector<8x32xf32> -> vector<8x32xf32>
    %161 = arith.addf %150, %160 : vector<8x32xf32>
    %c0_58 = arith.constant 0 : index
    %c0_59 = arith.constant 0 : index
    %162 = vector.load %arg11[%c0_58, %c0_59] : memref<1x32xf32, #tpu.memory_space<vmem>>, vector<1x32xf32>
    %163 = vector.broadcast %162 : vector<1x32xf32> to vector<8x32xf32>
    %164 = arith.addf %161, %163 : vector<8x32xf32>
    %165 = arith.addf %137, %164 : vector<8x32xf32>
    %c0_60 = arith.constant 0 : index
    %c0_61 = arith.constant 0 : index
    %166 = vector.load %arg12[%c0_60, %c0_61] : memref<1x32xf32, #tpu.memory_space<vmem>>, vector<1x32xf32>
    %c0_62 = arith.constant 0 : index
    %c0_63 = arith.constant 0 : index
    %167 = vector.load %arg13[%c0_62, %c0_63] : memref<1x32xf32, #tpu.memory_space<vmem>>, vector<1x32xf32>
    %cst_64 = arith.constant dense<0.000000e+00> : vector<8xf32>
    %168 = vector.multi_reduction <add>, %165, %cst_64 [1] : vector<8x32xf32> to vector<8xf32>
    %169 = vector.shape_cast %168 : vector<8xf32> to vector<8x1xf32>
    %cst_65 = arith.constant 3.200000e+01 : f32
    %170 = vector.broadcast %cst_65 : f32 to vector<8x1xf32>
    %171 = arith.divf %169, %170 : vector<8x1xf32>
    %172 = vector.broadcast %171 : vector<8x1xf32> to vector<8x32xf32>
    %173 = arith.subf %165, %172 : vector<8x32xf32>
    %174 = arith.mulf %173, %173 : vector<8x32xf32>
    %cst_66 = arith.constant dense<0.000000e+00> : vector<8xf32>
    %175 = vector.multi_reduction <add>, %174, %cst_66 [1] : vector<8x32xf32> to vector<8xf32>
    %176 = vector.shape_cast %175 : vector<8xf32> to vector<8x1xf32>
    %cst_67 = arith.constant 3.200000e+01 : f32
    %177 = vector.broadcast %cst_67 : f32 to vector<8x1xf32>
    %178 = arith.divf %176, %177 : vector<8x1xf32>
    %cst_68 = arith.constant 9.99999974E-6 : f32
    %179 = vector.broadcast %cst_68 : f32 to vector<8x1xf32>
    %180 = arith.addf %178, %179 : vector<8x1xf32>
    %181 = math.rsqrt %180 : vector<8x1xf32>
    %182 = vector.broadcast %181 : vector<8x1xf32> to vector<8x32xf32>
    %183 = arith.mulf %173, %182 : vector<8x32xf32>
    %184 = vector.broadcast %166 : vector<1x32xf32> to vector<8x32xf32>
    %185 = arith.mulf %183, %184 : vector<8x32xf32>
    %186 = vector.broadcast %167 : vector<1x32xf32> to vector<8x32xf32>
    %187 = arith.addf %185, %186 : vector<8x32xf32>
    %188 = vector.shape_cast %187 : vector<8x32xf32> to vector<1x8x32xf32>
    %c0_69 = arith.constant 0 : index
    %c0_70 = arith.constant 0 : index
    %c0_71 = arith.constant 0 : index
    %189 = vector.load %arg14[%c0_69, %c0_70, %c0_71] : memref<1x8x32xf32, #tpu.memory_space<vmem>>, vector<1x8x32xf32>
    tpu.vector_store %arg14[%c0_69, %c0_70, %c0_71], %188 {strides = array<i32>} : memref<1x8x32xf32, #tpu.memory_space<vmem>>, vector<1x8x32xf32>,
    return
  }
  func.func @transform_0(%arg0: i32) -> (i32, i32, i32) {
    %c0_i32 = arith.constant 0 : i32
    %c0_i32_0 = arith.constant 0 : i32
    %c0_i32_1 = arith.constant 0 : i32
    return %arg0, %c0_i32, %c0_i32_0 : i32, i32, i32
  }
  func.func @transform_1(%arg0: i32) -> (i32, i32) {
    %c0_i32 = arith.constant 0 : i32
    %c0_i32_0 = arith.constant 0 : i32
    %c0_i32_1 = arith.constant 0 : i32
    return %c0_i32, %c0_i32_0 : i32, i32
  }
  func.func @transform_2(%arg0: i32) -> (i32, i32) {
    %c0_i32 = arith.constant 0 : i32
    %c0_i32_0 = arith.constant 0 : i32
    %c0_i32_1 = arith.constant 0 : i32
    return %c0_i32, %c0_i32_0 : i32, i32
  }
  func.func @transform_3(%arg0: i32) -> (i32, i32) {
    %c0_i32 = arith.constant 0 : i32
    %c0_i32_0 = arith.constant 0 : i32
    %c0_i32_1 = arith.constant 0 : i32
    return %c0_i32, %c0_i32_0 : i32, i32
  }
  func.func @transform_4(%arg0: i32) -> (i32, i32) {
    %c0_i32 = arith.constant 0 : i32
    %c0_i32_0 = arith.constant 0 : i32
    %c0_i32_1 = arith.constant 0 : i32
    return %c0_i32, %c0_i32_0 : i32, i32
  }
  func.func @transform_5(%arg0: i32) -> (i32, i32) {
    %c0_i32 = arith.constant 0 : i32
    %c0_i32_0 = arith.constant 0 : i32
    %c0_i32_1 = arith.constant 0 : i32
    return %c0_i32, %c0_i32_0 : i32, i32
  }
  func.func @transform_6(%arg0: i32) -> (i32, i32) {
    %c0_i32 = arith.constant 0 : i32
    %c0_i32_0 = arith.constant 0 : i32
    %c0_i32_1 = arith.constant 0 : i32
    return %c0_i32, %c0_i32_0 : i32, i32
  }
  func.func @transform_7(%arg0: i32) -> (i32, i32) {
    %c0_i32 = arith.constant 0 : i32
    %c0_i32_0 = arith.constant 0 : i32
    %c0_i32_1 = arith.constant 0 : i32
    return %c0_i32, %c0_i32_0 : i32, i32
  }
  func.func @transform_8(%arg0: i32) -> (i32, i32) {
    %c0_i32 = arith.constant 0 : i32
    %c0_i32_0 = arith.constant 0 : i32
    %c0_i32_1 = arith.constant 0 : i32
    return %c0_i32, %c0_i32_0 : i32, i32
  }
  func.func @transform_9(%arg0: i32) -> (i32, i32) {
    %c0_i32 = arith.constant 0 : i32
    %c0_i32_0 = arith.constant 0 : i32
    %c0_i32_1 = arith.constant 0 : i32
    return %c0_i32, %c0_i32_0 : i32, i32
  }
  func.func @transform_10(%arg0: i32) -> (i32, i32) {
    %c0_i32 = arith.constant 0 : i32
    %c0_i32_0 = arith.constant 0 : i32
    %c0_i32_1 = arith.constant 0 : i32
    return %c0_i32, %c0_i32_0 : i32, i32
  }
  func.func @transform_11(%arg0: i32) -> (i32, i32) {
    %c0_i32 = arith.constant 0 : i32
    %c0_i32_0 = arith.constant 0 : i32
    %c0_i32_1 = arith.constant 0 : i32
    return %c0_i32, %c0_i32_0 : i32, i32
  }
  func.func @transform_12(%arg0: i32) -> (i32, i32) {
    %c0_i32 = arith.constant 0 : i32
    %c0_i32_0 = arith.constant 0 : i32
    %c0_i32_1 = arith.constant 0 : i32
    return %c0_i32, %c0_i32_0 : i32, i32
  }
  func.func @transform_13(%arg0: i32) -> (i32, i32, i32) {
    %c0_i32 = arith.constant 0 : i32
    %c0_i32_0 = arith.constant 0 : i32
    %c0_i32_1 = arith.constant 0 : i32
    return %arg0, %c0_i32, %c0_i32_0 : i32, i32, i32
  }
}

</mosaic_0001>

<bundles_post_ra>
// kernel: transformer_encoder_forward.3
= control target key start
LH: loop header
LB: loop body
LE: loop exit
PB: predicated region body
PF: predicated region fallthrough
CT: control target
= control target key end

     0   :  { %8 = vsyncpa [#allocation3], 0  ;;  %s571_s0 = inlined_call_operand.hbm [shape: f32[16,16], index: 0, kind: input, shape index: {}]   ;;  %s572_s1 = inlined_call_operand.vmem [shape: bf16[16,32], index: 1, kind: input, shape index: {}]   ;;  %s573_s2 = inlined_call_operand.vmem [shape: f32[1,32], index: 2, kind: input, shape index: {}]   ;;  %s574_s3 = inlined_call_operand.vmem [shape: f32[16,32], index: 3, kind: output, shape index: {}]  }
   0x1   :  { %10 = vsyncpa [#allocation3 + $0x1], 0  ;;  %s465_s12 = smov 0   ;;  %s467_s13 = smov 0  }
   0x2   :  { %s469_s14 = smov 0   ;;  %s471_s15 = smov 0  }
   0x3 LB: > { %s484_s16 = sadd.s32 4294967295, %s440_s15   ;;  %s487_s17 = sadd.s32 1, %s440_s15   ;;  %s440_s15 = sphi %s471_s15, %s584_s15   ;;  %s436_s14 = sphi %s469_s14, %s583_s14   ;;  %s432_s13 = sphi %s467_s13, %s582_s13   ;;  %s428_s12 = sphi %s465_s12, %s581_s12  }
   0x4   : > { %s20_s18 = ssub.s32 %s440_s15, %s487_s17  ;;  %s23_s19 = sadd.s32 1, %s436_s14 }
   0x5   : > { %p21_p0 = scmp.eq.s32.totalorder %s20_s18, 0  ;;  %p30_p1 = scmp.ne.s32.totalorder %s436_s14, %s432_s13 }
   0x6   : > { %p31_p2 = scmp.eq.s32.totalorder %s440_s15, 0  ;;  %p36_p3 = scmp.ne.s32.totalorder %s432_s13, %s428_s12 }
   0x7   : > { %s497_s20 = scalar_select %p21_p0, %s436_s14, %s23_s19  }
   0x8   : > { %p32_p4 = por %p31_p2, %p30_p1  ;;  %p37_p5 = scmp.eq.s32.totalorder %s484_s16, 0 }
   0x9   : > { %p342_p6 = scmp.lt.s32.totalorder %s440_s15, 2  ;;  %s134_s22 = sand.u32 1, %s436_s14  }
   0xa   : > { %p501_p7 = por %p37_p5, %p36_p3  ;;  %s318_s23 = sshll.u32 %s134_s22, 3 }
   0xb   : > { %s319_s24 = sshll.u32 %s440_s15, 7  ;;  %s138_s28 = scalar_lea.vmem [#allocation2], %s318_s23 }
   0xc   : > { %s576_s21 = scalar_select %p501_p7, 1, 0 }
   0xd   : > { %s510_s27 = scalar_lea.hbm %s571_s0, %s319_s24  ;;  %s145_s29 = sshll.u32 %s138_s28, 4  ;;  %s512_s29 = int_to_ptr.vmem [resolvable:$true] %s145_s29 }
   0xe   : > { %p514_p8 = pnand %p342_p6, %p32_p4  ;;  %s135_s4 = scalar_lea.sflag [#allocation3], %s134_s22 }
   0xf   : > { %s378_s5 = scalar_lea.hbm %s510_s27, 128  ;;  %s383_s8 = scalar_lea.hbm %s571_s0, 256 }
  0x10   : > { %p379_p11 = scmp.ne.s32.totalorder %s510_s27, %s378_s5  ;;  %p380_p12 = pneg %p514_p8 }
  0x11   : > { %p384_p1 = scmp.lt.s32.totalorder %s510_s27, %s571_s0  ;;  %p385_p2 = scmp.lt.s32.totalorder %s383_s8, %s378_s5 }
  0x12   : > { %p381_p13 = pnand %p380_p12, %p379_p11 }
  0x13   : > { %p386_p3 = por %p385_p2, %p384_p1 }
  0x14   : > { %p382_p0 = pneg %p381_p13 }
  0x16   : > { %p387_p4 = pnand %p386_p3, %p382_p0 }
  0x18   : > { %390 = shalt.err (!%p387_p4)
}
  0x19   : > { %s391_s11 = scalar_lea.vmem %s512_s29, 128  ;;  %s442_s12 = smov [#allocation2]  }
  0x1a   : > { %p392_p5 = scmp.ne.s32.totalorder %s512_s29, %s391_s11  ;;  %s396_s18 = sshll.u32 %s442_s12, 4  ;;  %s397_s18 = int_to_ptr.vmem [resolvable:$false] %s396_s18 }
  0x1b   : > { %s398_s19 = scalar_lea.vmem %s397_s18, 256  ;;  %p399_p13 = scmp.lt.s32.totalorder %s512_s29, %s397_s18 }
  0x1c   : > { %p394_p6 = pnand %p392_p5, %p380_p12  ;;  %p400_p9 = scmp.lt.s32.totalorder %s398_s19, %s391_s11 }
  0x1e   : > { %p395_p11 = pneg %p394_p6  ;;  %p401_p10 = por %p400_p9, %p399_p13 }
  0x20   : > { %p402_p7 = pnand %p401_p10, %p395_p11 }
  0x22   : > { %405 = shalt.err (!%p402_p7)
}
  0x23   : > { %341 = dma.hbm_to_vmem [thread:$0]  (!%p514_p8), %s510_s27, 128, %s512_s29, %s135_s4  }
  0x24   : > { %p578_p0 = scmp.lt.s32.totalorder %s440_s15, 3  ;;  %p579_p1 = scmp.ge.s32.totalorder %s440_s15, 1 }
  0x26   : > { %p151_p12 = pnand %p579_p1, %p578_p0 }
  0x27   : > { %s156_s22 = sand.u32 (!%p151_p12), 1, %s432_s13   ;;  %p580_p9 = scmp.ne.s32.totalorder (!%p151_p12), %s576_s21, 0 }
  0x28   : > { %154 = sbr.rel (%p151_p12) target bundleno = 250 (0xfa), region = 32  ;;  %s321_s23 = sshll.u32 (!%p151_p12), %s156_s22, 3 }
  0x29   : > { %s157_s24 = scalar_lea.sflag (!%p151_p12), [#allocation3], %s156_s22  ;;  %s160_s25 = scalar_lea.vmem (!%p151_p12), [#allocation2], %s321_s23 }
  0x2d   : > { %423 = dma.done.wait (%p580_p9), %s157_s24, 128  }
  0x2e   : > { %425 = vsyncadd (%p580_p9), %s157_s24, 4294967168  ;;  %v443_v0 = vmov 0.0   ;;  %vm444_vm0 = vmmov 0   ;;  %v377_v1 = vld [vmem:[%s572_s1] sm:$0xff]   ;;  %vm204_vm1 = vcmask 130048   ;;  %p182_p7 = scmp.lt.s32.totalorder %s484_s16, 1 }
  0x2f   : > { %330 = vmatprep.subr.bf16.mxu0 %v443_v0  ;;  %332 = vmatprep.mubr.msk.bf16.mxu0 %vm444_vm0, %v443_v0  ;;  %v187_v2 = vld [vmem:[%s160_s25] sm:$0xff]  ;;  %vm248_vm2 = vcmask 261120  }
  0x30   : > { %331 = vmatpush3.bf16.msra.mxu0 %v377_v1  ;;  %v188_v3 = vpack.c.bf16 %v187_v2, %v187_v2  ;;  %s586_s16 = smov (!%p182_p7, %s484_s16), 1  ;;  %v323_v4 = vld [vmem:[%s573_s2] ss:$0 sm:$0xff] }
  0x31   : > { %s322_s27 = sshll.u32 %s586_s16, 3 }
  0x32   : > { %s185_s4 = scalar_lea.vmem %s574_s3, %s322_s27 }
  0x33   : > { %333 = vmatmul.mubr.msk.bf16.vlgmr.msra.gmra.mxu0 %vm204_vm1, %v188_v3 }
  0xf3   : > { %v242_v5 = vpop.f32.mrf.mxu0 }
  0xf4   : > { %v243_v6 = vadd.f32 %v323_v4, %v242_v5 }
  0xf5   : > { %v334_v7 = vpop.f32.mrf.mxu0 }
  0xf6   : > { %249 = vst.msk [vmem:[%s185_s4] sm:$0xff] %vm248_vm2, %v243_v6 }
  0xf7   : > { %v245_v8 = vpop.f32.mrf.mxu0 }
  0xf9   : > { %v335_v9 = vpop.f32.mrf.mxu0 }
  0xfa PF: > { %p13_p8 = scmp.ge.s32.totalorder %s487_s17, 4   ;;  %s581_s12 = smov %s432_s13 }
  0xfb   : > { %s582_s13 = smov %s436_s14  ;;  %s583_s14 = smov %s497_s20 }
  0xfc   : > { %s584_s15 = smov %s487_s17  ;;  %15 = sbr.rel (!%p13_p8) target bundleno = 3 (0x3), region = 72 }
 0x101   :  { %269 = vsyncpa [#allocation3], 1 }
 0x102   :  { %271 = vsyncpa [#allocation3 + $0x1], 1 }

// kernel: transformer_encoder_forward.4
= control target key start
LH: loop header
LB: loop body
LE: loop exit
PB: predicated region body
PF: predicated region fallthrough
CT: control target
= control target key end

     0   :  { %s4003_s25 = smov 0   ;;  %s4767_s0 = inlined_call_operand.vmem [shape: f32[2,8,32], index: 0, kind: input, shape index: {}, may-alias: {0,13}]   ;;  %s4768_s1 = inlined_call_operand.vmem [shape: bf16[32,96], index: 1, kind: input, shape index: {}]   ;;  %s4769_s2 = inlined_call_operand.vmem [shape: f32[1,96], index: 2, kind: input, shape index: {}]   ;;  %s4770_s3 = inlined_call_operand.vmem [shape: bf16[32,32], index: 3, kind: input, shape index: {}]   ;;  %s4771_s4 = inlined_call_operand.vmem [shape: f32[1,32], index: 4, kind: input, shape index: {}]   ;;  %s4772_s5 = inlined_call_operand.vmem [shape: f32[1,32], index: 5, kind: input, shape index: {}]   ;;  %s4773_s6 = inlined_call_operand.vmem [shape: f32[1,32], index: 6, kind: input, shape index: {}]   ;;  %s4774_s7 = inlined_call_operand.vmem [shape: bf16[32,2048], index: 7, kind: input, shape index: {}]   ;;  %s4775_s8 = inlined_call_operand.vmem [shape: f32[1,2048], index: 8, kind: input, shape index: {}]   ;;  %s4776_s9 = inlined_call_operand.vmem [shape: bf16[2048,32], index: 9, kind: input, shape index: {}]   ;;  %s4777_s10 = inlined_call_operand.vmem [shape: f32[1,32], index: 10, kind: input, shape index: {}]   ;;  %s4778_s11 = inlined_call_operand.vmem [shape: f32[1,32], index: 11, kind: input, shape index: {}]   ;;  %s4779_s12 = inlined_call_operand.vmem [shape: f32[1,32], index: 12, kind: input, shape index: {}]   ;;  %s4780_s13 = inlined_call_operand.vmem [shape: f32[2,8,32], index: 13, kind: output, shape index: {}, may-alias: {0,13}]  }
   0x1 LB: > { %s3257_s26 = sadd.s32 4294967295, %s3917_s25   ;;  %p3261_p0 = scmp.ge.s32.totalorder %s3917_s25, 1  ;;  %s3917_s25 = sphi %s4003_s25, %s23_s25  }
   0x2   : > { %p386_p1 = scmp.lt.s32.totalorder %s3917_s25, 3 }
   0x4   : > { %p387_p2 = pnand %p3261_p0, %p386_p1 }
   0x5   : > { %p428_p3 = scmp.lt.s32.totalorder (!%p387_p2), %s3257_s26, 1  ;;  %s3921_s20 = smov (!%p387_p2), 120  }
   0x6   : > { %390 = sbr.rel (%p387_p2) target bundleno = 3612 (0xe1c), region = 72  ;;  %s3922_s21 = smov (!%p387_p2), 96  }
   0x7   : > { %s3923_s22 = smov (!%p387_p2), 88   ;;  %s3924_s23 = smov (!%p387_p2), 64  }
   0x8   : > { %s3925_s24 = smov (!%p387_p2), 56   ;;  %s3926_s27 = smov (!%p387_p2), 112  }
   0x9   : > { %s3927_s28 = smov (!%p387_p2), 80   ;;  %s3929_s18 = smov (!%p387_p2), 104  }
   0xa   : > { %s3930_s19 = smov (!%p387_p2), 48  }
   0xb   : > { %v3761_v0 = vld [vmem:[%s4768_s1 + $0x8] sm:$0xff]   ;;  %v3919_v1 = vmov 0.0   ;;  %v3762_v2 = vld [vmem:[%s4768_s1] sm:$0xff]   ;;  %vm3920_vm0 = vmmov 0   ;;  %s4782_s26 = smov (!%p428_p3, %s3257_s26), 1  ;;  %vm462_vm1 = vcmask 261120  }
   0xc   : > { %3659 = vmatprep.subr.bf16.mxu0 %v3919_v1  ;;  %3667 = vmatprep.subr.bf16.mxu1 %v3919_v1  ;;  %s3262_s14 = sshll.u32 %s4782_s26, 3  ;;  %v3264_v5 = vld [vmem:[%s4769_s2] ss:$0 sm:$0xff]  ;;  %vm514_vm2 = vcmask 64512   ;;  %vm578_vm3 = vcmask 1043456  }
   0xd   : > { %3660 = vmatpush3.bf16.msra.mxu0 %v3761_v0  ;;  %3663 = vmatprep.mubr.msk.bf16.mxu0 %vm3920_vm0, %v3919_v1  ;;  %s431_s17 = scalar_lea.vmem %s4767_s0, %s3262_s14  ;;  %v506_v49 = vld [vmem:[%s4770_s3] sm:$0xf]  ;;  %v507_v51 = vld [vmem:[%s4770_s3 + $0x4] sm:$0xf]  ;;  %s435_s29 = scalar_lea.vmem %s4780_s13, %s3262_s14 }
   0xe   : > { %3661 = vmatprep.subr.bf16.mxu0 %v3919_v1  ;;  %3669 = vmatprep.mubr.msk.bf16.mxu1 %vm3920_vm0, %v3919_v1  ;;  %v4033_v3 = vld [vmem:[%s431_s17] sm:$0xff]  ;;  %v784_v50 = vsel %vm578_vm3, %v506_v49, 0  ;;  %v738_v52 = vsel %vm578_vm3, %v507_v51, 0  ;;  %s3928_s17 = smov 72  }
   0xf   : > { %v438_v4 = vpack.c.bf16 %v4033_v3, %v4033_v3 }
  0x11   : > { %3662 = vmatpush3.bf16.msra.mxu0 %v3762_v2 }
  0x12   : > { %3673 = vmatprep.subr.bf16.mxu0 %v3919_v1 }
  0x14   : > { %3664 = vmatmul.mubr.msk.bf16.vlgmr.msra.gmra.mxu0 %vm462_vm1, %v438_v4 }
  0x15   : > { %3675 = vmatprep.mubr.msk.bf16.mxu0 %vm3920_vm0, %v3919_v1 }
  0xd4   : > { %v500_v6 = vpop.f32.mrf.mxu0 }
  0xd5   : > { %v501_v7 = vadd.f32 %v3264_v5, %v500_v6 }
  0xd6   : > { %v3665_v8 = vpop.f32.mrf.mxu0 }
  0xd7   : > { %v4043_v9 = vpack.c.bf16 %v501_v7, %v501_v7 }
  0xd8   : > { %v503_v10 = vpop.f32.mrf.mxu0 }
  0xd9   : > { %623 = vrot.lane.b32.xlu1 %v4043_v9, %s3921_s20  ;;  %512 = vrot.lane.b32.xlu0 %v4043_v9, %s3922_s21 }
  0xda   : > { %v3666_v11 = vpop.f32.mrf.mxu0 }
  0xdd   : > { %625 = vrot.lane.b32.xlu0 %v4043_v9, %s3923_s22  ;;  %s3931_s22 = smov 40  }
 0x14b   : > { %v513_v12 = vpop.permute.xlu0 %512  ;;  %v624_v16 = vpop.permute.xlu1 %623 }
 0x14c   : > { %v519_v13 = vsel %vm514_vm2, %v513_v12, 0 }
 0x14d   : > { %3668 = vmatpush3.bf16.xpose.msra.mxu1 %v519_v13 }
 0x14e   : > { %3679 = vmatprep.subr.bf16.mxu1 %v3919_v1 }
 0x14f   : > { %v626_v14 = vpop.permute.xlu0 %625 }
 0x150   : > { %v631_v15 = vsel %vm514_vm2, %v626_v14, 0 }
 0x154   : > { %3670 = vmatmul.mubr.msk.bf16.vlgmr.msra.gmra.mxu1 %vm514_vm2, %v4043_v9 }
 0x155   : > { %3680 = vmatpush3.bf16.xpose.msra.mxu1 %v631_v15  ;;  %3681 = vmatprep.mubr.msk.bf16.mxu1 %vm3920_vm0, %v3919_v1 }
 0x156   : > { %3691 = vmatprep.subr.bf16.mxu1 %v3919_v1 }
 0x15c   : > { %3682 = vmatmul.mubr.msk.bf16.vlgmr.msra.gmra.mxu1 %vm514_vm2, %v624_v16 }
 0x15d   : > { %3693 = vmatprep.mubr.msk.bf16.mxu1 %vm3920_vm0, %v3919_v1  ;;  %3692 = vmatpush3.bf16.msra.mxu1 %v738_v52  ;;  %v509_v52 = vld [vmem:[%s4770_s3 + $0xc] sm:$0xf] }
 0x15e   : > { %3703 = vmatprep.subr.bf16.mxu1 %v3919_v1 }
 0x214   : > { %v555_v17 = vpop.f32.mrf.mxu1 }
 0x215   : > { %v561_v18 = vsel %vm514_vm2, %v555_v17, -inf }
 0x216   : > { %562 = vmax.xlane.f32.xlu1 %v561_v18  ;;  %v3671_v19 = vpop.f32.mrf.mxu1 }
 0x218   : > { %v558_v20 = vpop.f32.mrf.mxu1 }
 0x21a   : > { %v3672_v21 = vpop.f32.mrf.mxu1 }
 0x21c   : > { %v667_v22 = vpop.f32.mrf.mxu1 }
 0x21d   : > { %v673_v23 = vsel %vm514_vm2, %v667_v22, -inf }
 0x21e   : > { %674 = vmax.xlane.f32.xlu0 %v673_v23  ;;  %v3683_v24 = vpop.f32.mrf.mxu1 }
 0x220   : > { %v670_v25 = vpop.f32.mrf.mxu1 }
 0x222   : > { %v3684_v26 = vpop.f32.mrf.mxu1 }
 0x29f   : > { %v563_v27 = vpop.xlane.xlu1 %562 }
 0x2a0   : > { %v564_v28 = vsub.f32 %v555_v17, %v563_v27 }
 0x2a2   : > { %v565_v29 = vmul.f32 1.442695, %v564_v28 }
 0x2a4   : > { %3891 = vpow2.f32 %v565_v29 }
 0x2a7   : > { %v675_v30 = vpop.xlane.xlu0 %674 }
 0x2a8   : > { %v676_v31 = vsub.f32 %v667_v22, %v675_v30 }
 0x2aa   : > { %v677_v32 = vmul.f32 1.442695, %v676_v31 }
 0x2ac   : > { %3893 = vpow2.f32 %v677_v32 }
 0x2b1   : > { %v3892_v33 = vpop.eup %3891 }
 0x2b2   : > { %v567_v34 = vsel %vm514_vm2, %v3892_v33, 0.0 }
 0x2b3   : > { %568 = vadd.xlane.f32.xlu0 %v567_v34 }
 0x2b9   : > { %v3894_v35 = vpop.eup %3893 }
 0x2ba   : > { %v679_v36 = vsel %vm514_vm2, %v3894_v35, 0.0 }
 0x2bb   : > { %680 = vadd.xlane.f32.xlu1 %v679_v36 }
 0x2c9   : > { %573 = vrot.lane.b32.xlu0 %v4043_v9, %s3924_s23 }
 0x2cc   : > { %685 = vrot.lane.b32.xlu1 %v4043_v9, %s3925_s24 }
 0x2cd   : > { %826 = vrot.lane.b32.xlu0 %v4043_v9, %s3926_s27 }
 0x2d0   : > { %828 = vrot.lane.b32.xlu1 %v4043_v9, %s3927_s28 }
 0x33c   : > { %v569_v37 = vpop.xlane.xlu0 %568 }
 0x33d   : > { %3895 = vrcp.f32 %v569_v37 }
 0x340   : > { %v574_v38 = vpop.permute.xlu0 %573 }
 0x341   : > { %v580_v39 = vsel %vm578_vm3, %v574_v38, 0 }
 0x342   : > { %3674 = vmatpush3.bf16.msra.mxu0 %v580_v39 }
 0x343   : > { %3685 = vmatprep.subr.bf16.mxu0 %v3919_v1 }
 0x344   : > { %v681_v40 = vpop.xlane.xlu1 %680  ;;  %v827_v2 = vpop.permute.xlu0 %826 }
 0x345   : > { %3897 = vrcp.f32 %v681_v40 }
 0x348   : > { %v686_v43 = vpop.permute.xlu1 %685 }
 0x349   : > { %v691_v45 = vsel %vm578_vm3, %v686_v43, 0 }
 0x34a   : > { %v3896_v41 = vpop.eup %3895 }
 0x34b   : > { %v571_v42 = vmul.f32 %v3896_v41, %v3892_v33  ;;  %v508_v33 = vld [vmem:[%s4770_s3 + $0x8] sm:$0xf] }
 0x34c   : > { %v829_v58 = vpop.permute.xlu1 %828  ;;  %v941_v34 = vsel %vm578_vm3, %v508_v33, 0 }
 0x34d   : > { %v572_v44 = vpack.c.bf16 %v571_v42, %v571_v42  ;;  %v834_v62 = vsel %vm514_vm2, %v829_v58, 0 }
 0x34f   : > { %3676 = vmatmul.mubr.msk.bf16.vlgmr.msra.gmra.mxu0 %vm514_vm2, %v572_v44 }
 0x350   : > { %3686 = vmatpush3.bf16.msra.mxu0 %v691_v45  ;;  %3687 = vmatprep.mubr.msk.bf16.mxu0 %vm3920_vm0, %v3919_v1 }
 0x351   : > { %3697 = vmatprep.subr.bf16.mxu0 %v3919_v1 }
 0x352   : > { %v3898_v46 = vpop.eup %3897 }
 0x353   : > { %v683_v47 = vmul.f32 %v3898_v46, %v3894_v35 }
 0x355   : > { %v684_v48 = vpack.c.bf16 %v683_v47, %v683_v47 }
 0x357   : > { %3688 = vmatmul.mubr.msk.bf16.vlgmr.msra.gmra.mxu0 %vm514_vm2, %v684_v48 }
 0x358   : > { %3699 = vmatprep.mubr.msk.bf16.mxu0 %vm3920_vm0, %v3919_v1  ;;  %3698 = vmatpush3.bf16.msra.mxu0 %v784_v50 }
 0x359   : > { %3709 = vmatprep.subr.bf16.mxu0 %v3919_v1 }
 0x40f   : > { %v616_v53 = vpop.f32.mrf.mxu0 }
 0x410   : > { %v622_v54 = vpack.c.bf16 %v616_v53, %v616_v53 }
 0x411   : > { %v3677_v55 = vpop.f32.mrf.mxu0 }
 0x412   : > { %3700 = vmatmul.mubr.msk.bf16.vlgmr.msra.gmra.mxu0 %vm514_vm2, %v622_v54 }
 0x413   : > { %v619_v56 = vpop.f32.mrf.mxu0  ;;  %3711 = vmatprep.mubr.msk.bf16.mxu0 %vm3920_vm0, %v3919_v1 }
 0x415   : > { %v3678_v57 = vpop.f32.mrf.mxu0 }
 0x417   : > { %v727_v59 = vpop.f32.mrf.mxu0 }
 0x418   : > { %v733_v60 = vpack.c.bf16 %v727_v59, %v727_v59 }
 0x419   : > { %v3689_v61 = vpop.f32.mrf.mxu0 }
 0x41a   : > { %3694 = vmatmul.mubr.msk.bf16.vlgmr.msra.gmra.mxu1 %vm514_vm2, %v733_v60 }
 0x41b   : > { %3704 = vmatpush3.bf16.xpose.msra.mxu1 %v834_v62  ;;  %v730_v63 = vpop.f32.mrf.mxu0  ;;  %3705 = vmatprep.mubr.msk.bf16.mxu1 %vm3920_vm0, %v3919_v1 }
 0x41c   : > { %3715 = vmatprep.subr.bf16.mxu1 %v3919_v1 }
 0x41d   : > { %v3690_v0 = vpop.f32.mrf.mxu0 }
 0x422   : > { %3706 = vmatmul.mubr.msk.bf16.vlgmr.msra.gmra.mxu1 %vm514_vm2, %v827_v2 }
 0x423   : > { %3717 = vmatprep.mubr.msk.bf16.mxu1 %vm3920_vm0, %v3919_v1  ;;  %3716 = vmatpush3.bf16.msra.mxu1 %v941_v34  ;;  %v1192_v34 = vld [vmem:[%s4774_s7 + $0x90] sm:$0xff] }
 0x424   : > { %3727 = vmatprep.subr.bf16.mxu1 %v3919_v1 }
 0x4d2   : > { %v820_v4 = vpop.f32.mrf.mxu0 }
 0x4d4   : > { %v3701_v5 = vpop.f32.mrf.mxu0 }
 0x4d5   : > { %v3280_v5 = vld [vmem:[%s4771_s4] ss:$0 sm:$0xff] }
 0x4d6   : > { %v823_v6 = vpop.f32.mrf.mxu0 }
 0x4d8   : > { %v3702_v7 = vpop.f32.mrf.mxu0 }
 0x4da   : > { %v774_v8 = vpop.f32.mrf.mxu1 }
 0x4db   : > { %v4098_v10 = vadd.f32 %v820_v4, %v774_v8 }
 0x4dc   : > { %v3695_v11 = vpop.f32.mrf.mxu1 }
 0x4de   : > { %v777_v12 = vpop.f32.mrf.mxu1 }
 0x4e0   : > { %v3696_v13 = vpop.f32.mrf.mxu1 }
 0x4e2   : > { %v870_v14 = vpop.f32.mrf.mxu1 }
 0x4e3   : > { %v876_v15 = vsel %vm514_vm2, %v870_v14, -inf }
 0x4e4   : > { %877 = vmax.xlane.f32.xlu1 %v876_v15  ;;  %v3707_v16 = vpop.f32.mrf.mxu1 }
 0x4e6   : > { %v873_v17 = vpop.f32.mrf.mxu1 }
 0x4e8   : > { %v3708_v18 = vpop.f32.mrf.mxu1 }
 0x4f5   : > { %986 = vrot.lane.b32.xlu1 %v4043_v9, %s3928_s17 }
 0x4f9   : > { %984 = vrot.lane.b32.xlu1 %v4043_v9, %s3929_s18 }
 0x56d   : > { %v878_v19 = vpop.xlane.xlu1 %877 }
 0x56e   : > { %v879_v20 = vsub.f32 %v870_v14, %v878_v19  ;;  %v1190_v19 = vld [vmem:[%s4774_s7 + $0x80] sm:$0xff] }
 0x570   : > { %v880_v21 = vmul.f32 1.442695, %v879_v20  ;;  %v1194_v20 = vld [vmem:[%s4774_s7 + $0xc0] sm:$0xff] }
 0x571   : > { %v987_v29 = vpop.permute.xlu1 %986 }
 0x572   : > { %3899 = vpow2.f32 %v880_v21  ;;  %v992_v31 = vsel %vm514_vm2, %v987_v29, 0  ;;  %v3292_v21 = vcombine.high %v1190_v19, %v1194_v20 }
 0x575   : > { %v985_v32 = vpop.permute.xlu1 %984 }
 0x57f   : > { %v3900_v22 = vpop.eup %3899 }
 0x580   : > { %v882_v23 = vsel %vm514_vm2, %v3900_v22, 0.0 }
 0x581   : > { %883 = vadd.xlane.f32.xlu0 %v882_v23  ;;  %v3291_v23 = vcombine.low %v1190_v19, %v1194_v20  ;;  %v1633_v20 = vld [vmem:[%s4774_s7 + $0x30] sm:$0xff] }
 0x597   : > { %888 = vrot.lane.b32.xlu0 %v4043_v9, %s3930_s19 }
 0x60a   : > { %v884_v24 = vpop.xlane.xlu0 %883 }
 0x60b   : > { %3901 = vrcp.f32 %v884_v24 }
 0x60e   : > { %v889_v25 = vpop.permute.xlu0 %888 }
 0x60f   : > { %v894_v26 = vsel %vm578_vm3, %v889_v25, 0 }
 0x610   : > { %3710 = vmatpush3.bf16.msra.mxu0 %v894_v26  ;;  %v1182_v26 = vld [vmem:[%s4774_s7] sm:$0xff] }
 0x611   : > { %3721 = vmatprep.subr.bf16.mxu0 %v3919_v1 }
 0x618   : > { %v3902_v27 = vpop.eup %3901 }
 0x619   : > { %v886_v28 = vmul.f32 %v3902_v27, %v3900_v22  ;;  %v1195_v22 = vld [vmem:[%s4774_s7 + $0xc8] sm:$0xff]  ;;  %v1186_v27 = vld [vmem:[%s4774_s7 + $0x40] sm:$0xff] }
 0x61a   : > { %v3284_v29 = vcombine.high %v1182_v26, %v1186_v27 }
 0x61b   : > { %v887_v30 = vpack.c.bf16 %v886_v28, %v886_v28  ;;  %v1183_v28 = vld [vmem:[%s4774_s7 + $0x8] sm:$0xff] }
 0x61d   : > { %3712 = vmatmul.mubr.msk.bf16.vlgmr.msra.gmra.mxu0 %vm514_vm2, %v887_v30  ;;  %v1187_v30 = vld [vmem:[%s4774_s7 + $0x48] sm:$0xff] }
 0x61e   : > { %3722 = vmatpush3.bf16.xpose.msra.mxu0 %v992_v31  ;;  %3723 = vmatprep.mubr.msk.bf16.mxu0 %vm3920_vm0, %v3919_v1  ;;  %v3283_v31 = vcombine.low %v1182_v26, %v1186_v27  ;;  %v3286_v33 = vcombine.high %v1183_v28, %v1187_v30 }
 0x61f   : > { %3733 = vmatprep.subr.bf16.mxu0 %v3919_v1 }
 0x625   : > { %3724 = vmatmul.mubr.msk.bf16.vlgmr.msra.gmra.mxu0 %vm514_vm2, %v985_v32  ;;  %v3285_v32 = vcombine.low %v1183_v28, %v1187_v30  ;;  %v3764_v30 = vld [vmem:[%s4776_s9 + $0x2f8] sm:$0xff]  }
 0x626   : > { %3735 = vmatprep.mubr.msk.bf16.mxu0 %vm3920_vm0, %v3919_v1 }
 0x6dd   : > { %v930_v35 = vpop.f32.mrf.mxu0 }
 0x6de   : > { %v936_v36 = vpack.c.bf16 %v930_v35, %v930_v35  ;;  %v1196_v35 = vld [vmem:[%s4774_s7 + $0xd0] sm:$0xff] }
 0x6df   : > { %v3713_v37 = vpop.f32.mrf.mxu0 }
 0x6e0   : > { %3718 = vmatmul.mubr.msk.bf16.vlgmr.msra.gmra.mxu1 %vm514_vm2, %v936_v36  ;;  %v1193_v36 = vld [vmem:[%s4774_s7 + $0x98] sm:$0xff]  ;;  %v3932_v37 = vmov 0  }
 0x6e1   : > { %v933_v38 = vpop.f32.mrf.mxu0  ;;  %3729 = vmatprep.mubr.msk.bf16.mxu1 %vm3920_vm0, %v3919_v1 }
 0x6e2   : > { %v3296_v38 = vcombine.high %v1192_v34, %v1196_v35 }
 0x6e3   : > { %v3714_v39 = vpop.f32.mrf.mxu0 }
 0x6e4   : > { %v1197_v39 = vld [vmem:[%s4774_s7 + $0xd8] sm:$0xff] }
 0x6e5   : > { %v1028_v40 = vpop.f32.mrf.mxu0 }
 0x6e6   : > { %v1034_v41 = vsel %vm514_vm2, %v1028_v40, -inf }
 0x6e7   : > { %1035 = vmax.xlane.f32.xlu0 %v1034_v41  ;;  %v3725_v42 = vpop.f32.mrf.mxu0  ;;  %v3297_v41 = vcombine.low %v1193_v36, %v1197_v39 }
 0x6e8   : > { %v3298_v42 = vcombine.high %v1193_v36, %v1197_v39  ;;  %v3770_v36 = vld [vmem:[%s4776_s9 + $0x2b0] sm:$0xff]   ;;  %v3772_v39 = vld [vmem:[%s4776_s9 + $0x2e8] sm:$0xff]  }
 0x6e9   : > { %v1031_v43 = vpop.f32.mrf.mxu0 }
 0x6eb   : > { %v3726_v44 = vpop.f32.mrf.mxu0 }
 0x6fd   : > { %1046 = vrot.lane.b32.xlu0 %v4043_v9, %s3931_s22  ;;  %v1099_v9 = vsel %vm578_vm3, %v509_v52, 0  ;;  %v1185_v52 = vld [vmem:[%s4774_s7 + $0x18] sm:$0xff] }
 0x6fe   : > { %3734 = vmatpush3.bf16.msra.mxu0 %v1099_v9 }
 0x770   : > { %v1036_v45 = vpop.xlane.xlu0 %1035 }
 0x771   : > { %v1037_v46 = vsub.f32 %v1028_v40, %v1036_v45  ;;  %v3295_v40 = vcombine.low %v1192_v34, %v1196_v35  ;;  %v3768_v34 = vld [vmem:[%s4776_s9 + $0x2f0] sm:$0xff]  }
 0x772   : > { %v3769_v35 = vld [vmem:[%s4776_s9 + $0x230] sm:$0xff]  }
 0x773   : > { %v1038_v47 = vmul.f32 1.442695, %v1037_v46 }
 0x774   : > { %v1047_v48 = vpop.permute.xlu0 %1046 }
 0x775   : > { %3903 = vpow2.f32 %v1038_v47  ;;  %v1052_v49 = vsel %vm578_vm3, %v1047_v48, 0  ;;  %v3281_v47 = vld [vmem:[%s4772_s5] ss:$0 sm:$0xff] }
 0x776   : > { %3728 = vmatpush3.bf16.msra.mxu1 %v1052_v49  ;;  %v3282_v49 = vld [vmem:[%s4773_s6] ss:$0 sm:$0xff] }
 0x777   : > { %1335 = vmatprep.subr.bf16.mxu1 %v3292_v21  ;;  %v1634_v21 = vld [vmem:[%s4774_s7 + $0x38] sm:$0xff] }
 0x782   : > { %v3904_v1 = vpop.eup %3903 }
 0x783   : > { %v1040_v50 = vsel %vm514_vm2, %v3904_v1, 0.0 }
 0x784   : > { %1041 = vadd.xlane.f32.xlu1 %v1040_v50  ;;  %v1184_v50 = vld [vmem:[%s4774_s7 + $0x10] sm:$0xff] }
 0x7a0   : > { %v977_v51 = vpop.f32.mrf.mxu1 }
 0x7a1   : > { %v983_v53 = vadd.f32 %v977_v51, %v4098_v10  ;;  %v1188_v51 = vld [vmem:[%s4774_s7 + $0x50] sm:$0xff] }
 0x7a2   : > { %v3719_v54 = vpop.f32.mrf.mxu1 }
 0x7a4   : > { %v980_v55 = vpop.f32.mrf.mxu1 }
 0x7a5   : > { %v3288_v55 = vcombine.high %v1184_v50, %v1188_v51 }
 0x7a6   : > { %v3720_v56 = vpop.f32.mrf.mxu1 }
 0x80d   : > { %v1042_v57 = vpop.xlane.xlu1 %1041 }
 0x80e   : > { %3905 = vrcp.f32 %v1042_v57  ;;  %v1639_v57 = vld [vmem:[%s4774_s7 + $0xa0] sm:$0xff] }
 0x81b   : > { %v3906_v58 = vpop.eup %3905 }
 0x81c   : > { %v1044_v59 = vmul.f32 %v3906_v58, %v3904_v1  ;;  %v1643_v58 = vld [vmem:[%s4774_s7 + $0xe0] sm:$0xff] }
 0x81e   : > { %v1045_v60 = vpack.c.bf16 %v1044_v59, %v1044_v59  ;;  %v1640_v59 = vld [vmem:[%s4774_s7 + $0xa8] sm:$0xff] }
 0x820   : > { %3730 = vmatmul.mubr.msk.bf16.vlgmr.msra.gmra.mxu1 %vm514_vm2, %v1045_v60  ;;  %v1644_v60 = vld [vmem:[%s4774_s7 + $0xe8] sm:$0xff] }
 0x821   : > { %1336 = vmatpush1.bf16.msra.mxu1 %v3291_v23  ;;  %1355 = vmatprep.mubr.bf16.mxu1 %v3932_v37 }
 0x822   : > { %1337 = vmatprep.subr.bf16.mxu1 %v3284_v29  ;;  %v3763_v29 = vld [vmem:[%s4776_s9 + $0x278] sm:$0xff]  }
 0x825   : > { %1338 = vmatpush1.bf16.msra.mxu1 %v3283_v31  ;;  %v3765_v31 = vld [vmem:[%s4776_s9 + $0x238] sm:$0xff]  }
 0x826   : > { %1417 = vmatprep.subr.bf16.mxu1 %v3296_v38  ;;  %v3771_v38 = vld [vmem:[%s4776_s9 + $0x268] sm:$0xff]  }
 0x8e0   : > { %v1088_v61 = vpop.f32.mrf.mxu1 }
 0x8e1   : > { %v1094_v62 = vpack.c.bf16 %v1088_v61, %v1088_v61  ;;  %v3287_v61 = vcombine.low %v1184_v50, %v1188_v51  ;;  %v3780_v50 = vld [vmem:[%s4776_s9 + $0x2d8] sm:$0xff]  }
 0x8e2   : > { %v3731_v63 = vpop.f32.mrf.mxu1  ;;  %v3781_v51 = vld [vmem:[%s4776_s9 + $0x218] sm:$0xff]  }
 0x8e3   : > { %3736 = vmatmul.mubr.msk.bf16.vlgmr.msra.gmra.mxu0 %vm514_vm2, %v1094_v62  ;;  %v3312_v63 = vcombine.high %v1639_v57, %v1643_v58 }
 0x8e4   : > { %v1091_v0 = vpop.f32.mrf.mxu1  ;;  %1396 = vmatprep.mubr.bf16.mxu0 %v3932_v37 }
 0x8e5   : > { %v3314_v0 = vcombine.high %v1640_v59, %v1644_v60 }
 0x8e6   : > { %v3732_v2 = vpop.f32.mrf.mxu1 }
 0x8e7   : > { %v1631_v2 = vld [vmem:[%s4774_s7 + $0x20] sm:$0xff] }
 0x9a3   : > { %v1135_v4 = vpop.f32.mrf.mxu0 }
 0x9a4   : > { %v1141_v6 = vadd.f32 %v1135_v4, %v983_v53  ;;  %v1189_v53 = vld [vmem:[%s4774_s7 + $0x58] sm:$0xff]  ;;  %v1635_v4 = vld [vmem:[%s4774_s7 + $0x60] sm:$0xff] }
 0x9a5   : > { %v3737_v7 = vpop.f32.mrf.mxu0  ;;  %v3290_v56 = vcombine.high %v1185_v52, %v1189_v53  ;;  %v3289_v62 = vcombine.low %v1185_v52, %v1189_v53  ;;  %v3782_v52 = vld [vmem:[%s4776_s9 + $0x298] sm:$0xff]   ;;  %v3783_v53 = vld [vmem:[%s4776_s9 + $0x250] sm:$0xff]  }
 0x9a6   : > { %v1149_v8 = vadd.f32 %v3280_v5, %v1141_v6  ;;  %v1632_v5 = vld [vmem:[%s4774_s7 + $0x28] sm:$0xff]  ;;  %v3311_v7 = vcombine.low %v1639_v57, %v1643_v58 }
 0x9a7   : > { %v1138_v10 = vpop.f32.mrf.mxu0  ;;  %v1636_v6 = vld [vmem:[%s4774_s7 + $0x68] sm:$0xff] }
 0x9a8   : > { %v1150_v11 = vadd.f32 %v1149_v8, %v4033_v3  ;;  %v1191_v3 = vld [vmem:[%s4774_s7 + $0x88] sm:$0xff]  ;;  %v3313_v8 = vcombine.low %v1640_v59, %v1644_v60  ;;  %v3304_v10 = vcombine.high %v1631_v2, %v1635_v4 }
 0x9a9   : > { %v3738_v12 = vpop.f32.mrf.mxu0  ;;  %v3293_v24 = vcombine.low %v1191_v3, %v1195_v22  ;;  %v3294_v25 = vcombine.high %v1191_v3, %v1195_v22  ;;  %v1637_v3 = vld [vmem:[%s4774_s7 + $0x70] sm:$0xff]  ;;  %v1638_v22 = vld [vmem:[%s4774_s7 + $0x78] sm:$0xff]  ;;  %v3787_v57 = vld [vmem:[%s4776_s9 + $0x248] sm:$0xff]  }
 0x9aa   : > { %v1153_v13 = vsel %vm462_vm1, %v1150_v11, 0.0  ;;  %v1641_v12 = vld [vmem:[%s4774_s7 + $0xb0] sm:$0xff]  ;;  %v3310_v26 = vcombine.high %v1634_v21, %v1638_v22  ;;  %v3307_v27 = vcombine.low %v1633_v20, %v1637_v3  ;;  %v3309_v28 = vcombine.low %v1634_v21, %v1638_v22  ;;  %v3788_v58 = vld [vmem:[%s4776_s9 + $0x2c8] sm:$0xff]  }
 0x9ab   : > { %1154 = vadd.xlane.f32.xlu1 %v1153_v13  ;;  %1376 = vmatprep.subr.bf16.mxu0 %v3294_v25  ;;  %v1645_v13 = vld [vmem:[%s4774_s7 + $0xf0] sm:$0xff]  ;;  %v3308_v25 = vcombine.high %v1633_v20, %v1637_v3  ;;  %v3789_v59 = vld [vmem:[%s4776_s9 + $0x208] sm:$0xff]  }
 0x9ac   : > { %1377 = vmatpush1.bf16.msra.mxu0 %v3293_v24  ;;  %v3315_v23 = vcombine.low %v1641_v12, %v1645_v13  ;;  %v3790_v60 = vld [vmem:[%s4776_s9 + $0x288] sm:$0xff]  }
 0x9ad   : > { %1378 = vmatprep.subr.bf16.mxu0 %v3286_v33  ;;  %v3767_v33 = vld [vmem:[%s4776_s9 + $0x270] sm:$0xff]  }
 0x9b0   : > { %1379 = vmatpush1.bf16.msra.mxu0 %v3285_v32  ;;  %v3766_v32 = vld [vmem:[%s4776_s9 + $0x2b8] sm:$0xff]  }
 0x9b1   : > { %1458 = vmatprep.subr.bf16.mxu0 %v3298_v42 }
 0xa34   : > { %v1155_v14 = vpop.xlane.xlu1 %1154 }
 0xa35   : > { %v1157_v15 = vmul.f32 0.03125, %v1155_v14  ;;  %v1642_v14 = vld [vmem:[%s4774_s7 + $0xb8] sm:$0xff] }
 0xa37   : > { %v1158_v16 = vsub.f32 %v1150_v11, %v1157_v15  ;;  %v3306_v11 = vcombine.high %v1632_v5, %v1636_v6  ;;  %v1646_v15 = vld [vmem:[%s4774_s7 + $0xf8] sm:$0xff] }
 0xa38   : > { %v3318_v19 = vcombine.high %v1642_v14, %v1646_v15  ;;  %v3317_v24 = vcombine.low %v1642_v14, %v1646_v15 }
 0xa39   : > { %v1159_v17 = vmul.f32 %v1158_v16, %v1158_v16 }
 0xa3b   : > { %v1160_v18 = vsel %vm462_vm1, %v1159_v17, 0.0  ;;  %v3305_v17 = vcombine.low %v1632_v5, %v1636_v6 }
 0xa3c   : > { %1161 = vadd.xlane.f32.xlu1 %v1160_v18  ;;  %v3316_v18 = vcombine.high %v1641_v12, %v1645_v13 }
 0xac5   : > { %v1162_v43 = vpop.xlane.xlu1 %1161 }
 0xac6   : > { %v1163_v44 = vmul.f32 0.03125, %v1162_v43  ;;  %v3775_v43 = vld [vmem:[%s4776_s9 + $0x260] sm:$0xff]  }
 0xac8   : > { %v1164_v45 = vadd.f32 1e-05, %v1163_v44  ;;  %v3776_v44 = vld [vmem:[%s4776_s9 + $0x2e0] sm:$0xff]  }
 0xaca   : > { %3907 = vrsqrt.f32 %v1164_v45  ;;  %v3777_v45 = vld [vmem:[%s4776_s9 + $0x220] sm:$0xff]  }
 0xad7   : > { %v3908_v46 = vpop.eup %3907 }
 0xad8   : > { %v1166_v48 = vmul.f32 %v3908_v46, %v1158_v16  ;;  %v3303_v16 = vcombine.low %v1631_v2, %v1635_v4  ;;  %v3778_v46 = vld [vmem:[%s4776_s9 + $0x2a0] sm:$0xff]   ;;  %v3795_v2 = vld [vmem:[%s4776_s9 + $0x378] sm:$0xff]  }
 0xad9   : > { %v3796_v4 = vld [vmem:[%s4776_s9 + $0x3f8] sm:$0xff]  }
 0xada   : > { %v1173_v1 = vmul.f32 %v3281_v47, %v1166_v48  ;;  %v4326_v48 = vld [vmem:[%s4775_s8] sm:$0xff] }
 0xadc   : > { %v4196_v9 = vadd.f32 %v3282_v49, %v1173_v1  ;;  %v3779_v1 = vld [vmem:[%s4776_s9 + $0x258] sm:$0xff]  }
 0xade   : > { %v4200_v54 = vpack.c.bf16 %v4196_v9, %v4196_v9 }
 0xae0   : > { %3299 = vmatmul.mubr.msk.bf16.vlgmr.msra.gmra.mxu1 %vm462_vm1, %v4200_v54  ;;  %3300 = vmatmul.mubr.msk.bf16.vlgmr.msra.gmra.mxu0 %vm462_vm1, %v4200_v54 }
 0xae1   : > { %1418 = vmatpush1.bf16.msra.mxu1 %v3295_v40  ;;  %1459 = vmatpush1.bf16.msra.mxu0 %v3297_v41  ;;  %v3773_v40 = vld [vmem:[%s4776_s9 + $0x228] sm:$0xff]  }
 0xae2   : > { %1419 = vmatprep.subr.bf16.mxu1 %v3288_v55  ;;  %1460 = vmatprep.subr.bf16.mxu0 %v3290_v56  ;;  %v3774_v41 = vld [vmem:[%s4776_s9 + $0x2a8] sm:$0xff]   ;;  %v3785_v55 = vld [vmem:[%s4776_s9 + $0x210] sm:$0xff]  }
 0xae3   : > { %1437 = vmatprep.mubr.bf16.mxu1 %v3932_v37  ;;  %1478 = vmatprep.mubr.bf16.mxu0 %v3932_v37  ;;  %v3786_v56 = vld [vmem:[%s4776_s9 + $0x290] sm:$0xff]  }
 0xae5   : > { %1420 = vmatpush1.bf16.msra.mxu1 %v3287_v61  ;;  %1461 = vmatpush1.bf16.msra.mxu0 %v3289_v62  ;;  %v3791_v61 = vld [vmem:[%s4776_s9 + $0x240] sm:$0xff]  }
 0xae6   : > { %1781 = vmatprep.subr.bf16.mxu1 %v3312_v63  ;;  %1822 = vmatprep.subr.bf16.mxu0 %v3314_v0  ;;  %v3792_v62 = vld [vmem:[%s4776_s9 + $0x2c0] sm:$0xff]  }
 0xae7   : > { %v3793_v63 = vld [vmem:[%s4776_s9 + $0x200] sm:$0xff]  }
 0xae8   : > { %3301 = vmatmul.mubr.msk.bf16.vlgmr.msra.gmra.mxu1 %vm462_vm1, %v4200_v54  ;;  %3302 = vmatmul.mubr.msk.bf16.vlgmr.msra.gmra.mxu0 %vm462_vm1, %v4200_v54  ;;  %v3794_v0 = vld [vmem:[%s4776_s9 + $0x280] sm:$0xff]  }
 0xae9   : > { %1782 = vmatpush1.bf16.msra.mxu1 %v3311_v7  ;;  %1823 = vmatpush1.bf16.msra.mxu0 %v3313_v8 }
 0xaea   : > { %1783 = vmatprep.subr.bf16.mxu1 %v3304_v10  ;;  %1824 = vmatprep.subr.bf16.mxu0 %v3306_v11 }
 0xaeb   : > { %1801 = vmatprep.mubr.bf16.mxu1 %v3932_v37  ;;  %1842 = vmatprep.mubr.bf16.mxu0 %v3932_v37 }
 0xaed   : > { %1784 = vmatpush1.bf16.msra.mxu1 %v3303_v16  ;;  %1825 = vmatpush1.bf16.msra.mxu0 %v3305_v17 }
 0xaee   : > { %1863 = vmatprep.subr.bf16.mxu1 %v3316_v18  ;;  %1904 = vmatprep.subr.bf16.mxu0 %v3318_v19 }
 0xaf0   : > { %3319 = vmatmul.mubr.msk.bf16.vlgmr.msra.gmra.mxu1 %vm462_vm1, %v4200_v54  ;;  %3320 = vmatmul.mubr.msk.bf16.vlgmr.msra.gmra.mxu0 %vm462_vm1, %v4200_v54 }
 0xaf1   : > { %1864 = vmatpush1.bf16.msra.mxu1 %v3315_v23  ;;  %1905 = vmatpush1.bf16.msra.mxu0 %v3317_v24 }
 0xaf2   : > { %1865 = vmatprep.subr.bf16.mxu1 %v3308_v25  ;;  %1906 = vmatprep.subr.bf16.mxu0 %v3310_v26 }
 0xaf3   : > { %1883 = vmatprep.mubr.bf16.mxu1 %v3932_v37  ;;  %1924 = vmatprep.mubr.bf16.mxu0 %v3932_v37  ;;  %v1200_v37 = vlaneseq }
 0xaf5   : > { %1866 = vmatpush1.bf16.msra.mxu1 %v3307_v27  ;;  %1907 = vmatpush1.bf16.msra.mxu0 %v3309_v28  ;;  %v4308_v42 = vshrl.u32 %v1200_v37, 7  ;;  %v4412_v27 = vld [vmem:[%s4775_s8 + $0x8] sm:$0xff] }
 0xaf6   : > { %3483 = vmatprep.subr.bf16.mxu1 %v3763_v29  ;;  %3505 = vmatprep.subr.bf16.mxu0 %v3764_v30 }
 0xaf7   : > { %v1226_v47 = vsub.s32 6, %v4308_v42  ;;  %v1202_v5 = vsub.s32 0, %v4308_v42  ;;  %v1210_v6 = vsub.s32 2, %v4308_v42  ;;  %v1218_v14 = vsub.s32 4, %v4308_v42 }
 0xaf8   : > { %3321 = vmatmul.mubr.msk.bf16.vlgmr.msra.gmra.mxu1 %vm462_vm1, %v4200_v54  ;;  %3322 = vmatmul.mubr.msk.bf16.vlgmr.msra.gmra.mxu0 %vm462_vm1, %v4200_v54  ;;  %v3784_v54 = vld [vmem:[%s4776_s9 + $0x2d0] sm:$0xff]   ;;  %v1206_v30 = vsub.s32 1, %v4308_v42 }
 0xaf9   : > { %3484 = vmatpush3.bf16.msra.mxu1 %v3765_v31  ;;  %3506 = vmatpush3.bf16.msra.mxu0 %v3766_v32  ;;  %v1227_v49 = vrot.slane %v4326_v48, %v1226_v47  ;;  %v1203_v7 = vrot.slane %v4326_v48, %v1202_v5  ;;  %v1211_v8 = vrot.slane %v4326_v48, %v1210_v6  ;;  %v1214_v31 = vsub.s32 3, %v4308_v42 }
 0xafa   : > { %3485 = vmatprep.subr.bf16.mxu1 %v3767_v33  ;;  %3507 = vmatprep.subr.bf16.mxu0 %v3768_v34  ;;  %v1219_v19 = vrot.slane %v4326_v48, %v1218_v14  ;;  %v1652_v32 = vrot.slane %v4412_v27, %v1202_v5  ;;  %v1660_v33 = vrot.slane %v4412_v27, %v1210_v6  ;;  %v3799_v6 = vld [vmem:[%s4776_s9 + $0x370] sm:$0xff]  }
 0xafb   : > { %v1664_v37 = vrot.slane %v4412_v27, %v1214_v31 }
 0xafd   : > { %3486 = vmatpush3.bf16.msra.mxu1 %v3769_v35  ;;  %3508 = vmatpush3.bf16.msra.mxu0 %v3770_v36  ;;  %v1656_v36 = vrot.slane %v4412_v27, %v1206_v30 }
 0xafe   : > { %3487 = vmatprep.subr.bf16.mxu1 %v3771_v38  ;;  %3509 = vmatprep.subr.bf16.mxu0 %v3772_v39 }
 0xb01   : > { %3488 = vmatpush3.bf16.msra.mxu1 %v3773_v40  ;;  %3510 = vmatpush3.bf16.msra.mxu0 %v3774_v41 }
 0xb02   : > { %3489 = vmatprep.subr.bf16.mxu1 %v3775_v43  ;;  %3511 = vmatprep.subr.bf16.mxu0 %v3776_v44 }
 0xb05   : > { %3490 = vmatpush3.bf16.msra.mxu1 %v3777_v45  ;;  %3512 = vmatpush3.bf16.msra.mxu0 %v3778_v46 }
 0xb06   : > { %3491 = vmatprep.subr.bf16.mxu1 %v3779_v1  ;;  %3513 = vmatprep.subr.bf16.mxu0 %v3780_v50 }
 0xb09   : > { %3492 = vmatpush3.bf16.msra.mxu1 %v3781_v51  ;;  %3514 = vmatpush3.bf16.msra.mxu0 %v3782_v52  ;;  %v1222_v52 = vsub.s32 5, %v4308_v42 }
 0xb0a   : > { %3493 = vmatprep.subr.bf16.mxu1 %v3783_v53  ;;  %3515 = vmatprep.subr.bf16.mxu0 %v3784_v54  ;;  %v1230_v53 = vsub.s32 7, %v4308_v42  ;;  %v3856_v42 = vld [vmem:[%s4776_s9 + $0xc0] sm:$0xff]  }
 0xb0d   : > { %3494 = vmatpush3.bf16.msra.mxu1 %v3785_v55  ;;  %3516 = vmatpush3.bf16.msra.mxu0 %v3786_v56 }
 0xb0e   : > { %3495 = vmatprep.subr.bf16.mxu1 %v3787_v57  ;;  %3517 = vmatprep.subr.bf16.mxu0 %v3788_v58 }
 0xb11   : > { %3496 = vmatpush3.bf16.msra.mxu1 %v3789_v59  ;;  %3518 = vmatpush3.bf16.msra.mxu0 %v3790_v60  ;;  %v1672_v60 = vrot.slane %v4412_v27, %v1222_v52 }
 0xb12   : > { %3497 = vmatprep.subr.bf16.mxu1 %v3791_v61  ;;  %3519 = vmatprep.subr.bf16.mxu0 %v3792_v62  ;;  %v1680_v61 = vrot.slane %v4412_v27, %v1230_v53  ;;  %v3797_v62 = vld [vmem:[%s4776_s9 + $0x338] sm:$0xff]  }
 0xb15   : > { %3498 = vmatpush3.bf16.msra.mxu1 %v3793_v63  ;;  %3520 = vmatpush3.bf16.msra.mxu0 %v3794_v0  ;;  %v3798_v63 = vld [vmem:[%s4776_s9 + $0x3b8] sm:$0xff]  }
 0xb16   : > { %3527 = vmatprep.subr.bf16.mxu1 %v3795_v2  ;;  %3549 = vmatprep.subr.bf16.mxu0 %v3796_v4 }
 0xba0   : > { %v1357_v10 = vpop.f32.mrf.mxu1  ;;  %v1398_v11 = vpop.f32.mrf.mxu0 }
 0xba1   : > { %v4389_v12 = vadd.f32 %v1357_v10, %v1203_v7  ;;  %v4391_v13 = vadd.f32 %v1398_v11, %v1211_v8  ;;  %v3800_v7 = vld [vmem:[%s4776_s9 + $0x3f0] sm:$0xff]  }
 0xba2   : > { %v4394_v15 = vpop.f32.mrf.mxu1  ;;  %v4396_v16 = vpop.f32.mrf.mxu0 }
 0xba4   : > { %v1361_v17 = vpop.f32.mrf.mxu1  ;;  %v1402_v18 = vpop.f32.mrf.mxu0 }
 0xba5   : > { %v3801_v18 = vld [vmem:[%s4776_s9 + $0x330] sm:$0xff]  }
 0xba6   : > { %v1362_v20 = vpop.f32.mrf.mxu1  ;;  %v1403_v3 = vpop.f32.mrf.mxu0 }
 0xba8   : > { %v1439_v21 = vpop.f32.mrf.mxu1  ;;  %v1480_v22 = vpop.f32.mrf.mxu0 }
 0xba9   : > { %v4401_v23 = vadd.f32 %v1439_v21, %v1219_v19  ;;  %v4403_v24 = vadd.f32 %v1480_v22, %v1227_v49  ;;  %v3802_v19 = vld [vmem:[%s4776_s9 + $0x3b0] sm:$0xff]   ;;  %v3803_v21 = vld [vmem:[%s4776_s9 + $0x368] sm:$0xff]  }
 0xbaa   : > { %v4405_v25 = vpop.f32.mrf.mxu1  ;;  %v4407_v26 = vpop.f32.mrf.mxu0  ;;  %v3804_v22 = vld [vmem:[%s4776_s9 + $0x3e8] sm:$0xff]  }
 0xbac   : > { %v1443_v28 = vpop.f32.mrf.mxu1  ;;  %v1484_v29 = vpop.f32.mrf.mxu0 }
 0xbae   : > { %v1444_v34 = vpop.f32.mrf.mxu1  ;;  %v1485_v35 = vpop.f32.mrf.mxu0 }
 0xbb0   : > { %v1803_v38 = vpop.f32.mrf.mxu1  ;;  %v1844_v39 = vpop.f32.mrf.mxu0 }
 0xbb1   : > { %v1804_v40 = vadd.f32 %v1803_v38, %v1652_v32  ;;  %v1845_v41 = vadd.f32 %v1844_v39, %v1660_v33  ;;  %v3807_v38 = vld [vmem:[%s4776_s9 + $0x360] sm:$0xff]  }
 0xbb2   : > { %v1805_v43 = vpop.f32.mrf.mxu1  ;;  %v1846_v44 = vpop.f32.mrf.mxu0  ;;  %v3808_v39 = vld [vmem:[%s4776_s9 + $0x3e0] sm:$0xff]  }
 0xbb3   : > { %v1806_v45 = vadd.f32 %v1805_v43, %v1656_v36  ;;  %v1847_v46 = vadd.f32 %v1846_v44, %v1664_v37  ;;  %v1933_v49 = vmax.f32 %v1804_v40, 0.0  ;;  %v1935_v1 = vmax.f32 %v1845_v41, 0.0  ;;  %v3805_v36 = vld [vmem:[%s4776_s9 + $0x328] sm:$0xff]   ;;  %v3809_v40 = vld [vmem:[%s4776_s9 + $0x320] sm:$0xff]   ;;  %v3811_v43 = vld [vmem:[%s4776_s9 + $0x358] sm:$0xff]  }
 0xbb4   : > { %v1807_v50 = vpop.f32.mrf.mxu1  ;;  %v1848_v51 = vpop.f32.mrf.mxu0  ;;  %v3806_v37 = vld [vmem:[%s4776_s9 + $0x3a8] sm:$0xff]   ;;  %v3810_v41 = vld [vmem:[%s4776_s9 + $0x3a0] sm:$0xff]   ;;  %v3812_v44 = vld [vmem:[%s4776_s9 + $0x3d8] sm:$0xff]  }
 0xbb5   : > { %v1934_v54 = vmax.f32 %v1806_v45, 0.0  ;;  %v1936_v55 = vmax.f32 %v1847_v46, 0.0  ;;  %v1941_v0 = vpack.c.bf16 %v1933_v49, %v1933_v49  ;;  %v1943_v2 = vpack.c.bf16 %v1935_v1, %v1935_v1  ;;  %v3813_v45 = vld [vmem:[%s4776_s9 + $0x318] sm:$0xff]   ;;  %v3815_v49 = vld [vmem:[%s4776_s9 + $0x350] sm:$0xff]  }
 0xbb6   : > { %v1808_v56 = vpop.f32.mrf.mxu1  ;;  %v1849_v57 = vpop.f32.mrf.mxu0  ;;  %v3814_v46 = vld [vmem:[%s4776_s9 + $0x398] sm:$0xff]   ;;  %v3816_v1 = vld [vmem:[%s4776_s9 + $0x3d0] sm:$0xff]  }
 0xbb7   : > { %v1942_v58 = vpack.c.bf16 %v1934_v54, %v1934_v54  ;;  %v1944_v59 = vpack.c.bf16 %v1936_v55, %v1936_v55  ;;  %v3817_v50 = vld [vmem:[%s4776_s9 + $0x310] sm:$0xff]   ;;  %v1668_v54 = vrot.slane %v4412_v27, %v1218_v14  ;;  %v1676_v55 = vrot.slane %v4412_v27, %v1226_v47  ;;  %v3819_v56 = vld [vmem:[%s4776_s9 + $0x348] sm:$0xff]  }
 0xbb8   : > { %v4438_v4 = vpop.f32.mrf.mxu1  ;;  %v4440_v5 = vpop.f32.mrf.mxu0  ;;  %v3818_v51 = vld [vmem:[%s4776_s9 + $0x390] sm:$0xff]   ;;  %v3820_v57 = vld [vmem:[%s4776_s9 + $0x3c8] sm:$0xff]   ;;  %v1215_v14 = vrot.slane %v4326_v48, %v1214_v31  ;;  %v3824_v31 = vld [vmem:[%s4776_s9 + $0x3c0] sm:$0xff]  }
 0xbb9   : > { %2493 = vmatprep.mubr.bf16.mxu1 %v1942_v58  ;;  %2533 = vmatprep.mubr.bf16.mxu0 %v1944_v59  ;;  %v1207_v58 = vrot.slane %v4326_v48, %v1206_v30  ;;  %v3821_v47 = vld [vmem:[%s4776_s9 + $0x308] sm:$0xff]   ;;  %v1886_v59 = vadd.f32 %v4438_v4, %v1668_v54  ;;  %v3823_v30 = vld [vmem:[%s4776_s9 + $0x340] sm:$0xff]  }
 0xbba   : > { %v1887_v8 = vpop.f32.mrf.mxu1  ;;  %v1928_v10 = vpop.f32.mrf.mxu0  ;;  %2494 = vmatmul.mubr.bf16.vlgmr.msra.gmra.mxu1 %v1941_v0  ;;  %2534 = vmatmul.mubr.bf16.vlgmr.msra.gmra.mxu0 %v1943_v2  ;;  %v3822_v27 = vld [vmem:[%s4776_s9 + $0x388] sm:$0xff]   ;;  %v3826_v0 = vld [vmem:[%s4776_s9 + $0x380] sm:$0xff]  }
 0xbbb   : > { %v1888_v11 = vadd.f32 %v1887_v8, %v1672_v60  ;;  %v1929_v17 = vadd.f32 %v1928_v10, %v1680_v61  ;;  %3528 = vmatpush3.bf16.msra.mxu1 %v3797_v62  ;;  %3550 = vmatpush3.bf16.msra.mxu0 %v3798_v63  ;;  %v1927_v60 = vadd.f32 %v4440_v5, %v1676_v55  ;;  %v3825_v63 = vld [vmem:[%s4776_s9 + $0x300] sm:$0xff]   ;;  %v1937_v2 = vmax.f32 %v1886_v59, 0.0  ;;  %v3854_v54 = vld [vmem:[%s4776_s9 + $0x88] sm:$0xff]   ;;  %v3862_v59 = vld [vmem:[%s4776_s9 + $0x1b8] sm:$0xff]  }
 0xbbc   : > { %v1889_v20 = vpop.f32.mrf.mxu1  ;;  %v1930_v3 = vpop.f32.mrf.mxu0  ;;  %3529 = vmatprep.subr.bf16.mxu1 %v3799_v6  ;;  %3551 = vmatprep.subr.bf16.mxu0 %v3800_v7  ;;  %v1360_v61 = vadd.f32 %v4394_v15, %v1207_v58  ;;  %v1401_v62 = vadd.f32 %v4396_v16, %v1215_v14  ;;  %v3827_v15 = vld [vmem:[%s4776_s9 + $0x78] sm:$0xff]   ;;  %v3855_v55 = vld [vmem:[%s4776_s9 + $0x40] sm:$0xff]  }
 0xbbd   : > { %v1938_v28 = vmax.f32 %v1888_v11, 0.0  ;;  %v1940_v29 = vmax.f32 %v1929_v17, 0.0  ;;  %v1939_v4 = vmax.f32 %v1927_v60, 0.0  ;;  %v3828_v16 = vld [vmem:[%s4776_s9 + $0xf8] sm:$0xff]   ;;  %v1945_v8 = vpack.c.bf16 %v1937_v2, %v1937_v2  ;;  %v3833_v3 = vld [vmem:[%s4776_s9 + $0x30] sm:$0xff]   ;;  %v3868_v2 = vld [vmem:[%s4776_s9 + $0x1e8] sm:$0xff]  }
 0xbbe   : > { %v1890_v32 = vpop.f32.mrf.mxu1  ;;  %v1931_v33 = vpop.f32.mrf.mxu0  ;;  %v1488_v5 = vmax.f32 %v1360_v61, 0.0  ;;  %v1490_v6 = vmax.f32 %v1401_v62, 0.0  ;;  %v3829_v7 = vld [vmem:[%s4776_s9 + $0x38] sm:$0xff]   ;;  %v3863_v60 = vld [vmem:[%s4776_s9 + $0x170] sm:$0xff]  }
 0xbbf   : > { %v1946_v34 = vpack.c.bf16 %v1938_v28, %v1938_v28  ;;  %v1948_v35 = vpack.c.bf16 %v1940_v29, %v1940_v29  ;;  %3530 = vmatpush3.bf16.msra.mxu1 %v3801_v18  ;;  %3552 = vmatpush3.bf16.msra.mxu0 %v3802_v19  ;;  %v1947_v10 = vpack.c.bf16 %v1939_v4, %v1939_v4  ;;  %v3830_v11 = vld [vmem:[%s4776_s9 + $0xb8] sm:$0xff]   ;;  %v3831_v18 = vld [vmem:[%s4776_s9 + $0x70] sm:$0xff]   ;;  %v3836_v28 = vld [vmem:[%s4776_s9 + $0xe8] sm:$0xff]  }
 0xbc0   : > { %3531 = vmatprep.subr.bf16.mxu1 %v3803_v21  ;;  %3553 = vmatprep.subr.bf16.mxu0 %v3804_v22  ;;  %v1496_v17 = vpack.c.bf16 %v1488_v5, %v1488_v5  ;;  %v3832_v19 = vld [vmem:[%s4776_s9 + $0xf0] sm:$0xff]   ;;  %v1498_v20 = vpack.c.bf16 %v1490_v6, %v1490_v6  ;;  %v3835_v22 = vld [vmem:[%s4776_s9 + $0x68] sm:$0xff]   ;;  %v3839_v33 = vld [vmem:[%s4776_s9 + $0x60] sm:$0xff]  }
 0xbc1   : > { %2573 = vmatprep.mubr.bf16.mxu1 %v1946_v34  ;;  %2613 = vmatprep.mubr.bf16.mxu0 %v1948_v35  ;;  %v3834_v21 = vld [vmem:[%s4776_s9 + $0xb0] sm:$0xff]   ;;  %v3837_v29 = vld [vmem:[%s4776_s9 + $0x28] sm:$0xff]   ;;  %v3840_v34 = vld [vmem:[%s4776_s9 + $0xe0] sm:$0xff]  }
 0xbc2   : > { %v3838_v32 = vld [vmem:[%s4776_s9 + $0xa8] sm:$0xff]   ;;  %v3841_v35 = vld [vmem:[%s4776_s9 + $0x20] sm:$0xff]   ;;  %v3859_v58 = vld [vmem:[%s4776_s9 + $0x178] sm:$0xff]  }
 0xbc3   : > { %3532 = vmatpush3.bf16.msra.mxu1 %v3805_v36  ;;  %3554 = vmatpush3.bf16.msra.mxu0 %v3806_v37  ;;  %v3842_v36 = vld [vmem:[%s4776_s9 + $0xa0] sm:$0xff]   ;;  %v3843_v37 = vld [vmem:[%s4776_s9 + $0x58] sm:$0xff]   ;;  %v3865_v62 = vld [vmem:[%s4776_s9 + $0x130] sm:$0xff]  }
 0xbc4   : > { %3533 = vmatprep.subr.bf16.mxu1 %v3807_v38  ;;  %3555 = vmatprep.subr.bf16.mxu0 %v3808_v39  ;;  %v3844_v38 = vld [vmem:[%s4776_s9 + $0xd8] sm:$0xff]   ;;  %v3869_v4 = vld [vmem:[%s4776_s9 + $0x128] sm:$0xff]   ;;  %v3872_v5 = vld [vmem:[%s4776_s9 + $0x1e0] sm:$0xff]  }
 0xbc5   : > { %v3845_v39 = vld [vmem:[%s4776_s9 + $0x18] sm:$0xff]   ;;  %v3873_v6 = vld [vmem:[%s4776_s9 + $0x120] sm:$0xff]  }
 0xbc7   : > { %3534 = vmatpush3.bf16.msra.mxu1 %v3809_v40  ;;  %3556 = vmatpush3.bf16.msra.mxu0 %v3810_v41  ;;  %v3846_v40 = vld [vmem:[%s4776_s9 + $0x98] sm:$0xff]   ;;  %v3847_v41 = vld [vmem:[%s4776_s9 + $0x50] sm:$0xff]  }
 0xbc8   : > { %3535 = vmatprep.subr.bf16.mxu1 %v3811_v43  ;;  %3557 = vmatprep.subr.bf16.mxu0 %v3812_v44  ;;  %v3848_v43 = vld [vmem:[%s4776_s9 + $0xd0] sm:$0xff]  }
 0xbc9   : > { %v3849_v44 = vld [vmem:[%s4776_s9 + $0x10] sm:$0xff]  }
 0xbcb   : > { %3536 = vmatpush3.bf16.msra.mxu1 %v3813_v45  ;;  %3558 = vmatpush3.bf16.msra.mxu0 %v3814_v46  ;;  %v3850_v45 = vld [vmem:[%s4776_s9 + $0x90] sm:$0xff]   ;;  %v3851_v46 = vld [vmem:[%s4776_s9 + $0x48] sm:$0xff]  }
 0xbcc   : > { %3537 = vmatprep.subr.bf16.mxu1 %v3815_v49  ;;  %3559 = vmatprep.subr.bf16.mxu0 %v3816_v1  ;;  %v3852_v49 = vld [vmem:[%s4776_s9 + $0xc8] sm:$0xff]   ;;  %v1223_v1 = vrot.slane %v4326_v48, %v1222_v52 }
 0xbcf   : > { %3538 = vmatpush3.bf16.msra.mxu1 %v3817_v50  ;;  %3560 = vmatpush3.bf16.msra.mxu0 %v3818_v51  ;;  %v1231_v50 = vrot.slane %v4326_v48, %v1230_v53  ;;  %v3853_v51 = vld [vmem:[%s4776_s9 + $0x8] sm:$0xff]   ;;  %v1442_v48 = vadd.f32 %v4405_v25, %v1223_v1  ;;  %v3857_v53 = vld [vmem:[%s4776_s9] sm:$0xff]   ;;  %v1489_v25 = vmax.f32 %v4391_v13, 0.0 }
 0xbd0   : > { %3539 = vmatprep.subr.bf16.mxu1 %v3819_v56  ;;  %3561 = vmatprep.subr.bf16.mxu0 %v3820_v57  ;;  %v1487_v56 = vmax.f32 %v4389_v12, 0.0  ;;  %v3858_v57 = vld [vmem:[%s4776_s9 + $0x80] sm:$0xff]   ;;  %v3861_v12 = vld [vmem:[%s4776_s9 + $0x138] sm:$0xff]  }
 0xbd1   : > { %v1483_v52 = vadd.f32 %v4407_v26, %v1231_v50  ;;  %v3860_v26 = vld [vmem:[%s4776_s9 + $0x1f8] sm:$0xff]   ;;  %v1492_v14 = vmax.f32 %v1442_v48, 0.0  ;;  %v1497_v13 = vpack.c.bf16 %v1489_v25, %v1489_v25 }
 0xbd3   : > { %3540 = vmatpush3.bf16.msra.mxu1 %v3821_v47  ;;  %3562 = vmatpush3.bf16.msra.mxu0 %v3822_v27  ;;  %v1494_v47 = vmax.f32 %v1483_v52, 0.0  ;;  %v1495_v27 = vpack.c.bf16 %v1487_v56, %v1487_v56 }
 0xbd4   : > { %3541 = vmatprep.subr.bf16.mxu1 %v3823_v30  ;;  %3563 = vmatprep.subr.bf16.mxu0 %v3824_v31  ;;  %v1500_v30 = vpack.c.bf16 %v1492_v14, %v1492_v14  ;;  %v3864_v31 = vld [vmem:[%s4776_s9 + $0x1f0] sm:$0xff]  }
 0xbd5   : > { %v1502_v61 = vpack.c.bf16 %v1494_v47, %v1494_v47 }
 0xbd7   : > { %3542 = vmatpush3.bf16.msra.mxu1 %v3825_v63  ;;  %3564 = vmatpush3.bf16.msra.mxu0 %v3826_v0  ;;  %v3866_v63 = vld [vmem:[%s4776_s9 + $0x1b0] sm:$0xff]   ;;  %v3867_v0 = vld [vmem:[%s4776_s9 + $0x168] sm:$0xff]  }
 0xbd8   : > { %3571 = vmatprep.subr.bf16.mxu1 %v3827_v15  ;;  %3593 = vmatprep.subr.bf16.mxu0 %v3828_v16  ;;  %v3870_v15 = vld [vmem:[%s4776_s9 + $0x1a8] sm:$0xff]   ;;  %v3871_v16 = vld [vmem:[%s4776_s9 + $0x160] sm:$0xff]  }
 0xbda   : > { %2574 = vmatmul.mubr.bf16.vlgmr.msra.gmra.mxu1 %v1945_v8  ;;  %2614 = vmatmul.mubr.bf16.vlgmr.msra.gmra.mxu0 %v1947_v10  ;;  %v3875_v8 = vld [vmem:[%s4776_s9 + $0x158] sm:$0xff]  }
 0xbdb   : > { %3572 = vmatpush3.bf16.msra.mxu1 %v3829_v7  ;;  %3037 = vmatprep.mubr.bf16.mxu1 %v1496_v17  ;;  %v3874_v7 = vld [vmem:[%s4776_s9 + $0x1a0] sm:$0xff]   ;;  %v3876_v10 = vld [vmem:[%s4776_s9 + $0x1d8] sm:$0xff]  }
 0xbdc   : > { %3594 = vmatpush3.bf16.msra.mxu0 %v3830_v11  ;;  %3077 = vmatprep.mubr.bf16.mxu0 %v1498_v20  ;;  %v3877_v11 = vld [vmem:[%s4776_s9 + $0x118] sm:$0xff]   ;;  %v3881_v20 = vld [vmem:[%s4776_s9 + $0x110] sm:$0xff]  }
 0xbdd   : > { %3573 = vmatprep.subr.bf16.mxu1 %v3831_v18  ;;  %3595 = vmatprep.subr.bf16.mxu0 %v3832_v19  ;;  %v3878_v17 = vld [vmem:[%s4776_s9 + $0x198] sm:$0xff]   ;;  %v3879_v18 = vld [vmem:[%s4776_s9 + $0x150] sm:$0xff]  }
 0xbde   : > { %v3880_v19 = vld [vmem:[%s4776_s9 + $0x1d0] sm:$0xff]  }
 0xbdf   : > { %3574 = vmatpush3.bf16.msra.mxu1 %v3833_v3  ;;  %v3882_v3 = vld [vmem:[%s4776_s9 + $0x190] sm:$0xff]  }
 0xbe0   : > { %3596 = vmatpush3.bf16.msra.mxu0 %v3834_v21  ;;  %3575 = vmatprep.subr.bf16.mxu1 %v3835_v22  ;;  %v3883_v21 = vld [vmem:[%s4776_s9 + $0x148] sm:$0xff]  }
 0xbe1   : > { %3597 = vmatprep.subr.bf16.mxu0 %v3836_v28  ;;  %v3884_v22 = vld [vmem:[%s4776_s9 + $0x1c8] sm:$0xff]  }
 0xbe2   : > { %v3885_v28 = vld [vmem:[%s4776_s9 + $0x108] sm:$0xff]  }
 0xbe3   : > { %3576 = vmatpush3.bf16.msra.mxu1 %v3837_v29  ;;  %v3886_v29 = vld [vmem:[%s4776_s9 + $0x188] sm:$0xff]  }
 0xbe4   : > { %3598 = vmatpush3.bf16.msra.mxu0 %v3838_v32  ;;  %3577 = vmatprep.subr.bf16.mxu1 %v3839_v33  ;;  %v3887_v32 = vld [vmem:[%s4776_s9 + $0x140] sm:$0xff]  }
 0xbe5   : > { %3599 = vmatprep.subr.bf16.mxu0 %v3840_v34  ;;  %v3888_v33 = vld [vmem:[%s4776_s9 + $0x1c0] sm:$0xff]  }
 0xbe6   : > { %v3889_v34 = vld [vmem:[%s4776_s9 + $0x100] sm:$0xff]  }
 0xbe7   : > { %3578 = vmatpush3.bf16.msra.mxu1 %v3841_v35  ;;  %v1491_v35 = vmax.f32 %v4401_v23, 0.0 }
 0xbe8   : > { %3600 = vmatpush3.bf16.msra.mxu0 %v3842_v36  ;;  %3579 = vmatprep.subr.bf16.mxu1 %v3843_v37  ;;  %v3890_v36 = vld [vmem:[%s4776_s9 + $0x180] sm:$0xff]   ;;  %v1493_v37 = vmax.f32 %v4403_v24, 0.0 }
 0xbe9   : > { %3601 = vmatprep.subr.bf16.mxu0 %v3844_v38  ;;  %v1499_v38 = vpack.c.bf16 %v1491_v35, %v1491_v35 }
 0xbeb   : > { %3580 = vmatpush3.bf16.msra.mxu1 %v3845_v39  ;;  %v1501_v39 = vpack.c.bf16 %v1493_v37, %v1493_v37 }
 0xbec   : > { %3602 = vmatpush3.bf16.msra.mxu0 %v3846_v40  ;;  %3581 = vmatprep.subr.bf16.mxu1 %v3847_v41 }
 0xbed   : > { %3603 = vmatprep.subr.bf16.mxu0 %v3848_v43 }
 0xbef   : > { %3582 = vmatpush3.bf16.msra.mxu1 %v3849_v44 }
 0xbf0   : > { %3604 = vmatpush3.bf16.msra.mxu0 %v3850_v45  ;;  %3583 = vmatprep.subr.bf16.mxu1 %v3851_v46 }
 0xbf1   : > { %3605 = vmatprep.subr.bf16.mxu0 %v3852_v49 }
 0xbf3   : > { %3584 = vmatpush3.bf16.msra.mxu1 %v3853_v51 }
 0xbf4   : > { %3606 = vmatpush3.bf16.msra.mxu0 %v3854_v54  ;;  %3585 = vmatprep.subr.bf16.mxu1 %v3855_v55 }
 0xbf5   : > { %3607 = vmatprep.subr.bf16.mxu0 %v3856_v42 }
 0xbf7   : > { %3586 = vmatpush3.bf16.msra.mxu1 %v3857_v53 }
 0xbf8   : > { %3608 = vmatpush3.bf16.msra.mxu0 %v3858_v57  ;;  %3615 = vmatprep.subr.bf16.mxu1 %v3859_v58 }
 0xbf9   : > { %3637 = vmatprep.subr.bf16.mxu0 %v3860_v26 }
 0xbfa   : > { %3038 = vmatmul.mubr.bf16.vlgmr.msra.gmra.mxu1 %v1495_v27 }
 0xbfb   : > { %3078 = vmatmul.mubr.bf16.vlgmr.msra.gmra.mxu0 %v1497_v13  ;;  %3616 = vmatpush3.bf16.msra.mxu1 %v3861_v12 }
 0xbfc   : > { %3117 = vmatprep.mubr.bf16.mxu1 %v1500_v30  ;;  %3638 = vmatpush3.bf16.msra.mxu0 %v3862_v59 }
 0xbfd   : > { %3157 = vmatprep.mubr.bf16.mxu0 %v1502_v61  ;;  %3617 = vmatprep.subr.bf16.mxu1 %v3863_v60 }
 0xbfe   : > { %3639 = vmatprep.subr.bf16.mxu0 %v3864_v31 }
 0xbff   : > { %3618 = vmatpush3.bf16.msra.mxu1 %v3865_v62 }
 0xc00   : > { %3640 = vmatpush3.bf16.msra.mxu0 %v3866_v63  ;;  %3619 = vmatprep.subr.bf16.mxu1 %v3867_v0 }
 0xc01   : > { %3641 = vmatprep.subr.bf16.mxu0 %v3868_v2 }
 0xc03   : > { %3620 = vmatpush3.bf16.msra.mxu1 %v3869_v4 }
 0xc04   : > { %3642 = vmatpush3.bf16.msra.mxu0 %v3870_v15  ;;  %3621 = vmatprep.subr.bf16.mxu1 %v3871_v16 }
 0xc05   : > { %3643 = vmatprep.subr.bf16.mxu0 %v3872_v5 }
 0xc07   : > { %3622 = vmatpush3.bf16.msra.mxu1 %v3873_v6 }
 0xc08   : > { %3644 = vmatpush3.bf16.msra.mxu0 %v3874_v7  ;;  %3623 = vmatprep.subr.bf16.mxu1 %v3875_v8 }
 0xc09   : > { %3645 = vmatprep.subr.bf16.mxu0 %v3876_v10 }
 0xc0b   : > { %3624 = vmatpush3.bf16.msra.mxu1 %v3877_v11  ;;  %v3451_v11 = vld [vmem:[%s4777_s10] ss:$0 sm:$0xff] }
 0xc0c   : > { %3646 = vmatpush3.bf16.msra.mxu0 %v3878_v17  ;;  %3625 = vmatprep.subr.bf16.mxu1 %v3879_v18 }
 0xc0d   : > { %3647 = vmatprep.subr.bf16.mxu0 %v3880_v19 }
 0xc0f   : > { %3626 = vmatpush3.bf16.msra.mxu1 %v3881_v20 }
 0xc10   : > { %3648 = vmatpush3.bf16.msra.mxu0 %v3882_v3  ;;  %3627 = vmatprep.subr.bf16.mxu1 %v3883_v21 }
 0xc11   : > { %3649 = vmatprep.subr.bf16.mxu0 %v3884_v22 }
 0xc13   : > { %3628 = vmatpush3.bf16.msra.mxu1 %v3885_v28 }
 0xc14   : > { %3650 = vmatpush3.bf16.msra.mxu0 %v3886_v29  ;;  %3629 = vmatprep.subr.bf16.mxu1 %v3887_v32 }
 0xc15   : > { %3651 = vmatprep.subr.bf16.mxu0 %v3888_v33 }
 0xc17   : > { %3630 = vmatpush3.bf16.msra.mxu1 %v3889_v34 }
 0xc18   : > { %3652 = vmatpush3.bf16.msra.mxu0 %v3890_v36 }
 0xc1a   : > { %3118 = vmatmul.mubr.bf16.vlgmr.msra.gmra.mxu1 %v1499_v38  ;;  %v3453_v38 = vld [vmem:[%s4779_s12] ss:$0 sm:$0xff] }
 0xc1b   : > { %3158 = vmatmul.mubr.bf16.vlgmr.msra.gmra.mxu0 %v1501_v39 }
 0xc7a   : > { %v3499_v40 = vpop.f32.mrf.mxu1  ;;  %v3521_v41 = vpop.f32.mrf.mxu0 }
 0xc7c   : > { %v3500_v43 = vpop.f32.mrf.mxu1  ;;  %v3522_v44 = vpop.f32.mrf.mxu0 }
 0xc7d   : > { %v3501_v23 = vadd.f32 %v3500_v43, %v3499_v40  ;;  %v3523_v45 = vadd.f32 %v3522_v44, %v3521_v41 }
 0xc7e   : > { %v3502_v46 = vpop.f32.mrf.mxu1  ;;  %v3524_v49 = vpop.f32.mrf.mxu0 }
 0xc7f   : > { %v2536_v1 = vadd.f32 %v3523_v45, %v3501_v23 }
 0xc80   : > { %v3503_v50 = vpop.f32.mrf.mxu1  ;;  %v3525_v51 = vpop.f32.mrf.mxu0 }
 0xc9a   : > { %v3543_v54 = vpop.f32.mrf.mxu1  ;;  %v3565_v24 = vpop.f32.mrf.mxu0 }
 0xc9c   : > { %v3544_v55 = vpop.f32.mrf.mxu1  ;;  %v3566_v42 = vpop.f32.mrf.mxu0 }
 0xc9d   : > { %v3545_v59 = vadd.f32 %v3544_v55, %v3543_v54  ;;  %v3567_v60 = vadd.f32 %v3566_v42, %v3565_v24 }
 0xc9e   : > { %v3546_v48 = vpop.f32.mrf.mxu1  ;;  %v3568_v52 = vpop.f32.mrf.mxu0 }
 0xc9f   : > { %v2576_v13 = vadd.f32 %v3545_v59, %v2536_v1 }
 0xca0   : > { %v3547_v53 = vpop.f32.mrf.mxu1  ;;  %v3569_v56 = vpop.f32.mrf.mxu0 }
 0xca1   : > { %v2616_v31 = vadd.f32 %v3567_v60, %v2576_v13 }
 0xcba   : > { %v3587_v57 = vpop.f32.mrf.mxu1 }
 0xcbb   : > { %v3609_v58 = vpop.f32.mrf.mxu0 }
 0xcbc   : > { %v3588_v25 = vpop.f32.mrf.mxu1 }
 0xcbd   : > { %v3610_v26 = vpop.f32.mrf.mxu0  ;;  %v3589_v30 = vadd.f32 %v3588_v25, %v3587_v57 }
 0xcbe   : > { %v3590_v14 = vpop.f32.mrf.mxu1  ;;  %v3611_v63 = vadd.f32 %v3610_v26, %v3609_v58 }
 0xcbf   : > { %v3612_v47 = vpop.f32.mrf.mxu0  ;;  %v3040_v61 = vadd.f32 %v3589_v30, %v2616_v31 }
 0xcc0   : > { %v3591_v12 = vpop.f32.mrf.mxu1 }
 0xcc1   : > { %v3613_v27 = vpop.f32.mrf.mxu0  ;;  %v3080_v4 = vadd.f32 %v3611_v63, %v3040_v61 }
 0xcda   : > { %v3631_v62 = vpop.f32.mrf.mxu1 }
 0xcdb   : > { %v3653_v0 = vpop.f32.mrf.mxu0 }
 0xcdc   : > { %v3632_v2 = vpop.f32.mrf.mxu1 }
 0xcdd   : > { %v3633_v15 = vadd.f32 %v3632_v2, %v3631_v62  ;;  %v3654_v16 = vpop.f32.mrf.mxu0 }
 0xcde   : > { %v3634_v5 = vpop.f32.mrf.mxu1  ;;  %v3655_v7 = vadd.f32 %v3654_v16, %v3653_v0 }
 0xcdf   : > { %v3120_v6 = vadd.f32 %v3633_v15, %v3080_v4  ;;  %v3656_v8 = vpop.f32.mrf.mxu0 }
 0xce0   : > { %v3635_v10 = vpop.f32.mrf.mxu1 }
 0xce1   : > { %v3160_v17 = vadd.f32 %v3655_v7, %v3120_v6  ;;  %v3657_v18 = vpop.f32.mrf.mxu0 }
 0xce3   : > { %v3172_v19 = vadd.f32 %v3451_v11, %v3160_v17 }
 0xce5   : > { %v3173_v20 = vadd.f32 %v3172_v19, %v4196_v9  ;;  %v3452_v9 = vld [vmem:[%s4778_s11] ss:$0 sm:$0xff] }
 0xce7   : > { %v3176_v3 = vsel %vm462_vm1, %v3173_v20, 0.0 }
 0xce8   : > { %3177 = vadd.xlane.f32.xlu1 %v3176_v3 }
 0xd71   : > { %v3178_v21 = vpop.xlane.xlu1 %3177 }
 0xd72   : > { %v3179_v22 = vmul.f32 0.03125, %v3178_v21 }
 0xd74   : > { %v3180_v28 = vsub.f32 %v3173_v20, %v3179_v22 }
 0xd76   : > { %v3181_v29 = vmul.f32 %v3180_v28, %v3180_v28 }
 0xd78   : > { %v3182_v32 = vsel %vm462_vm1, %v3181_v29, 0.0 }
 0xd79   : > { %3183 = vadd.xlane.f32.xlu1 %v3182_v32 }
 0xe02   : > { %v3184_v33 = vpop.xlane.xlu1 %3183 }
 0xe03   : > { %v3185_v34 = vmul.f32 0.03125, %v3184_v33 }
 0xe05   : > { %v3186_v35 = vadd.f32 1e-05, %v3185_v34 }
 0xe07   : > { %3909 = vrsqrt.f32 %v3186_v35 }
 0xe14   : > { %v3910_v36 = vpop.eup %3909 }
 0xe15   : > { %v3188_v37 = vmul.f32 %v3910_v36, %v3180_v28 }
 0xe17   : > { %v3195_v39 = vmul.f32 %v3452_v9, %v3188_v37 }
 0xe19   : > { %v3202_v40 = vadd.f32 %v3453_v38, %v3195_v39 }
 0xe1b   : > { %3203 = vst.msk [vmem:[%s435_s29] sm:$0xff] %vm462_vm1, %v3202_v40 }
 0xe1c PF: > { %s23_s25 = sadd.s32 1, %s3917_s25  }
 0xe1d   : > { %p20_p4 = scmp.ge.s32.totalorder %s23_s25, 4  }
 0xe1f   :  { %22 = sbr.rel (!%p20_p4) target bundleno = 1 (0x1), region = 102 }

// kernel: transformer_encoder_forward.5
= control target key start
LH: loop header
LB: loop body
LE: loop exit
PB: predicated region body
PF: predicated region fallthrough
CT: control target
= control target key end

     0   :  { %s5068_s0 = inlined_call_operand.hbm [shape: f32[2,8,32], index: 0, kind: input, shape index: {}, may-alias: {0,13}]   ;;  %s5069_s1 = inlined_call_operand.vmem [shape: bf16[32,96], index: 1, kind: input, shape index: {}]   ;;  %s5070_s2 = inlined_call_operand.vmem [shape: f32[1,96], index: 2, kind: input, shape index: {}]   ;;  %s5071_s3 = inlined_call_operand.vmem [shape: bf16[32,32], index: 3, kind: input, shape index: {}]   ;;  %s5072_s4 = inlined_call_operand.vmem [shape: f32[1,32], index: 4, kind: input, shape index: {}]   ;;  %s5073_s5 = inlined_call_operand.vmem [shape: f32[1,32], index: 5, kind: input, shape index: {}]   ;;  %s5074_s6 = inlined_call_operand.vmem [shape: f32[1,32], index: 6, kind: input, shape index: {}]   ;;  %s5075_s7 = inlined_call_operand.vmem [shape: bf16[32,2048], index: 7, kind: input, shape index: {}]   ;;  %s5076_s8 = inlined_call_operand.vmem [shape: f32[1,2048], index: 8, kind: input, shape index: {}]   ;;  %s5077_s9 = inlined_call_operand.vmem [shape: bf16[2048,32], index: 9, kind: input, shape index: {}]   ;;  %s5078_s10 = inlined_call_operand.vmem [shape: f32[1,32], index: 10, kind: input, shape index: {}]   ;;  %s5079_s11 = inlined_call_operand.vmem [shape: f32[1,32], index: 11, kind: input, shape index: {}]   ;;  %s5080_s12 = inlined_call_operand.vmem [shape: f32[1,32], index: 12, kind: input, shape index: {}]   ;;  %s5081_s13 = inlined_call_operand.hbm [shape: f32[2,8,32], index: 13, kind: output, shape index: {}, may-alias: {0,13}]  }
   0x1   :  { %5090 = sst [smem:[#allocation13_spill]] %s5081_s13 }
   0x2   :  { %18 = vsyncpa [#allocation3], 0 }
   0x3   :  { %20 = vsyncpa [#allocation3 + $0x1], 0 }
   0x4   :  { %21 = vsyncpa [#allocation4], 0 }
   0x5   :  { %23 = vsyncpa [#allocation4 + $0x1], 0  ;;  %s4183_s25 = smov 0   ;;  %s4185_s26 = smov 0  }
   0x6   :  { %s4187_s27 = smov 0   ;;  %s4189_s28 = smov 0  }
   0x7 LB: > { %5091 = sst [smem:[#allocation8_spill]] %s4083_s25  ;;  %s4204_s29 = sadd.s32 4294967295, %s4095_s28   ;;  %s4095_s28 = sphi %s4189_s28, %s5110_s28   ;;  %s4091_s27 = sphi %s4187_s27, %s5112_s27   ;;  %s4087_s26 = sphi %s4185_s26, %s5114_s26   ;;  %s4083_s25 = sphi %s4183_s25, %s5113_s25  }
   0x8   : > { %5092 = sst [smem:[#allocation9_spill]] %s4091_s27  ;;  %s3308_s30 = sadd.s32 4294967294, %s4095_s28  }
   0x9   : > { %s4208_s14 = sadd.s32 1, %s4095_s28   ;;  %s36_s15 = sadd.s32 1, %s4091_s27 }
   0xa   : > { %5093 = sst [smem:[#allocation10_spill]] %s4208_s14  ;;  %s33_s16 = ssub.s32 %s4095_s28, %s4208_s14 }
   0xb   : > { %p43_p0 = scmp.ne.s32.totalorder %s4091_s27, %s4087_s26  ;;  %p34_p1 = scmp.eq.s32.totalorder %s33_s16, 0 }
   0xc   : > { %p44_p2 = scmp.eq.s32.totalorder %s4095_s28, 0  ;;  %p49_p3 = scmp.ne.s32.totalorder %s4087_s26, %s4083_s25 }
   0xd   : > { %p50_p4 = scmp.eq.s32.totalorder %s4204_s29, 0  ;;  %p325_p7 = scmp.eq.s32.totalorder %s4204_s29, 1 }
   0xe   : > { %s4220_s17 = scalar_select %p34_p1, %s4091_s27, %s36_s15  }
   0xf   : > { %p4222_p5 = por %p44_p2, %p43_p0  ;;  %p4226_p6 = por %p50_p4, %p49_p3 }
  0x10   : > { %5094 = sst [smem:[#allocation11_spill]] %s4220_s17  ;;  %p331_p8 = scmp.eq.s32.totalorder %s3308_s30, 1 }
  0x11   : > { %s5096_s19 = scalar_select %p4226_p6, 1, 0 }
  0x12   : > { %p3805_p10 = scmp.lt.s32.totalorder %s4095_s28, 2  ;;  %p4233_p11 = por %p325_p7, %p43_p0 }
  0x13   : > { %p4237_p12 = por %p331_p8, %p49_p3  ;;  %s387_s22 = sand.u32 1, %s4091_s27  }
  0x14   : > { %s5097_s20 = scalar_select %p4233_p11, 1, 0 }
  0x15   : > { %s5098_s21 = scalar_select %p4237_p12, 1, 0 }
  0x16   : > { %s3312_s23 = sshll.u32 %s4095_s28, 7  ;;  %s3311_s24 = sshll.u32 %s387_s22, 3 }
  0x17   : > { %5099 = sst [smem:[#allocation12_spill]] %s5098_s21  ;;  %s4246_s17 = scalar_lea.hbm %s5068_s0, %s3312_s23 }
  0x18   : > { %s391_s30 = scalar_lea.vmem [#allocation2], %s3311_s24  ;;  %p4250_p13 = pnand %p3805_p10, %p4222_p5 }
  0x19   : > { %s398_s14 = sshll.u32 %s391_s30, 4  ;;  %s388_s27 = scalar_lea.sflag [#allocation3], %s387_s22  ;;  %s4254_s14 = int_to_ptr.vmem [resolvable:$true] %s398_s14 }
  0x1a   : > { %s4003_s21 = scalar_lea.hbm %s4246_s17, 128  ;;  %p4005_p3 = pneg %p4250_p13 }
  0x1b   : > { %p4004_p2 = scmp.ne.s32.totalorder %s4246_s17, %s4003_s21  ;;  %s4008_s18 = scalar_lea.hbm %s5068_s0, 256 }
  0x1c   : > { %p4009_p5 = scmp.lt.s32.totalorder %s4246_s17, %s5068_s0  ;;  %p4010_p8 = scmp.lt.s32.totalorder %s4008_s18, %s4003_s21 }
  0x1d   : > { %p4006_p4 = pnand %p4005_p3, %p4004_p2 }
  0x1e   : > { %p4011_p10 = por %p4010_p8, %p4009_p5 }
  0x1f   : > { %p4007_p7 = pneg %p4006_p4 }
  0x21   : > { %p4012_p9 = pnand %p4011_p10, %p4007_p7 }
  0x23   : > { %4015 = shalt.err (!%p4012_p9)
}
  0x24   : > { %s4016_s22 = scalar_lea.vmem %s4254_s14, 128  ;;  %s4097_s30 = smov [#allocation2]  }
  0x25   : > { %p4017_p0 = scmp.ne.s32.totalorder %s4254_s14, %s4016_s22  ;;  %s4021_s13 = sshll.u32 %s4097_s30, 4  ;;  %s4022_s13 = int_to_ptr.vmem [resolvable:$false] %s4021_s13 }
  0x26   : > { %s4023_s23 = scalar_lea.vmem %s4022_s13, 256  ;;  %p4024_p4 = scmp.lt.s32.totalorder %s4254_s14, %s4022_s13 }
  0x27   : > { %p4019_p1 = pnand %p4017_p0, %p4005_p3  ;;  %p4025_p12 = scmp.lt.s32.totalorder %s4023_s23, %s4016_s22 }
  0x29   : > { %p4020_p2 = pneg %p4019_p1  ;;  %p4026_p11 = por %p4025_p12, %p4024_p4 }
  0x2b   : > { %p4027_p6 = pnand %p4026_p11, %p4020_p2 }
  0x2d   : > { %4030 = shalt.err (!%p4027_p6)
}
  0x2e   : > { %3800 = dma.hbm_to_vmem [thread:$0]  (!%p4250_p13), %s4246_s17, 128, %s4254_s14, %s388_s27  }
  0x2f   : > { %p5101_p9 = scmp.lt.s32.totalorder %s4095_s28, 3  ;;  %p5102_p7 = scmp.ge.s32.totalorder %s4095_s28, 1 }
  0x31   : > { %p404_p0 = pnand %p5102_p7, %p5101_p9 }
  0x32   : > { %s4281_s21 = sand.u32 (!%p404_p0), 1, %s4087_s26   ;;  %p5103_p6 = scmp.ne.s32.totalorder (!%p404_p0), %s5096_s19, 0 }
  0x33   : > { %407 = sbr.rel (%p404_p0) target bundleno = 3671 (0xe57), region = 72  ;;  %s3314_s13 = sshll.u32 (!%p404_p0), %s4281_s21, 3 }
  0x34   : > { %s410_s24 = scalar_lea.sflag (!%p404_p0), [#allocation3], %s4281_s21  ;;  %s413_s25 = scalar_lea.vmem (!%p404_p0), [#allocation2], %s3314_s13 }
  0x38   : > { %4074 = dma.done.wait (%p5103_p6), %s410_s24, 128  }
  0x39   : > { %4076 = vsyncadd (%p5103_p6), %s410_s24, 4294967168  ;;  %v4098_v0 = vmov 0.0   ;;  %vm4099_vm0 = vmmov 0   ;;  %v3853_v1 = vld [vmem:[%s5069_s1 + $0x8] sm:$0xff]   ;;  %v3854_v2 = vld [vmem:[%s5069_s1] sm:$0xff]   ;;  %vm482_vm1 = vcmask 261120  }
  0x3a   : > { %3713 = vmatprep.subr.bf16.mxu0 %v4098_v0  ;;  %3717 = vmatprep.mubr.msk.bf16.mxu0 %vm4099_vm0, %v4098_v0  ;;  %v4303_v3 = vld [vmem:[%s413_s25] sm:$0xff]  ;;  %s4100_s16 = smov 120   ;;  %s4101_s22 = smov 96   ;;  %vm534_vm2 = vcmask 64512   ;;  %vm598_vm3 = vcmask 1043456  }
  0x3b   : > { %3721 = vmatprep.subr.bf16.mxu1 %v4098_v0  ;;  %3723 = vmatprep.mubr.msk.bf16.mxu1 %vm4099_vm0, %v4098_v0  ;;  %v458_v4 = vpack.c.bf16 %v4303_v3, %v4303_v3  ;;  %v3316_v5 = vld [vmem:[%s5070_s2] ss:$0 sm:$0xff]  ;;  %s4102_s30 = smov 88   ;;  %s4103_s23 = smov 64   ;;  %v527_v51 = vld [vmem:[%s5071_s3 + $0x4] sm:$0xf] }
  0x3c   : > { %3714 = vmatpush3.bf16.msra.mxu0 %v3853_v1  ;;  %s4104_s24 = smov 56   ;;  %s4105_s25 = smov 112   ;;  %v526_v49 = vld [vmem:[%s5071_s3] sm:$0xf]  ;;  %v758_v52 = vsel %vm598_vm3, %v527_v51, 0 }
  0x3d   : > { %3715 = vmatprep.subr.bf16.mxu0 %v4098_v0  ;;  %s4106_s27 = smov 80   ;;  %v804_v50 = vsel %vm598_vm3, %v526_v49, 0  ;;  %s4107_s15 = smov 72  }
  0x3e   : > { %s3507_s14 = sshll.u32 %s4204_s29, 7  ;;  %s455_s17 = scalar_lea.vmem [#allocation5], %s3314_s13 }
  0x3f   : > { %s3238_s19 = sshll.u32 %s455_s17, 4  ;;  %p5105_p12 = scmp.ne.s32.totalorder %s5097_s20, 0  ;;  %s3239_s19 = int_to_ptr.vmem [resolvable:$true] %s3238_s19 }
  0x40   : > { %3716 = vmatpush3.bf16.msra.mxu0 %v3854_v2 }
  0x41   : > { %3727 = vmatprep.subr.bf16.mxu0 %v4098_v0 }
  0x43   : > { %3718 = vmatmul.mubr.msk.bf16.vlgmr.msra.gmra.mxu0 %vm482_vm1, %v458_v4 }
  0x44   : > { %3729 = vmatprep.mubr.msk.bf16.mxu0 %vm4099_vm0, %v4098_v0 }
 0x103   : > { %v520_v6 = vpop.f32.mrf.mxu0 }
 0x104   : > { %v521_v7 = vadd.f32 %v3316_v5, %v520_v6 }
 0x105   : > { %v3719_v8 = vpop.f32.mrf.mxu0 }
 0x106   : > { %v4315_v9 = vpack.c.bf16 %v521_v7, %v521_v7 }
 0x107   : > { %v523_v10 = vpop.f32.mrf.mxu0 }
 0x108   : > { %643 = vrot.lane.b32.xlu1 %v4315_v9, %s4100_s16  ;;  %532 = vrot.lane.b32.xlu0 %v4315_v9, %s4101_s22  ;;  %s4108_s16 = smov 104   ;;  %s4109_s22 = smov 48  }
 0x109   : > { %v3720_v11 = vpop.f32.mrf.mxu0 }
 0x10c   : > { %645 = vrot.lane.b32.xlu0 %v4315_v9, %s4102_s30  ;;  %s3225_s30 = scalar_lea.sflag [#allocation4], %s4281_s21 }
 0x17a   : > { %v533_v12 = vpop.permute.xlu0 %532  ;;  %v644_v16 = vpop.permute.xlu1 %643 }
 0x17b   : > { %v539_v13 = vsel %vm534_vm2, %v533_v12, 0 }
 0x17c   : > { %3722 = vmatpush3.bf16.xpose.msra.mxu1 %v539_v13 }
 0x17d   : > { %3733 = vmatprep.subr.bf16.mxu1 %v4098_v0 }
 0x17e   : > { %v646_v14 = vpop.permute.xlu0 %645 }
 0x17f   : > { %v651_v15 = vsel %vm534_vm2, %v646_v14, 0 }
 0x183   : > { %3724 = vmatmul.mubr.msk.bf16.vlgmr.msra.gmra.mxu1 %vm534_vm2, %v4315_v9 }
 0x184   : > { %3734 = vmatpush3.bf16.xpose.msra.mxu1 %v651_v15  ;;  %3735 = vmatprep.mubr.msk.bf16.mxu1 %vm4099_vm0, %v4098_v0 }
 0x185   : > { %3745 = vmatprep.subr.bf16.mxu1 %v4098_v0 }
 0x18b   : > { %3736 = vmatmul.mubr.msk.bf16.vlgmr.msra.gmra.mxu1 %vm534_vm2, %v644_v16 }
 0x18c   : > { %3747 = vmatprep.mubr.msk.bf16.mxu1 %vm4099_vm0, %v4098_v0  ;;  %3746 = vmatpush3.bf16.msra.mxu1 %v758_v52  ;;  %v529_v52 = vld [vmem:[%s5071_s3 + $0xc] sm:$0xf] }
 0x18d   : > { %3757 = vmatprep.subr.bf16.mxu1 %v4098_v0 }
 0x243   : > { %v575_v17 = vpop.f32.mrf.mxu1 }
 0x244   : > { %v581_v18 = vsel %vm534_vm2, %v575_v17, -inf }
 0x245   : > { %582 = vmax.xlane.f32.xlu1 %v581_v18  ;;  %v3725_v19 = vpop.f32.mrf.mxu1 }
 0x247   : > { %v578_v20 = vpop.f32.mrf.mxu1 }
 0x249   : > { %v3726_v21 = vpop.f32.mrf.mxu1 }
 0x24b   : > { %v687_v22 = vpop.f32.mrf.mxu1 }
 0x24c   : > { %v693_v23 = vsel %vm534_vm2, %v687_v22, -inf }
 0x24d   : > { %694 = vmax.xlane.f32.xlu0 %v693_v23  ;;  %v3737_v24 = vpop.f32.mrf.mxu1 }
 0x24f   : > { %v690_v25 = vpop.f32.mrf.mxu1 }
 0x251   : > { %v3738_v26 = vpop.f32.mrf.mxu1 }
 0x2ce   : > { %v583_v27 = vpop.xlane.xlu1 %582 }
 0x2cf   : > { %v584_v28 = vsub.f32 %v575_v17, %v583_v27 }
 0x2d1   : > { %v585_v29 = vmul.f32 1.442695, %v584_v28 }
 0x2d3   : > { %3983 = vpow2.f32 %v585_v29 }
 0x2d6   : > { %v695_v30 = vpop.xlane.xlu0 %694 }
 0x2d7   : > { %v696_v31 = vsub.f32 %v687_v22, %v695_v30 }
 0x2d9   : > { %v697_v32 = vmul.f32 1.442695, %v696_v31 }
 0x2db   : > { %3985 = vpow2.f32 %v697_v32 }
 0x2e0   : > { %v3984_v33 = vpop.eup %3983 }
 0x2e1   : > { %v587_v34 = vsel %vm534_vm2, %v3984_v33, 0.0 }
 0x2e2   : > { %588 = vadd.xlane.f32.xlu0 %v587_v34 }
 0x2e8   : > { %v3986_v35 = vpop.eup %3985 }
 0x2e9   : > { %v699_v36 = vsel %vm534_vm2, %v3986_v35, 0.0 }
 0x2ea   : > { %700 = vadd.xlane.f32.xlu1 %v699_v36 }
 0x2f8   : > { %593 = vrot.lane.b32.xlu0 %v4315_v9, %s4103_s23  ;;  %s4031_s23 = scalar_lea.vmem %s3239_s19, 128 }
 0x2f9   : > { %p4032_p11 = scmp.ne.s32.totalorder %s3239_s19, %s4031_s23 }
 0x2fb   : > { %705 = vrot.lane.b32.xlu1 %v4315_v9, %s4104_s24  ;;  %s4110_s24 = smov 40   ;;  %p4033_p13 = pnand %p4032_p11, %p5105_p12 }
 0x2fc   : > { %846 = vrot.lane.b32.xlu0 %v4315_v9, %s4105_s25 }
 0x2fd   : > { %p4034_p1 = pneg %p4033_p13 }
 0x2ff   : > { %848 = vrot.lane.b32.xlu1 %v4315_v9, %s4106_s27 }
 0x36b   : > { %v589_v37 = vpop.xlane.xlu0 %588 }
 0x36c   : > { %3987 = vrcp.f32 %v589_v37 }
 0x36f   : > { %v594_v38 = vpop.permute.xlu0 %593 }
 0x370   : > { %v600_v39 = vsel %vm598_vm3, %v594_v38, 0 }
 0x371   : > { %3728 = vmatpush3.bf16.msra.mxu0 %v600_v39 }
 0x372   : > { %3739 = vmatprep.subr.bf16.mxu0 %v4098_v0 }
 0x373   : > { %v701_v40 = vpop.xlane.xlu1 %700  ;;  %v847_v2 = vpop.permute.xlu0 %846 }
 0x374   : > { %3989 = vrcp.f32 %v701_v40 }
 0x377   : > { %v706_v43 = vpop.permute.xlu1 %705 }
 0x378   : > { %v711_v45 = vsel %vm598_vm3, %v706_v43, 0 }
 0x379   : > { %v3988_v41 = vpop.eup %3987 }
 0x37a   : > { %v591_v42 = vmul.f32 %v3988_v41, %v3984_v33  ;;  %v528_v33 = vld [vmem:[%s5071_s3 + $0x8] sm:$0xf] }
 0x37b   : > { %v849_v58 = vpop.permute.xlu1 %848  ;;  %v961_v34 = vsel %vm598_vm3, %v528_v33, 0 }
 0x37c   : > { %v592_v44 = vpack.c.bf16 %v591_v42, %v591_v42  ;;  %v854_v62 = vsel %vm534_vm2, %v849_v58, 0 }
 0x37e   : > { %3730 = vmatmul.mubr.msk.bf16.vlgmr.msra.gmra.mxu0 %vm534_vm2, %v592_v44 }
 0x37f   : > { %3740 = vmatpush3.bf16.msra.mxu0 %v711_v45  ;;  %3741 = vmatprep.mubr.msk.bf16.mxu0 %vm4099_vm0, %v4098_v0 }
 0x380   : > { %3751 = vmatprep.subr.bf16.mxu0 %v4098_v0 }
 0x381   : > { %v3990_v46 = vpop.eup %3989 }
 0x382   : > { %v703_v47 = vmul.f32 %v3990_v46, %v3986_v35 }
 0x384   : > { %v704_v48 = vpack.c.bf16 %v703_v47, %v703_v47 }
 0x386   : > { %3742 = vmatmul.mubr.msk.bf16.vlgmr.msra.gmra.mxu0 %vm534_vm2, %v704_v48 }
 0x387   : > { %3753 = vmatprep.mubr.msk.bf16.mxu0 %vm4099_vm0, %v4098_v0  ;;  %3752 = vmatpush3.bf16.msra.mxu0 %v804_v50 }
 0x388   : > { %3763 = vmatprep.subr.bf16.mxu0 %v4098_v0 }
 0x43e   : > { %v636_v53 = vpop.f32.mrf.mxu0 }
 0x43f   : > { %v642_v54 = vpack.c.bf16 %v636_v53, %v636_v53 }
 0x440   : > { %v3731_v55 = vpop.f32.mrf.mxu0 }
 0x441   : > { %3754 = vmatmul.mubr.msk.bf16.vlgmr.msra.gmra.mxu0 %vm534_vm2, %v642_v54 }
 0x442   : > { %v639_v56 = vpop.f32.mrf.mxu0  ;;  %3765 = vmatprep.mubr.msk.bf16.mxu0 %vm4099_vm0, %v4098_v0 }
 0x444   : > { %v3732_v57 = vpop.f32.mrf.mxu0 }
 0x446   : > { %v747_v59 = vpop.f32.mrf.mxu0 }
 0x447   : > { %v753_v60 = vpack.c.bf16 %v747_v59, %v747_v59 }
 0x448   : > { %v3743_v61 = vpop.f32.mrf.mxu0 }
 0x449   : > { %3748 = vmatmul.mubr.msk.bf16.vlgmr.msra.gmra.mxu1 %vm534_vm2, %v753_v60 }
 0x44a   : > { %3758 = vmatpush3.bf16.xpose.msra.mxu1 %v854_v62  ;;  %v750_v63 = vpop.f32.mrf.mxu0  ;;  %3759 = vmatprep.mubr.msk.bf16.mxu1 %vm4099_vm0, %v4098_v0 }
 0x44b   : > { %3769 = vmatprep.subr.bf16.mxu1 %v4098_v0 }
 0x44c   : > { %v3744_v1 = vpop.f32.mrf.mxu0 }
 0x451   : > { %3760 = vmatmul.mubr.msk.bf16.vlgmr.msra.gmra.mxu1 %vm534_vm2, %v847_v2 }
 0x452   : > { %3771 = vmatprep.mubr.msk.bf16.mxu1 %vm4099_vm0, %v4098_v0  ;;  %3770 = vmatpush3.bf16.msra.mxu1 %v961_v34  ;;  %v1212_v34 = vld [vmem:[%s5075_s7 + $0x90] sm:$0xff] }
 0x453   : > { %3781 = vmatprep.subr.bf16.mxu1 %v4098_v0 }
 0x501   : > { %v840_v4 = vpop.f32.mrf.mxu0 }
 0x503   : > { %v3755_v5 = vpop.f32.mrf.mxu0 }
 0x504   : > { %v3332_v5 = vld [vmem:[%s5072_s4] ss:$0 sm:$0xff] }
 0x505   : > { %v843_v6 = vpop.f32.mrf.mxu0 }
 0x507   : > { %v3756_v7 = vpop.f32.mrf.mxu0 }
 0x509   : > { %v794_v8 = vpop.f32.mrf.mxu1 }
 0x50a   : > { %v4370_v10 = vadd.f32 %v840_v4, %v794_v8 }
 0x50b   : > { %v3749_v11 = vpop.f32.mrf.mxu1 }
 0x50d   : > { %v797_v12 = vpop.f32.mrf.mxu1 }
 0x50f   : > { %v3750_v13 = vpop.f32.mrf.mxu1 }
 0x511   : > { %v890_v14 = vpop.f32.mrf.mxu1 }
 0x512   : > { %v896_v15 = vsel %vm534_vm2, %v890_v14, -inf }
 0x513   : > { %897 = vmax.xlane.f32.xlu1 %v896_v15  ;;  %v3761_v16 = vpop.f32.mrf.mxu1 }
 0x515   : > { %v893_v17 = vpop.f32.mrf.mxu1 }
 0x517   : > { %v3762_v18 = vpop.f32.mrf.mxu1 }
 0x524   : > { %1006 = vrot.lane.b32.xlu1 %v4315_v9, %s4107_s15 }
 0x528   : > { %1004 = vrot.lane.b32.xlu1 %v4315_v9, %s4108_s16  ;;  %s5104_s16 = sld [smem:[#allocation13_spill]] }
 0x59c   : > { %v898_v19 = vpop.xlane.xlu1 %897 }
 0x59d   : > { %v899_v20 = vsub.f32 %v890_v14, %v898_v19  ;;  %v1210_v19 = vld [vmem:[%s5075_s7 + $0x80] sm:$0xff] }
 0x59f   : > { %v900_v21 = vmul.f32 1.442695, %v899_v20  ;;  %v1214_v20 = vld [vmem:[%s5075_s7 + $0xc0] sm:$0xff] }
 0x5a0   : > { %v1007_v29 = vpop.permute.xlu1 %1006 }
 0x5a1   : > { %3991 = vpow2.f32 %v900_v21  ;;  %v1012_v31 = vsel %vm534_vm2, %v1007_v29, 0  ;;  %v3344_v21 = vcombine.high %v1210_v19, %v1214_v20 }
 0x5a4   : > { %v1005_v32 = vpop.permute.xlu1 %1004 }
 0x5ae   : > { %v3992_v22 = vpop.eup %3991 }
 0x5af   : > { %v902_v23 = vsel %vm534_vm2, %v3992_v22, 0.0 }
 0x5b0   : > { %903 = vadd.xlane.f32.xlu0 %v902_v23  ;;  %v3343_v23 = vcombine.low %v1210_v19, %v1214_v20  ;;  %v1653_v20 = vld [vmem:[%s5075_s7 + $0x30] sm:$0xff] }
 0x5c6   : > { %908 = vrot.lane.b32.xlu0 %v4315_v9, %s4109_s22  ;;  %s3236_s22 = scalar_lea.hbm %s5104_s16, %s3507_s14 }
 0x639   : > { %v904_v24 = vpop.xlane.xlu0 %903 }
 0x63a   : > { %3993 = vrcp.f32 %v904_v24 }
 0x63d   : > { %v909_v25 = vpop.permute.xlu0 %908 }
 0x63e   : > { %v914_v26 = vsel %vm598_vm3, %v909_v25, 0 }
 0x63f   : > { %3764 = vmatpush3.bf16.msra.mxu0 %v914_v26  ;;  %v1202_v26 = vld [vmem:[%s5075_s7] sm:$0xff] }
 0x640   : > { %3775 = vmatprep.subr.bf16.mxu0 %v4098_v0 }
 0x647   : > { %v3994_v27 = vpop.eup %3993 }
 0x648   : > { %v906_v28 = vmul.f32 %v3994_v27, %v3992_v22  ;;  %v1215_v22 = vld [vmem:[%s5075_s7 + $0xc8] sm:$0xff]  ;;  %v1206_v27 = vld [vmem:[%s5075_s7 + $0x40] sm:$0xff] }
 0x649   : > { %v3336_v29 = vcombine.high %v1202_v26, %v1206_v27 }
 0x64a   : > { %v907_v30 = vpack.c.bf16 %v906_v28, %v906_v28  ;;  %v1203_v28 = vld [vmem:[%s5075_s7 + $0x8] sm:$0xff] }
 0x64c   : > { %3766 = vmatmul.mubr.msk.bf16.vlgmr.msra.gmra.mxu0 %vm534_vm2, %v907_v30  ;;  %v1207_v30 = vld [vmem:[%s5075_s7 + $0x48] sm:$0xff] }
 0x64d   : > { %3776 = vmatpush3.bf16.xpose.msra.mxu0 %v1012_v31  ;;  %3777 = vmatprep.mubr.msk.bf16.mxu0 %vm4099_vm0, %v4098_v0  ;;  %v3335_v31 = vcombine.low %v1202_v26, %v1206_v27  ;;  %v3338_v33 = vcombine.high %v1203_v28, %v1207_v30 }
 0x64e   : > { %3787 = vmatprep.subr.bf16.mxu0 %v4098_v0 }
 0x654   : > { %3778 = vmatmul.mubr.msk.bf16.vlgmr.msra.gmra.mxu0 %vm534_vm2, %v1005_v32  ;;  %v3337_v32 = vcombine.low %v1203_v28, %v1207_v30  ;;  %v3856_v30 = vld [vmem:[%s5077_s9 + $0x2f8] sm:$0xff]  }
 0x655   : > { %3789 = vmatprep.mubr.msk.bf16.mxu0 %vm4099_vm0, %v4098_v0 }
 0x70c   : > { %v950_v35 = vpop.f32.mrf.mxu0 }
 0x70d   : > { %v956_v36 = vpack.c.bf16 %v950_v35, %v950_v35  ;;  %v1216_v35 = vld [vmem:[%s5075_s7 + $0xd0] sm:$0xff] }
 0x70e   : > { %v3767_v37 = vpop.f32.mrf.mxu0 }
 0x70f   : > { %3772 = vmatmul.mubr.msk.bf16.vlgmr.msra.gmra.mxu1 %vm534_vm2, %v956_v36  ;;  %v1213_v36 = vld [vmem:[%s5075_s7 + $0x98] sm:$0xff]  ;;  %v4111_v37 = vmov 0  }
 0x710   : > { %v953_v38 = vpop.f32.mrf.mxu0  ;;  %3783 = vmatprep.mubr.msk.bf16.mxu1 %vm4099_vm0, %v4098_v0 }
 0x711   : > { %v3348_v38 = vcombine.high %v1212_v34, %v1216_v35 }
 0x712   : > { %v3768_v39 = vpop.f32.mrf.mxu0 }
 0x713   : > { %v1217_v39 = vld [vmem:[%s5075_s7 + $0xd8] sm:$0xff] }
 0x714   : > { %v1048_v40 = vpop.f32.mrf.mxu0 }
 0x715   : > { %v1054_v41 = vsel %vm534_vm2, %v1048_v40, -inf }
 0x716   : > { %1055 = vmax.xlane.f32.xlu0 %v1054_v41  ;;  %v3779_v42 = vpop.f32.mrf.mxu0  ;;  %v3349_v41 = vcombine.low %v1213_v36, %v1217_v39 }
 0x717   : > { %v3350_v42 = vcombine.high %v1213_v36, %v1217_v39  ;;  %v3862_v36 = vld [vmem:[%s5077_s9 + $0x2b0] sm:$0xff]   ;;  %v3864_v39 = vld [vmem:[%s5077_s9 + $0x2e8] sm:$0xff]  }
 0x718   : > { %v1051_v43 = vpop.f32.mrf.mxu0 }
 0x71a   : > { %v3780_v44 = vpop.f32.mrf.mxu0 }
 0x72c   : > { %1066 = vrot.lane.b32.xlu0 %v4315_v9, %s4110_s24  ;;  %v1119_v9 = vsel %vm598_vm3, %v529_v52, 0  ;;  %v1205_v52 = vld [vmem:[%s5075_s7 + $0x18] sm:$0xff]  ;;  %s4112_s24 = smov [#allocation5]  }
 0x72d   : > { %3788 = vmatpush3.bf16.msra.mxu0 %v1119_v9  ;;  %s4035_s29 = sshll.u32 %s4112_s24, 4  ;;  %s4036_s29 = int_to_ptr.vmem [resolvable:$false] %s4035_s29 }
 0x72e   : > { %s4037_s13 = scalar_lea.vmem %s4036_s29, 256  ;;  %p4038_p3 = scmp.lt.s32.totalorder %s3239_s19, %s4036_s29 }
 0x72f   : > { %p4039_p5 = scmp.lt.s32.totalorder %s4037_s13, %s4031_s23 }
 0x731   : > { %p4040_p8 = por %p4039_p5, %p4038_p3 }
 0x733   : > { %p4041_p10 = pnand %p4040_p8, %p4034_p1 }
 0x79f   : > { %v1056_v45 = vpop.xlane.xlu0 %1055 }
 0x7a0   : > { %v1057_v46 = vsub.f32 %v1048_v40, %v1056_v45  ;;  %v3347_v40 = vcombine.low %v1212_v34, %v1216_v35  ;;  %v3860_v34 = vld [vmem:[%s5077_s9 + $0x2f0] sm:$0xff]  }
 0x7a1   : > { %v3861_v35 = vld [vmem:[%s5077_s9 + $0x230] sm:$0xff]  }
 0x7a2   : > { %v1058_v47 = vmul.f32 1.442695, %v1057_v46 }
 0x7a3   : > { %v1067_v48 = vpop.permute.xlu0 %1066 }
 0x7a4   : > { %3995 = vpow2.f32 %v1058_v47  ;;  %v1072_v49 = vsel %vm598_vm3, %v1067_v48, 0  ;;  %v3333_v47 = vld [vmem:[%s5073_s5] ss:$0 sm:$0xff] }
 0x7a5   : > { %3782 = vmatpush3.bf16.msra.mxu1 %v1072_v49  ;;  %v3334_v49 = vld [vmem:[%s5074_s6] ss:$0 sm:$0xff] }
 0x7a6   : > { %1355 = vmatprep.subr.bf16.mxu1 %v3344_v21  ;;  %v1654_v21 = vld [vmem:[%s5075_s7 + $0x38] sm:$0xff] }
 0x7b1   : > { %v3996_v0 = vpop.eup %3995 }
 0x7b2   : > { %v1060_v50 = vsel %vm534_vm2, %v3996_v0, 0.0 }
 0x7b3   : > { %1061 = vadd.xlane.f32.xlu1 %v1060_v50  ;;  %v1204_v50 = vld [vmem:[%s5075_s7 + $0x10] sm:$0xff] }
 0x7cf   : > { %v997_v51 = vpop.f32.mrf.mxu1 }
 0x7d0   : > { %v1003_v53 = vadd.f32 %v997_v51, %v4370_v10  ;;  %v1208_v51 = vld [vmem:[%s5075_s7 + $0x50] sm:$0xff] }
 0x7d1   : > { %v3773_v54 = vpop.f32.mrf.mxu1 }
 0x7d3   : > { %v1000_v55 = vpop.f32.mrf.mxu1 }
 0x7d4   : > { %v3340_v55 = vcombine.high %v1204_v50, %v1208_v51 }
 0x7d5   : > { %v3774_v56 = vpop.f32.mrf.mxu1 }
 0x83c   : > { %v1062_v57 = vpop.xlane.xlu1 %1061 }
 0x83d   : > { %3997 = vrcp.f32 %v1062_v57  ;;  %v1659_v57 = vld [vmem:[%s5075_s7 + $0xa0] sm:$0xff] }
 0x84a   : > { %v3998_v58 = vpop.eup %3997 }
 0x84b   : > { %v1064_v59 = vmul.f32 %v3998_v58, %v3996_v0  ;;  %v1663_v58 = vld [vmem:[%s5075_s7 + $0xe0] sm:$0xff] }
 0x84d   : > { %v1065_v60 = vpack.c.bf16 %v1064_v59, %v1064_v59  ;;  %v1660_v59 = vld [vmem:[%s5075_s7 + $0xa8] sm:$0xff] }
 0x84f   : > { %3784 = vmatmul.mubr.msk.bf16.vlgmr.msra.gmra.mxu1 %vm534_vm2, %v1065_v60  ;;  %v1664_v60 = vld [vmem:[%s5075_s7 + $0xe8] sm:$0xff] }
 0x850   : > { %1356 = vmatpush1.bf16.msra.mxu1 %v3343_v23  ;;  %1375 = vmatprep.mubr.bf16.mxu1 %v4111_v37 }
 0x851   : > { %1357 = vmatprep.subr.bf16.mxu1 %v3336_v29  ;;  %v3855_v29 = vld [vmem:[%s5077_s9 + $0x278] sm:$0xff]  }
 0x854   : > { %1358 = vmatpush1.bf16.msra.mxu1 %v3335_v31  ;;  %v3857_v31 = vld [vmem:[%s5077_s9 + $0x238] sm:$0xff]  }
 0x855   : > { %1437 = vmatprep.subr.bf16.mxu1 %v3348_v38  ;;  %v3863_v38 = vld [vmem:[%s5077_s9 + $0x268] sm:$0xff]  }
 0x90f   : > { %v1108_v61 = vpop.f32.mrf.mxu1 }
 0x910   : > { %v1114_v62 = vpack.c.bf16 %v1108_v61, %v1108_v61  ;;  %v3339_v61 = vcombine.low %v1204_v50, %v1208_v51  ;;  %v3872_v50 = vld [vmem:[%s5077_s9 + $0x2d8] sm:$0xff]  }
 0x911   : > { %v3785_v63 = vpop.f32.mrf.mxu1  ;;  %v3873_v51 = vld [vmem:[%s5077_s9 + $0x218] sm:$0xff]  }
 0x912   : > { %3790 = vmatmul.mubr.msk.bf16.vlgmr.msra.gmra.mxu0 %vm534_vm2, %v1114_v62  ;;  %v3364_v63 = vcombine.high %v1659_v57, %v1663_v58 }
 0x913   : > { %v1111_v1 = vpop.f32.mrf.mxu1  ;;  %1416 = vmatprep.mubr.bf16.mxu0 %v4111_v37 }
 0x914   : > { %v3366_v1 = vcombine.high %v1660_v59, %v1664_v60 }
 0x915   : > { %v3786_v2 = vpop.f32.mrf.mxu1 }
 0x916   : > { %v1651_v2 = vld [vmem:[%s5075_s7 + $0x20] sm:$0xff] }
 0x9d2   : > { %v1155_v4 = vpop.f32.mrf.mxu0 }
 0x9d3   : > { %v1161_v6 = vadd.f32 %v1155_v4, %v1003_v53  ;;  %v1209_v53 = vld [vmem:[%s5075_s7 + $0x58] sm:$0xff]  ;;  %v1655_v4 = vld [vmem:[%s5075_s7 + $0x60] sm:$0xff] }
 0x9d4   : > { %v3791_v7 = vpop.f32.mrf.mxu0  ;;  %v3342_v56 = vcombine.high %v1205_v52, %v1209_v53  ;;  %v3341_v62 = vcombine.low %v1205_v52, %v1209_v53  ;;  %v3874_v52 = vld [vmem:[%s5077_s9 + $0x298] sm:$0xff]   ;;  %v3875_v53 = vld [vmem:[%s5077_s9 + $0x250] sm:$0xff]  }
 0x9d5   : > { %v1169_v8 = vadd.f32 %v3332_v5, %v1161_v6  ;;  %v1652_v5 = vld [vmem:[%s5075_s7 + $0x28] sm:$0xff]  ;;  %v3363_v7 = vcombine.low %v1659_v57, %v1663_v58 }
 0x9d6   : > { %v1158_v10 = vpop.f32.mrf.mxu0  ;;  %v1656_v6 = vld [vmem:[%s5075_s7 + $0x68] sm:$0xff] }
 0x9d7   : > { %v1170_v11 = vadd.f32 %v1169_v8, %v4303_v3  ;;  %v1211_v3 = vld [vmem:[%s5075_s7 + $0x88] sm:$0xff]  ;;  %v3365_v8 = vcombine.low %v1660_v59, %v1664_v60  ;;  %v3356_v10 = vcombine.high %v1651_v2, %v1655_v4 }
 0x9d8   : > { %v3792_v12 = vpop.f32.mrf.mxu0  ;;  %v3345_v24 = vcombine.low %v1211_v3, %v1215_v22  ;;  %v3346_v25 = vcombine.high %v1211_v3, %v1215_v22  ;;  %v1657_v3 = vld [vmem:[%s5075_s7 + $0x70] sm:$0xff]  ;;  %v1658_v22 = vld [vmem:[%s5075_s7 + $0x78] sm:$0xff]  ;;  %v3879_v57 = vld [vmem:[%s5077_s9 + $0x248] sm:$0xff]  }
 0x9d9   : > { %v1173_v13 = vsel %vm482_vm1, %v1170_v11, 0.0  ;;  %v1661_v12 = vld [vmem:[%s5075_s7 + $0xb0] sm:$0xff]  ;;  %v3362_v26 = vcombine.high %v1654_v21, %v1658_v22  ;;  %v3359_v27 = vcombine.low %v1653_v20, %v1657_v3  ;;  %v3361_v28 = vcombine.low %v1654_v21, %v1658_v22  ;;  %v3880_v58 = vld [vmem:[%s5077_s9 + $0x2c8] sm:$0xff]  }
 0x9da   : > { %1174 = vadd.xlane.f32.xlu1 %v1173_v13  ;;  %1396 = vmatprep.subr.bf16.mxu0 %v3346_v25  ;;  %v1665_v13 = vld [vmem:[%s5075_s7 + $0xf0] sm:$0xff]  ;;  %v3360_v25 = vcombine.high %v1653_v20, %v1657_v3  ;;  %v3881_v59 = vld [vmem:[%s5077_s9 + $0x208] sm:$0xff]  }
 0x9db   : > { %1397 = vmatpush1.bf16.msra.mxu0 %v3345_v24  ;;  %v3367_v23 = vcombine.low %v1661_v12, %v1665_v13  ;;  %v3882_v60 = vld [vmem:[%s5077_s9 + $0x288] sm:$0xff]  }
 0x9dc   : > { %1398 = vmatprep.subr.bf16.mxu0 %v3338_v33  ;;  %v3859_v33 = vld [vmem:[%s5077_s9 + $0x270] sm:$0xff]  }
 0x9df   : > { %1399 = vmatpush1.bf16.msra.mxu0 %v3337_v32  ;;  %v3858_v32 = vld [vmem:[%s5077_s9 + $0x2b8] sm:$0xff]  }
 0x9e0   : > { %1478 = vmatprep.subr.bf16.mxu0 %v3350_v42 }
 0xa63   : > { %v1175_v14 = vpop.xlane.xlu1 %1174 }
 0xa64   : > { %v1177_v15 = vmul.f32 0.03125, %v1175_v14  ;;  %v1662_v14 = vld [vmem:[%s5075_s7 + $0xb8] sm:$0xff] }
 0xa66   : > { %v1178_v16 = vsub.f32 %v1170_v11, %v1177_v15  ;;  %v3358_v11 = vcombine.high %v1652_v5, %v1656_v6  ;;  %v1666_v15 = vld [vmem:[%s5075_s7 + $0xf8] sm:$0xff] }
 0xa67   : > { %v3370_v19 = vcombine.high %v1662_v14, %v1666_v15  ;;  %v3369_v24 = vcombine.low %v1662_v14, %v1666_v15 }
 0xa68   : > { %v1179_v17 = vmul.f32 %v1178_v16, %v1178_v16 }
 0xa6a   : > { %v1180_v18 = vsel %vm482_vm1, %v1179_v17, 0.0  ;;  %v3357_v17 = vcombine.low %v1652_v5, %v1656_v6 }
 0xa6b   : > { %1181 = vadd.xlane.f32.xlu1 %v1180_v18  ;;  %v3368_v18 = vcombine.high %v1661_v12, %v1665_v13 }
 0xaf4   : > { %v1182_v43 = vpop.xlane.xlu1 %1181 }
 0xaf5   : > { %v1183_v44 = vmul.f32 0.03125, %v1182_v43  ;;  %v3867_v43 = vld [vmem:[%s5077_s9 + $0x260] sm:$0xff]  }
 0xaf7   : > { %v1184_v45 = vadd.f32 1e-05, %v1183_v44  ;;  %v3868_v44 = vld [vmem:[%s5077_s9 + $0x2e0] sm:$0xff]  }
 0xaf9   : > { %3999 = vrsqrt.f32 %v1184_v45  ;;  %v3869_v45 = vld [vmem:[%s5077_s9 + $0x220] sm:$0xff]  }
 0xb06   : > { %v4000_v46 = vpop.eup %3999 }
 0xb07   : > { %v1186_v48 = vmul.f32 %v4000_v46, %v1178_v16  ;;  %v3355_v16 = vcombine.low %v1651_v2, %v1655_v4  ;;  %v3870_v46 = vld [vmem:[%s5077_s9 + $0x2a0] sm:$0xff]   ;;  %v3887_v2 = vld [vmem:[%s5077_s9 + $0x378] sm:$0xff]  }
 0xb08   : > { %v3888_v4 = vld [vmem:[%s5077_s9 + $0x3f8] sm:$0xff]  }
 0xb09   : > { %v1193_v0 = vmul.f32 %v3333_v47, %v1186_v48  ;;  %v4598_v48 = vld [vmem:[%s5076_s8] sm:$0xff] }
 0xb0b   : > { %v4468_v9 = vadd.f32 %v3334_v49, %v1193_v0  ;;  %v3871_v0 = vld [vmem:[%s5077_s9 + $0x258] sm:$0xff]  }
 0xb0d   : > { %v4472_v54 = vpack.c.bf16 %v4468_v9, %v4468_v9 }
 0xb0f   : > { %3351 = vmatmul.mubr.msk.bf16.vlgmr.msra.gmra.mxu1 %vm482_vm1, %v4472_v54  ;;  %3352 = vmatmul.mubr.msk.bf16.vlgmr.msra.gmra.mxu0 %vm482_vm1, %v4472_v54 }
 0xb10   : > { %1438 = vmatpush1.bf16.msra.mxu1 %v3347_v40  ;;  %1479 = vmatpush1.bf16.msra.mxu0 %v3349_v41  ;;  %v3865_v40 = vld [vmem:[%s5077_s9 + $0x228] sm:$0xff]  }
 0xb11   : > { %1439 = vmatprep.subr.bf16.mxu1 %v3340_v55  ;;  %1480 = vmatprep.subr.bf16.mxu0 %v3342_v56  ;;  %v3866_v41 = vld [vmem:[%s5077_s9 + $0x2a8] sm:$0xff]   ;;  %v3877_v55 = vld [vmem:[%s5077_s9 + $0x210] sm:$0xff]  }
 0xb12   : > { %1457 = vmatprep.mubr.bf16.mxu1 %v4111_v37  ;;  %1498 = vmatprep.mubr.bf16.mxu0 %v4111_v37  ;;  %v3878_v56 = vld [vmem:[%s5077_s9 + $0x290] sm:$0xff]  }
 0xb14   : > { %1440 = vmatpush1.bf16.msra.mxu1 %v3339_v61  ;;  %1481 = vmatpush1.bf16.msra.mxu0 %v3341_v62  ;;  %v3883_v61 = vld [vmem:[%s5077_s9 + $0x240] sm:$0xff]  }
 0xb15   : > { %1801 = vmatprep.subr.bf16.mxu1 %v3364_v63  ;;  %1842 = vmatprep.subr.bf16.mxu0 %v3366_v1  ;;  %v3884_v62 = vld [vmem:[%s5077_s9 + $0x2c0] sm:$0xff]  }
 0xb16   : > { %v3885_v63 = vld [vmem:[%s5077_s9 + $0x200] sm:$0xff]  }
 0xb17   : > { %3353 = vmatmul.mubr.msk.bf16.vlgmr.msra.gmra.mxu1 %vm482_vm1, %v4472_v54  ;;  %3354 = vmatmul.mubr.msk.bf16.vlgmr.msra.gmra.mxu0 %vm482_vm1, %v4472_v54  ;;  %v3886_v1 = vld [vmem:[%s5077_s9 + $0x280] sm:$0xff]  }
 0xb18   : > { %1802 = vmatpush1.bf16.msra.mxu1 %v3363_v7  ;;  %1843 = vmatpush1.bf16.msra.mxu0 %v3365_v8 }
 0xb19   : > { %1803 = vmatprep.subr.bf16.mxu1 %v3356_v10  ;;  %1844 = vmatprep.subr.bf16.mxu0 %v3358_v11 }
 0xb1a   : > { %1821 = vmatprep.mubr.bf16.mxu1 %v4111_v37  ;;  %1862 = vmatprep.mubr.bf16.mxu0 %v4111_v37 }
 0xb1c   : > { %1804 = vmatpush1.bf16.msra.mxu1 %v3355_v16  ;;  %1845 = vmatpush1.bf16.msra.mxu0 %v3357_v17 }
 0xb1d   : > { %1883 = vmatprep.subr.bf16.mxu1 %v3368_v18  ;;  %1924 = vmatprep.subr.bf16.mxu0 %v3370_v19 }
 0xb1f   : > { %3371 = vmatmul.mubr.msk.bf16.vlgmr.msra.gmra.mxu1 %vm482_vm1, %v4472_v54  ;;  %3372 = vmatmul.mubr.msk.bf16.vlgmr.msra.gmra.mxu0 %vm482_vm1, %v4472_v54 }
 0xb20   : > { %1884 = vmatpush1.bf16.msra.mxu1 %v3367_v23  ;;  %1925 = vmatpush1.bf16.msra.mxu0 %v3369_v24 }
 0xb21   : > { %1885 = vmatprep.subr.bf16.mxu1 %v3360_v25  ;;  %1926 = vmatprep.subr.bf16.mxu0 %v3362_v26 }
 0xb22   : > { %1903 = vmatprep.mubr.bf16.mxu1 %v4111_v37  ;;  %1944 = vmatprep.mubr.bf16.mxu0 %v4111_v37  ;;  %v1220_v37 = vlaneseq }
 0xb24   : > { %1886 = vmatpush1.bf16.msra.mxu1 %v3359_v27  ;;  %1927 = vmatpush1.bf16.msra.mxu0 %v3361_v28  ;;  %v4580_v42 = vshrl.u32 %v1220_v37, 7  ;;  %v4684_v27 = vld [vmem:[%s5076_s8 + $0x8] sm:$0xff] }
 0xb25   : > { %3537 = vmatprep.subr.bf16.mxu1 %v3855_v29  ;;  %3559 = vmatprep.subr.bf16.mxu0 %v3856_v30 }
 0xb26   : > { %v1246_v47 = vsub.s32 6, %v4580_v42  ;;  %v1222_v5 = vsub.s32 0, %v4580_v42  ;;  %v1230_v6 = vsub.s32 2, %v4580_v42  ;;  %v1238_v14 = vsub.s32 4, %v4580_v42 }
 0xb27   : > { %3373 = vmatmul.mubr.msk.bf16.vlgmr.msra.gmra.mxu1 %vm482_vm1, %v4472_v54  ;;  %3374 = vmatmul.mubr.msk.bf16.vlgmr.msra.gmra.mxu0 %vm482_vm1, %v4472_v54  ;;  %v3876_v54 = vld [vmem:[%s5077_s9 + $0x2d0] sm:$0xff]   ;;  %v1226_v30 = vsub.s32 1, %v4580_v42 }
 0xb28   : > { %3538 = vmatpush3.bf16.msra.mxu1 %v3857_v31  ;;  %3560 = vmatpush3.bf16.msra.mxu0 %v3858_v32  ;;  %v1247_v49 = vrot.slane %v4598_v48, %v1246_v47  ;;  %v1223_v7 = vrot.slane %v4598_v48, %v1222_v5  ;;  %v1231_v8 = vrot.slane %v4598_v48, %v1230_v6  ;;  %v1234_v31 = vsub.s32 3, %v4580_v42 }
 0xb29   : > { %3539 = vmatprep.subr.bf16.mxu1 %v3859_v33  ;;  %3561 = vmatprep.subr.bf16.mxu0 %v3860_v34  ;;  %v1239_v19 = vrot.slane %v4598_v48, %v1238_v14  ;;  %v1672_v32 = vrot.slane %v4684_v27, %v1222_v5  ;;  %v1680_v33 = vrot.slane %v4684_v27, %v1230_v6  ;;  %v3891_v6 = vld [vmem:[%s5077_s9 + $0x370] sm:$0xff]  }
 0xb2a   : > { %v1684_v37 = vrot.slane %v4684_v27, %v1234_v31 }
 0xb2c   : > { %3540 = vmatpush3.bf16.msra.mxu1 %v3861_v35  ;;  %3562 = vmatpush3.bf16.msra.mxu0 %v3862_v36  ;;  %v1676_v36 = vrot.slane %v4684_v27, %v1226_v30 }
 0xb2d   : > { %3541 = vmatprep.subr.bf16.mxu1 %v3863_v38  ;;  %3563 = vmatprep.subr.bf16.mxu0 %v3864_v39 }
 0xb30   : > { %3542 = vmatpush3.bf16.msra.mxu1 %v3865_v40  ;;  %3564 = vmatpush3.bf16.msra.mxu0 %v3866_v41 }
 0xb31   : > { %3543 = vmatprep.subr.bf16.mxu1 %v3867_v43  ;;  %3565 = vmatprep.subr.bf16.mxu0 %v3868_v44 }
 0xb34   : > { %3544 = vmatpush3.bf16.msra.mxu1 %v3869_v45  ;;  %3566 = vmatpush3.bf16.msra.mxu0 %v3870_v46 }
 0xb35   : > { %3545 = vmatprep.subr.bf16.mxu1 %v3871_v0  ;;  %3567 = vmatprep.subr.bf16.mxu0 %v3872_v50 }
 0xb38   : > { %3546 = vmatpush3.bf16.msra.mxu1 %v3873_v51  ;;  %3568 = vmatpush3.bf16.msra.mxu0 %v3874_v52  ;;  %v1242_v52 = vsub.s32 5, %v4580_v42 }
 0xb39   : > { %3547 = vmatprep.subr.bf16.mxu1 %v3875_v53  ;;  %3569 = vmatprep.subr.bf16.mxu0 %v3876_v54  ;;  %v1250_v53 = vsub.s32 7, %v4580_v42  ;;  %v3948_v42 = vld [vmem:[%s5077_s9 + $0xc0] sm:$0xff]  }
 0xb3c   : > { %3548 = vmatpush3.bf16.msra.mxu1 %v3877_v55  ;;  %3570 = vmatpush3.bf16.msra.mxu0 %v3878_v56 }
 0xb3d   : > { %3549 = vmatprep.subr.bf16.mxu1 %v3879_v57  ;;  %3571 = vmatprep.subr.bf16.mxu0 %v3880_v58 }
 0xb40   : > { %3550 = vmatpush3.bf16.msra.mxu1 %v3881_v59  ;;  %3572 = vmatpush3.bf16.msra.mxu0 %v3882_v60  ;;  %v1692_v60 = vrot.slane %v4684_v27, %v1242_v52 }
 0xb41   : > { %3551 = vmatprep.subr.bf16.mxu1 %v3883_v61  ;;  %3573 = vmatprep.subr.bf16.mxu0 %v3884_v62  ;;  %v1700_v61 = vrot.slane %v4684_v27, %v1250_v53  ;;  %v3889_v62 = vld [vmem:[%s5077_s9 + $0x338] sm:$0xff]  }
 0xb44   : > { %3552 = vmatpush3.bf16.msra.mxu1 %v3885_v63  ;;  %3574 = vmatpush3.bf16.msra.mxu0 %v3886_v1  ;;  %v3890_v63 = vld [vmem:[%s5077_s9 + $0x3b8] sm:$0xff]  }
 0xb45   : > { %3581 = vmatprep.subr.bf16.mxu1 %v3887_v2  ;;  %3603 = vmatprep.subr.bf16.mxu0 %v3888_v4 }
 0xbcf   : > { %v1377_v10 = vpop.f32.mrf.mxu1  ;;  %v1418_v11 = vpop.f32.mrf.mxu0 }
 0xbd0   : > { %v4661_v12 = vadd.f32 %v1377_v10, %v1223_v7  ;;  %v4663_v13 = vadd.f32 %v1418_v11, %v1231_v8  ;;  %v3892_v7 = vld [vmem:[%s5077_s9 + $0x3f0] sm:$0xff]  }
 0xbd1   : > { %v4666_v15 = vpop.f32.mrf.mxu1  ;;  %v4668_v16 = vpop.f32.mrf.mxu0 }
 0xbd3   : > { %v1381_v17 = vpop.f32.mrf.mxu1  ;;  %v1422_v18 = vpop.f32.mrf.mxu0 }
 0xbd4   : > { %v3893_v18 = vld [vmem:[%s5077_s9 + $0x330] sm:$0xff]  }
 0xbd5   : > { %v1382_v20 = vpop.f32.mrf.mxu1  ;;  %v1423_v3 = vpop.f32.mrf.mxu0 }
 0xbd7   : > { %v1459_v21 = vpop.f32.mrf.mxu1  ;;  %v1500_v22 = vpop.f32.mrf.mxu0 }
 0xbd8   : > { %v4673_v23 = vadd.f32 %v1459_v21, %v1239_v19  ;;  %v4675_v24 = vadd.f32 %v1500_v22, %v1247_v49  ;;  %v3894_v19 = vld [vmem:[%s5077_s9 + $0x3b0] sm:$0xff]   ;;  %v3895_v21 = vld [vmem:[%s5077_s9 + $0x368] sm:$0xff]  }
 0xbd9   : > { %v4677_v25 = vpop.f32.mrf.mxu1  ;;  %v4679_v26 = vpop.f32.mrf.mxu0  ;;  %v3896_v22 = vld [vmem:[%s5077_s9 + $0x3e8] sm:$0xff]  }
 0xbdb   : > { %v1463_v28 = vpop.f32.mrf.mxu1  ;;  %v1504_v29 = vpop.f32.mrf.mxu0 }
 0xbdd   : > { %v1464_v34 = vpop.f32.mrf.mxu1  ;;  %v1505_v35 = vpop.f32.mrf.mxu0 }
 0xbdf   : > { %v1823_v38 = vpop.f32.mrf.mxu1  ;;  %v1864_v39 = vpop.f32.mrf.mxu0 }
 0xbe0   : > { %v1824_v40 = vadd.f32 %v1823_v38, %v1672_v32  ;;  %v1865_v41 = vadd.f32 %v1864_v39, %v1680_v33  ;;  %v3899_v38 = vld [vmem:[%s5077_s9 + $0x360] sm:$0xff]  }
 0xbe1   : > { %v1825_v43 = vpop.f32.mrf.mxu1  ;;  %v1866_v44 = vpop.f32.mrf.mxu0  ;;  %v3900_v39 = vld [vmem:[%s5077_s9 + $0x3e0] sm:$0xff]  }
 0xbe2   : > { %v1826_v45 = vadd.f32 %v1825_v43, %v1676_v36  ;;  %v1867_v46 = vadd.f32 %v1866_v44, %v1684_v37  ;;  %v1953_v49 = vmax.f32 %v1824_v40, 0.0  ;;  %v1955_v0 = vmax.f32 %v1865_v41, 0.0  ;;  %v3897_v36 = vld [vmem:[%s5077_s9 + $0x328] sm:$0xff]   ;;  %v3901_v40 = vld [vmem:[%s5077_s9 + $0x320] sm:$0xff]   ;;  %v3903_v43 = vld [vmem:[%s5077_s9 + $0x358] sm:$0xff]  }
 0xbe3   : > { %v1827_v50 = vpop.f32.mrf.mxu1  ;;  %v1868_v51 = vpop.f32.mrf.mxu0  ;;  %v3898_v37 = vld [vmem:[%s5077_s9 + $0x3a8] sm:$0xff]   ;;  %v3902_v41 = vld [vmem:[%s5077_s9 + $0x3a0] sm:$0xff]   ;;  %v3904_v44 = vld [vmem:[%s5077_s9 + $0x3d8] sm:$0xff]  }
 0xbe4   : > { %v1954_v54 = vmax.f32 %v1826_v45, 0.0  ;;  %v1956_v55 = vmax.f32 %v1867_v46, 0.0  ;;  %v1961_v1 = vpack.c.bf16 %v1953_v49, %v1953_v49  ;;  %v1963_v2 = vpack.c.bf16 %v1955_v0, %v1955_v0  ;;  %v3905_v45 = vld [vmem:[%s5077_s9 + $0x318] sm:$0xff]   ;;  %v3907_v49 = vld [vmem:[%s5077_s9 + $0x350] sm:$0xff]  }
 0xbe5   : > { %v1828_v56 = vpop.f32.mrf.mxu1  ;;  %v1869_v57 = vpop.f32.mrf.mxu0  ;;  %v3906_v46 = vld [vmem:[%s5077_s9 + $0x398] sm:$0xff]   ;;  %v3908_v0 = vld [vmem:[%s5077_s9 + $0x3d0] sm:$0xff]  }
 0xbe6   : > { %v1962_v58 = vpack.c.bf16 %v1954_v54, %v1954_v54  ;;  %v1964_v59 = vpack.c.bf16 %v1956_v55, %v1956_v55  ;;  %v3909_v50 = vld [vmem:[%s5077_s9 + $0x310] sm:$0xff]   ;;  %v1688_v54 = vrot.slane %v4684_v27, %v1238_v14  ;;  %v1696_v55 = vrot.slane %v4684_v27, %v1246_v47  ;;  %v3911_v56 = vld [vmem:[%s5077_s9 + $0x348] sm:$0xff]  }
 0xbe7   : > { %v4710_v4 = vpop.f32.mrf.mxu1  ;;  %v4712_v5 = vpop.f32.mrf.mxu0  ;;  %v3910_v51 = vld [vmem:[%s5077_s9 + $0x390] sm:$0xff]   ;;  %v3912_v57 = vld [vmem:[%s5077_s9 + $0x3c8] sm:$0xff]   ;;  %v1235_v14 = vrot.slane %v4598_v48, %v1234_v31  ;;  %v3916_v31 = vld [vmem:[%s5077_s9 + $0x3c0] sm:$0xff]  }
 0xbe8   : > { %2513 = vmatprep.mubr.bf16.mxu1 %v1962_v58  ;;  %2553 = vmatprep.mubr.bf16.mxu0 %v1964_v59  ;;  %v1227_v58 = vrot.slane %v4598_v48, %v1226_v30  ;;  %v3913_v47 = vld [vmem:[%s5077_s9 + $0x308] sm:$0xff]   ;;  %v1906_v59 = vadd.f32 %v4710_v4, %v1688_v54  ;;  %v3915_v30 = vld [vmem:[%s5077_s9 + $0x340] sm:$0xff]  }
 0xbe9   : > { %v1907_v8 = vpop.f32.mrf.mxu1  ;;  %v1948_v10 = vpop.f32.mrf.mxu0  ;;  %2514 = vmatmul.mubr.bf16.vlgmr.msra.gmra.mxu1 %v1961_v1  ;;  %2554 = vmatmul.mubr.bf16.vlgmr.msra.gmra.mxu0 %v1963_v2  ;;  %v3914_v27 = vld [vmem:[%s5077_s9 + $0x388] sm:$0xff]   ;;  %v3918_v1 = vld [vmem:[%s5077_s9 + $0x380] sm:$0xff]  }
 0xbea   : > { %v1908_v11 = vadd.f32 %v1907_v8, %v1692_v60  ;;  %v1949_v17 = vadd.f32 %v1948_v10, %v1700_v61  ;;  %3582 = vmatpush3.bf16.msra.mxu1 %v3889_v62  ;;  %3604 = vmatpush3.bf16.msra.mxu0 %v3890_v63  ;;  %v1947_v60 = vadd.f32 %v4712_v5, %v1696_v55  ;;  %v3917_v63 = vld [vmem:[%s5077_s9 + $0x300] sm:$0xff]   ;;  %v1957_v2 = vmax.f32 %v1906_v59, 0.0  ;;  %v3946_v54 = vld [vmem:[%s5077_s9 + $0x88] sm:$0xff]   ;;  %v3954_v59 = vld [vmem:[%s5077_s9 + $0x1b8] sm:$0xff]  }
 0xbeb   : > { %v1909_v20 = vpop.f32.mrf.mxu1  ;;  %v1950_v3 = vpop.f32.mrf.mxu0  ;;  %3583 = vmatprep.subr.bf16.mxu1 %v3891_v6  ;;  %3605 = vmatprep.subr.bf16.mxu0 %v3892_v7  ;;  %v1380_v61 = vadd.f32 %v4666_v15, %v1227_v58  ;;  %v1421_v62 = vadd.f32 %v4668_v16, %v1235_v14  ;;  %v3919_v15 = vld [vmem:[%s5077_s9 + $0x78] sm:$0xff]   ;;  %v3947_v55 = vld [vmem:[%s5077_s9 + $0x40] sm:$0xff]  }
 0xbec   : > { %v1958_v28 = vmax.f32 %v1908_v11, 0.0  ;;  %v1960_v29 = vmax.f32 %v1949_v17, 0.0  ;;  %v1959_v4 = vmax.f32 %v1947_v60, 0.0  ;;  %v3920_v16 = vld [vmem:[%s5077_s9 + $0xf8] sm:$0xff]   ;;  %v1965_v8 = vpack.c.bf16 %v1957_v2, %v1957_v2  ;;  %v3925_v3 = vld [vmem:[%s5077_s9 + $0x30] sm:$0xff]   ;;  %v3960_v2 = vld [vmem:[%s5077_s9 + $0x1e8] sm:$0xff]  }
 0xbed   : > { %v1910_v32 = vpop.f32.mrf.mxu1  ;;  %v1951_v33 = vpop.f32.mrf.mxu0  ;;  %v1508_v5 = vmax.f32 %v1380_v61, 0.0  ;;  %v1510_v6 = vmax.f32 %v1421_v62, 0.0  ;;  %v3921_v7 = vld [vmem:[%s5077_s9 + $0x38] sm:$0xff]   ;;  %v3955_v60 = vld [vmem:[%s5077_s9 + $0x170] sm:$0xff]  }
 0xbee   : > { %v1966_v34 = vpack.c.bf16 %v1958_v28, %v1958_v28  ;;  %v1968_v35 = vpack.c.bf16 %v1960_v29, %v1960_v29  ;;  %3584 = vmatpush3.bf16.msra.mxu1 %v3893_v18  ;;  %3606 = vmatpush3.bf16.msra.mxu0 %v3894_v19  ;;  %v1967_v10 = vpack.c.bf16 %v1959_v4, %v1959_v4  ;;  %v3922_v11 = vld [vmem:[%s5077_s9 + $0xb8] sm:$0xff]   ;;  %v3923_v18 = vld [vmem:[%s5077_s9 + $0x70] sm:$0xff]   ;;  %v3928_v28 = vld [vmem:[%s5077_s9 + $0xe8] sm:$0xff]  }
 0xbef   : > { %3585 = vmatprep.subr.bf16.mxu1 %v3895_v21  ;;  %3607 = vmatprep.subr.bf16.mxu0 %v3896_v22  ;;  %v1516_v17 = vpack.c.bf16 %v1508_v5, %v1508_v5  ;;  %v3924_v19 = vld [vmem:[%s5077_s9 + $0xf0] sm:$0xff]   ;;  %v1518_v20 = vpack.c.bf16 %v1510_v6, %v1510_v6  ;;  %v3927_v22 = vld [vmem:[%s5077_s9 + $0x68] sm:$0xff]   ;;  %v3931_v33 = vld [vmem:[%s5077_s9 + $0x60] sm:$0xff]  }
 0xbf0   : > { %2593 = vmatprep.mubr.bf16.mxu1 %v1966_v34  ;;  %2633 = vmatprep.mubr.bf16.mxu0 %v1968_v35  ;;  %v3926_v21 = vld [vmem:[%s5077_s9 + $0xb0] sm:$0xff]   ;;  %v3929_v29 = vld [vmem:[%s5077_s9 + $0x28] sm:$0xff]   ;;  %v3932_v34 = vld [vmem:[%s5077_s9 + $0xe0] sm:$0xff]  }
 0xbf1   : > { %v3930_v32 = vld [vmem:[%s5077_s9 + $0xa8] sm:$0xff]   ;;  %v3933_v35 = vld [vmem:[%s5077_s9 + $0x20] sm:$0xff]   ;;  %v3951_v58 = vld [vmem:[%s5077_s9 + $0x178] sm:$0xff]  }
 0xbf2   : > { %3586 = vmatpush3.bf16.msra.mxu1 %v3897_v36  ;;  %3608 = vmatpush3.bf16.msra.mxu0 %v3898_v37  ;;  %v3934_v36 = vld [vmem:[%s5077_s9 + $0xa0] sm:$0xff]   ;;  %v3935_v37 = vld [vmem:[%s5077_s9 + $0x58] sm:$0xff]   ;;  %v3957_v62 = vld [vmem:[%s5077_s9 + $0x130] sm:$0xff]  }
 0xbf3   : > { %3587 = vmatprep.subr.bf16.mxu1 %v3899_v38  ;;  %3609 = vmatprep.subr.bf16.mxu0 %v3900_v39  ;;  %v3936_v38 = vld [vmem:[%s5077_s9 + $0xd8] sm:$0xff]   ;;  %v3961_v4 = vld [vmem:[%s5077_s9 + $0x128] sm:$0xff]   ;;  %v3964_v5 = vld [vmem:[%s5077_s9 + $0x1e0] sm:$0xff]  }
 0xbf4   : > { %v3937_v39 = vld [vmem:[%s5077_s9 + $0x18] sm:$0xff]   ;;  %v3965_v6 = vld [vmem:[%s5077_s9 + $0x120] sm:$0xff]  }
 0xbf6   : > { %3588 = vmatpush3.bf16.msra.mxu1 %v3901_v40  ;;  %3610 = vmatpush3.bf16.msra.mxu0 %v3902_v41  ;;  %v3938_v40 = vld [vmem:[%s5077_s9 + $0x98] sm:$0xff]   ;;  %v3939_v41 = vld [vmem:[%s5077_s9 + $0x50] sm:$0xff]  }
 0xbf7   : > { %3589 = vmatprep.subr.bf16.mxu1 %v3903_v43  ;;  %3611 = vmatprep.subr.bf16.mxu0 %v3904_v44  ;;  %v3940_v43 = vld [vmem:[%s5077_s9 + $0xd0] sm:$0xff]  }
 0xbf8   : > { %v3941_v44 = vld [vmem:[%s5077_s9 + $0x10] sm:$0xff]  }
 0xbfa   : > { %3590 = vmatpush3.bf16.msra.mxu1 %v3905_v45  ;;  %3612 = vmatpush3.bf16.msra.mxu0 %v3906_v46  ;;  %v3942_v45 = vld [vmem:[%s5077_s9 + $0x90] sm:$0xff]   ;;  %v3943_v46 = vld [vmem:[%s5077_s9 + $0x48] sm:$0xff]  }
 0xbfb   : > { %3591 = vmatprep.subr.bf16.mxu1 %v3907_v49  ;;  %3613 = vmatprep.subr.bf16.mxu0 %v3908_v0  ;;  %v3944_v49 = vld [vmem:[%s5077_s9 + $0xc8] sm:$0xff]   ;;  %v1243_v0 = vrot.slane %v4598_v48, %v1242_v52 }
 0xbfe   : > { %3592 = vmatpush3.bf16.msra.mxu1 %v3909_v50  ;;  %3614 = vmatpush3.bf16.msra.mxu0 %v3910_v51  ;;  %v1251_v50 = vrot.slane %v4598_v48, %v1250_v53  ;;  %v3945_v51 = vld [vmem:[%s5077_s9 + $0x8] sm:$0xff]   ;;  %v1462_v48 = vadd.f32 %v4677_v25, %v1243_v0  ;;  %v3949_v53 = vld [vmem:[%s5077_s9] sm:$0xff]   ;;  %v1509_v25 = vmax.f32 %v4663_v13, 0.0 }
 0xbff   : > { %3593 = vmatprep.subr.bf16.mxu1 %v3911_v56  ;;  %3615 = vmatprep.subr.bf16.mxu0 %v3912_v57  ;;  %v1507_v56 = vmax.f32 %v4661_v12, 0.0  ;;  %v3950_v57 = vld [vmem:[%s5077_s9 + $0x80] sm:$0xff]   ;;  %v3953_v12 = vld [vmem:[%s5077_s9 + $0x138] sm:$0xff]  }
 0xc00   : > { %v1503_v52 = vadd.f32 %v4679_v26, %v1251_v50  ;;  %v3952_v26 = vld [vmem:[%s5077_s9 + $0x1f8] sm:$0xff]   ;;  %v1512_v14 = vmax.f32 %v1462_v48, 0.0  ;;  %v1517_v13 = vpack.c.bf16 %v1509_v25, %v1509_v25 }
 0xc02   : > { %3594 = vmatpush3.bf16.msra.mxu1 %v3913_v47  ;;  %3616 = vmatpush3.bf16.msra.mxu0 %v3914_v27  ;;  %v1514_v47 = vmax.f32 %v1503_v52, 0.0  ;;  %v1515_v27 = vpack.c.bf16 %v1507_v56, %v1507_v56 }
 0xc03   : > { %3595 = vmatprep.subr.bf16.mxu1 %v3915_v30  ;;  %3617 = vmatprep.subr.bf16.mxu0 %v3916_v31  ;;  %v1520_v30 = vpack.c.bf16 %v1512_v14, %v1512_v14  ;;  %v3956_v31 = vld [vmem:[%s5077_s9 + $0x1f0] sm:$0xff]  }
 0xc04   : > { %v1522_v61 = vpack.c.bf16 %v1514_v47, %v1514_v47 }
 0xc06   : > { %3596 = vmatpush3.bf16.msra.mxu1 %v3917_v63  ;;  %3618 = vmatpush3.bf16.msra.mxu0 %v3918_v1  ;;  %v3958_v63 = vld [vmem:[%s5077_s9 + $0x1b0] sm:$0xff]   ;;  %v3959_v1 = vld [vmem:[%s5077_s9 + $0x168] sm:$0xff]  }
 0xc07   : > { %3625 = vmatprep.subr.bf16.mxu1 %v3919_v15  ;;  %3647 = vmatprep.subr.bf16.mxu0 %v3920_v16  ;;  %v3962_v15 = vld [vmem:[%s5077_s9 + $0x1a8] sm:$0xff]   ;;  %v3963_v16 = vld [vmem:[%s5077_s9 + $0x160] sm:$0xff]  }
 0xc09   : > { %2594 = vmatmul.mubr.bf16.vlgmr.msra.gmra.mxu1 %v1965_v8  ;;  %2634 = vmatmul.mubr.bf16.vlgmr.msra.gmra.mxu0 %v1967_v10  ;;  %v3967_v8 = vld [vmem:[%s5077_s9 + $0x158] sm:$0xff]  }
 0xc0a   : > { %3626 = vmatpush3.bf16.msra.mxu1 %v3921_v7  ;;  %3057 = vmatprep.mubr.bf16.mxu1 %v1516_v17  ;;  %v3966_v7 = vld [vmem:[%s5077_s9 + $0x1a0] sm:$0xff]   ;;  %v3968_v10 = vld [vmem:[%s5077_s9 + $0x1d8] sm:$0xff]  }
 0xc0b   : > { %3648 = vmatpush3.bf16.msra.mxu0 %v3922_v11  ;;  %3097 = vmatprep.mubr.bf16.mxu0 %v1518_v20  ;;  %v3969_v11 = vld [vmem:[%s5077_s9 + $0x118] sm:$0xff]   ;;  %v3973_v20 = vld [vmem:[%s5077_s9 + $0x110] sm:$0xff]  }
 0xc0c   : > { %3627 = vmatprep.subr.bf16.mxu1 %v3923_v18  ;;  %3649 = vmatprep.subr.bf16.mxu0 %v3924_v19  ;;  %v3970_v17 = vld [vmem:[%s5077_s9 + $0x198] sm:$0xff]   ;;  %v3971_v18 = vld [vmem:[%s5077_s9 + $0x150] sm:$0xff]  }
 0xc0d   : > { %v3972_v19 = vld [vmem:[%s5077_s9 + $0x1d0] sm:$0xff]  }
 0xc0e   : > { %3628 = vmatpush3.bf16.msra.mxu1 %v3925_v3  ;;  %v3974_v3 = vld [vmem:[%s5077_s9 + $0x190] sm:$0xff]  }
 0xc0f   : > { %3650 = vmatpush3.bf16.msra.mxu0 %v3926_v21  ;;  %3629 = vmatprep.subr.bf16.mxu1 %v3927_v22  ;;  %v3975_v21 = vld [vmem:[%s5077_s9 + $0x148] sm:$0xff]  }
 0xc10   : > { %3651 = vmatprep.subr.bf16.mxu0 %v3928_v28  ;;  %v3976_v22 = vld [vmem:[%s5077_s9 + $0x1c8] sm:$0xff]  }
 0xc11   : > { %v3977_v28 = vld [vmem:[%s5077_s9 + $0x108] sm:$0xff]  }
 0xc12   : > { %3630 = vmatpush3.bf16.msra.mxu1 %v3929_v29  ;;  %v3978_v29 = vld [vmem:[%s5077_s9 + $0x188] sm:$0xff]  }
 0xc13   : > { %3652 = vmatpush3.bf16.msra.mxu0 %v3930_v32  ;;  %3631 = vmatprep.subr.bf16.mxu1 %v3931_v33  ;;  %v3979_v32 = vld [vmem:[%s5077_s9 + $0x140] sm:$0xff]  }
 0xc14   : > { %3653 = vmatprep.subr.bf16.mxu0 %v3932_v34  ;;  %v3980_v33 = vld [vmem:[%s5077_s9 + $0x1c0] sm:$0xff]  }
 0xc15   : > { %v3981_v34 = vld [vmem:[%s5077_s9 + $0x100] sm:$0xff]  }
 0xc16   : > { %3632 = vmatpush3.bf16.msra.mxu1 %v3933_v35  ;;  %v1511_v35 = vmax.f32 %v4673_v23, 0.0 }
 0xc17   : > { %3654 = vmatpush3.bf16.msra.mxu0 %v3934_v36  ;;  %3633 = vmatprep.subr.bf16.mxu1 %v3935_v37  ;;  %v3982_v36 = vld [vmem:[%s5077_s9 + $0x180] sm:$0xff]   ;;  %v1513_v37 = vmax.f32 %v4675_v24, 0.0 }
 0xc18   : > { %3655 = vmatprep.subr.bf16.mxu0 %v3936_v38  ;;  %v1519_v38 = vpack.c.bf16 %v1511_v35, %v1511_v35 }
 0xc1a   : > { %3634 = vmatpush3.bf16.msra.mxu1 %v3937_v39  ;;  %v1521_v39 = vpack.c.bf16 %v1513_v37, %v1513_v37 }
 0xc1b   : > { %3656 = vmatpush3.bf16.msra.mxu0 %v3938_v40  ;;  %3635 = vmatprep.subr.bf16.mxu1 %v3939_v41 }
 0xc1c   : > { %3657 = vmatprep.subr.bf16.mxu0 %v3940_v43 }
 0xc1e   : > { %3636 = vmatpush3.bf16.msra.mxu1 %v3941_v44 }
 0xc1f   : > { %3658 = vmatpush3.bf16.msra.mxu0 %v3942_v45  ;;  %3637 = vmatprep.subr.bf16.mxu1 %v3943_v46 }
 0xc20   : > { %3659 = vmatprep.subr.bf16.mxu0 %v3944_v49 }
 0xc22   : > { %3638 = vmatpush3.bf16.msra.mxu1 %v3945_v51 }
 0xc23   : > { %3660 = vmatpush3.bf16.msra.mxu0 %v3946_v54  ;;  %3639 = vmatprep.subr.bf16.mxu1 %v3947_v55 }
 0xc24   : > { %3661 = vmatprep.subr.bf16.mxu0 %v3948_v42 }
 0xc26   : > { %3640 = vmatpush3.bf16.msra.mxu1 %v3949_v53 }
 0xc27   : > { %3662 = vmatpush3.bf16.msra.mxu0 %v3950_v57  ;;  %3669 = vmatprep.subr.bf16.mxu1 %v3951_v58 }
 0xc28   : > { %3691 = vmatprep.subr.bf16.mxu0 %v3952_v26 }
 0xc29   : > { %3058 = vmatmul.mubr.bf16.vlgmr.msra.gmra.mxu1 %v1515_v27 }
 0xc2a   : > { %3098 = vmatmul.mubr.bf16.vlgmr.msra.gmra.mxu0 %v1517_v13  ;;  %3670 = vmatpush3.bf16.msra.mxu1 %v3953_v12 }
 0xc2b   : > { %3137 = vmatprep.mubr.bf16.mxu1 %v1520_v30  ;;  %3692 = vmatpush3.bf16.msra.mxu0 %v3954_v59 }
 0xc2c   : > { %3177 = vmatprep.mubr.bf16.mxu0 %v1522_v61  ;;  %3671 = vmatprep.subr.bf16.mxu1 %v3955_v60 }
 0xc2d   : > { %3693 = vmatprep.subr.bf16.mxu0 %v3956_v31 }
 0xc2e   : > { %3672 = vmatpush3.bf16.msra.mxu1 %v3957_v62 }
 0xc2f   : > { %3694 = vmatpush3.bf16.msra.mxu0 %v3958_v63  ;;  %3673 = vmatprep.subr.bf16.mxu1 %v3959_v1 }
 0xc30   : > { %3695 = vmatprep.subr.bf16.mxu0 %v3960_v2 }
 0xc32   : > { %3674 = vmatpush3.bf16.msra.mxu1 %v3961_v4 }
 0xc33   : > { %3696 = vmatpush3.bf16.msra.mxu0 %v3962_v15  ;;  %3675 = vmatprep.subr.bf16.mxu1 %v3963_v16 }
 0xc34   : > { %3697 = vmatprep.subr.bf16.mxu0 %v3964_v5 }
 0xc36   : > { %3676 = vmatpush3.bf16.msra.mxu1 %v3965_v6 }
 0xc37   : > { %3698 = vmatpush3.bf16.msra.mxu0 %v3966_v7  ;;  %3677 = vmatprep.subr.bf16.mxu1 %v3967_v8 }
 0xc38   : > { %3699 = vmatprep.subr.bf16.mxu0 %v3968_v10 }
 0xc3a   : > { %3678 = vmatpush3.bf16.msra.mxu1 %v3969_v11  ;;  %v3503_v11 = vld [vmem:[%s5078_s10] ss:$0 sm:$0xff] }
 0xc3b   : > { %3700 = vmatpush3.bf16.msra.mxu0 %v3970_v17  ;;  %3679 = vmatprep.subr.bf16.mxu1 %v3971_v18 }
 0xc3c   : > { %3701 = vmatprep.subr.bf16.mxu0 %v3972_v19 }
 0xc3e   : > { %3680 = vmatpush3.bf16.msra.mxu1 %v3973_v20 }
 0xc3f   : > { %3702 = vmatpush3.bf16.msra.mxu0 %v3974_v3  ;;  %3681 = vmatprep.subr.bf16.mxu1 %v3975_v21 }
 0xc40   : > { %3703 = vmatprep.subr.bf16.mxu0 %v3976_v22 }
 0xc42   : > { %3682 = vmatpush3.bf16.msra.mxu1 %v3977_v28 }
 0xc43   : > { %3704 = vmatpush3.bf16.msra.mxu0 %v3978_v29  ;;  %3683 = vmatprep.subr.bf16.mxu1 %v3979_v32 }
 0xc44   : > { %3705 = vmatprep.subr.bf16.mxu0 %v3980_v33 }
 0xc46   : > { %3684 = vmatpush3.bf16.msra.mxu1 %v3981_v34 }
 0xc47   : > { %3706 = vmatpush3.bf16.msra.mxu0 %v3982_v36 }
 0xc49   : > { %3138 = vmatmul.mubr.bf16.vlgmr.msra.gmra.mxu1 %v1519_v38  ;;  %v3505_v38 = vld [vmem:[%s5080_s12] ss:$0 sm:$0xff] }
 0xc4a   : > { %3178 = vmatmul.mubr.bf16.vlgmr.msra.gmra.mxu0 %v1521_v39 }
 0xca9   : > { %v3553_v40 = vpop.f32.mrf.mxu1  ;;  %v3575_v41 = vpop.f32.mrf.mxu0 }
 0xcab   : > { %v3554_v43 = vpop.f32.mrf.mxu1  ;;  %v3576_v44 = vpop.f32.mrf.mxu0 }
 0xcac   : > { %v3555_v23 = vadd.f32 %v3554_v43, %v3553_v40  ;;  %v3577_v45 = vadd.f32 %v3576_v44, %v3575_v41 }
 0xcad   : > { %v3556_v46 = vpop.f32.mrf.mxu1  ;;  %v3578_v49 = vpop.f32.mrf.mxu0 }
 0xcae   : > { %v2556_v0 = vadd.f32 %v3577_v45, %v3555_v23 }
 0xcaf   : > { %v3557_v50 = vpop.f32.mrf.mxu1  ;;  %v3579_v51 = vpop.f32.mrf.mxu0 }
 0xcc9   : > { %v3597_v54 = vpop.f32.mrf.mxu1  ;;  %v3619_v24 = vpop.f32.mrf.mxu0 }
 0xccb   : > { %v3598_v55 = vpop.f32.mrf.mxu1  ;;  %v3620_v42 = vpop.f32.mrf.mxu0 }
 0xccc   : > { %v3599_v59 = vadd.f32 %v3598_v55, %v3597_v54  ;;  %v3621_v60 = vadd.f32 %v3620_v42, %v3619_v24 }
 0xccd   : > { %v3600_v48 = vpop.f32.mrf.mxu1  ;;  %v3622_v52 = vpop.f32.mrf.mxu0 }
 0xcce   : > { %v2596_v13 = vadd.f32 %v3599_v59, %v2556_v0 }
 0xccf   : > { %v3601_v53 = vpop.f32.mrf.mxu1  ;;  %v3623_v56 = vpop.f32.mrf.mxu0 }
 0xcd0   : > { %v2636_v31 = vadd.f32 %v3621_v60, %v2596_v13 }
 0xce9   : > { %v3641_v57 = vpop.f32.mrf.mxu1 }
 0xcea   : > { %v3663_v58 = vpop.f32.mrf.mxu0 }
 0xceb   : > { %v3642_v25 = vpop.f32.mrf.mxu1 }
 0xcec   : > { %v3664_v26 = vpop.f32.mrf.mxu0  ;;  %v3643_v30 = vadd.f32 %v3642_v25, %v3641_v57 }
 0xced   : > { %v3644_v14 = vpop.f32.mrf.mxu1  ;;  %v3665_v63 = vadd.f32 %v3664_v26, %v3663_v58 }
 0xcee   : > { %v3666_v47 = vpop.f32.mrf.mxu0  ;;  %v3060_v61 = vadd.f32 %v3643_v30, %v2636_v31 }
 0xcef   : > { %v3645_v12 = vpop.f32.mrf.mxu1 }
 0xcf0   : > { %v3667_v27 = vpop.f32.mrf.mxu0  ;;  %v3100_v4 = vadd.f32 %v3665_v63, %v3060_v61 }
 0xd09   : > { %v3685_v62 = vpop.f32.mrf.mxu1 }
 0xd0a   : > { %v3707_v1 = vpop.f32.mrf.mxu0 }
 0xd0b   : > { %v3686_v2 = vpop.f32.mrf.mxu1 }
 0xd0c   : > { %v3687_v15 = vadd.f32 %v3686_v2, %v3685_v62  ;;  %v3708_v16 = vpop.f32.mrf.mxu0 }
 0xd0d   : > { %v3688_v5 = vpop.f32.mrf.mxu1  ;;  %v3709_v7 = vadd.f32 %v3708_v16, %v3707_v1 }
 0xd0e   : > { %v3140_v6 = vadd.f32 %v3687_v15, %v3100_v4  ;;  %v3710_v8 = vpop.f32.mrf.mxu0 }
 0xd0f   : > { %v3689_v10 = vpop.f32.mrf.mxu1 }
 0xd10   : > { %v3180_v17 = vadd.f32 %v3709_v7, %v3140_v6  ;;  %v3711_v18 = vpop.f32.mrf.mxu0 }
 0xd12   : > { %v3192_v19 = vadd.f32 %v3503_v11, %v3180_v17 }
 0xd14   : > { %v3193_v20 = vadd.f32 %v3192_v19, %v4468_v9  ;;  %v3504_v9 = vld [vmem:[%s5079_s11] ss:$0 sm:$0xff] }
 0xd16   : > { %v3196_v3 = vsel %vm482_vm1, %v3193_v20, 0.0 }
 0xd17   : > { %3197 = vadd.xlane.f32.xlu1 %v3196_v3 }
 0xda0   : > { %v3198_v21 = vpop.xlane.xlu1 %3197 }
 0xda1   : > { %v3199_v22 = vmul.f32 0.03125, %v3198_v21 }
 0xda3   : > { %v3200_v28 = vsub.f32 %v3193_v20, %v3199_v22 }
 0xda5   : > { %v3201_v29 = vmul.f32 %v3200_v28, %v3200_v28 }
 0xda7   : > { %v3202_v32 = vsel %vm482_vm1, %v3201_v29, 0.0 }
 0xda8   : > { %3203 = vadd.xlane.f32.xlu1 %v3202_v32 }
 0xe31   : > { %v3204_v33 = vpop.xlane.xlu1 %3203 }
 0xe32   : > { %v3205_v34 = vmul.f32 0.03125, %v3204_v33 }
 0xe34   : > { %v3206_v35 = vadd.f32 1e-05, %v3205_v34 }
 0xe36   : > { %4001 = vrsqrt.f32 %v3206_v35 }
 0xe43   : > { %v4002_v36 = vpop.eup %4001 }
 0xe44   : > { %v3208_v37 = vmul.f32 %v4002_v36, %v3200_v28 }
 0xe46   : > { %v3215_v39 = vmul.f32 %v3504_v9, %v3208_v37 }
 0xe48   : > { %v3222_v40 = vadd.f32 %v3505_v38, %v3215_v39 }
 0xe4a   : > { %3223 = vst.msk [vmem:[%s455_s17] sm:$0xff] %vm482_vm1, %v3222_v40 }
 0xe4b   : > { %4044 = shalt.err (!%p4041_p10)
}
 0xe4c   : > { %s4045_s25 = scalar_lea.hbm %s3236_s22, 128  ;;  %s4049_s14 = scalar_lea.hbm %s5104_s16, 256 }
 0xe4d   : > { %p4046_p2 = scmp.ne.s32.totalorder %s3236_s22, %s4045_s25  ;;  %p4050_p7 = scmp.lt.s32.totalorder %s3236_s22, %s5104_s16 }
 0xe4e   : > { %p4051_p0 = scmp.lt.s32.totalorder %s4049_s14, %s4045_s25 }
 0xe4f   : > { %p4047_p4 = pnand %p4046_p2, %p5105_p12 }
 0xe50   : > { %p4052_p6 = por %p4051_p0, %p4050_p7 }
 0xe51   : > { %p4048_p9 = pneg %p4047_p4 }
 0xe53   : > { %p4053_p11 = pnand %p4052_p6, %p4048_p9 }
 0xe55   : > { %4056 = shalt.err (!%p4053_p11)
}
 0xe56   : > { %3795 = dma.vmem_to_hbm [thread:$0]  (%p5105_p12), %s3239_s19, 128, %s3236_s22, %s3225_s30  }
 0xe57 PF: > { %s5106_s15 = sld [smem:[#allocation8_spill]]  ;;  %p5109_p1 = scmp.ge.s32.totalorder %s4095_s28, 2 }
 0xe58   : > { %s5107_s23 = sld [smem:[#allocation12_spill]] }
 0xe5d   : > { %s3250_s24 = sand.u32 1, %s5106_s15  }
 0xe5e   : > { %p5108_p13 = scmp.ne.s32.totalorder %s5107_s23, 0  ;;  %s3251_s29 = scalar_lea.sflag [#allocation4], %s3250_s24 }
 0xe60   : > { %p3802_p3 = pnand %p5109_p1, %p5108_p13 }
 0xe62   : > { %p3803_p5 = pneg %p3802_p3 }
 0xe64   : > { %4078 = dma.done.wait (%p3803_p5), %s3251_s29, 128  }
 0xe65   : > { %4080 = vsyncadd (%p3803_p5), %s3251_s29, 4294967168  ;;  %s5110_s28 = sld [smem:[#allocation10_spill]]  ;;  %s5113_s25 = smov %s4087_s26 }
 0xe66   : > { %s5111_s13 = sld [smem:[#allocation9_spill]] }
 0xe67   : > { %s5112_s27 = sld [smem:[#allocation11_spill]] }
 0xe6b   : > { %p26_p8 = scmp.ge.s32.totalorder %s5110_s28, 4  }
 0xe6c   : > { %s5114_s26 = smov %s5111_s13 }
 0xe6d   :  { %28 = sbr.rel (!%p26_p8) target bundleno = 7 (0x7), region = 117 }
 0xe72   :  { %3256 = vsyncpa [#allocation3], 1 }
 0xe73   :  { %3258 = vsyncpa [#allocation3 + $0x1], 1 }
 0xe74   :  { %3259 = vsyncpa [#allocation4], 1 }
 0xe75   :  { %3261 = vsyncpa [#allocation4 + $0x1], 1 }

</bundles_post_ra>
